<compile_context>
chip_gen: v7x
topology: tpu7x:2x2x1
jax: 0.10.0
libtpu: 0.0.40
codegen_flags: <defaults>
</compile_context>

<pallas_src>
import functools
import math

import jax
import jax.numpy as jnp
from jax.experimental import pallas as pl
from jax.experimental.pallas import tpu as pltpu


# ----------------------------------------------------------------------------
# Small ViT config (stand-in for vit-base-patch16-224 at tiny shapes)
# ----------------------------------------------------------------------------
IMG = 16          # image size
PATCH = 8         # patch size
CHANS = 3         # RGB
HIDDEN = 32       # hidden size
HEADS = 2
HEAD_DIM = HIDDEN // HEADS
LAYERS = 2
INTER = 64        # MLP intermediate size
NUM_PATCHES = (IMG // PATCH) ** 2
SEQ = NUM_PATCHES + 1            # +1 for CLS token
NUM_CLASSES = 6
NUM_VITS = 3
PATCH_DIM = CHANS * PATCH * PATCH
LN_EPS = 1e-12


def _round8(n):
    return ((n + 7) // 8) * 8


SEQ_P = _round8(SEQ)             # padded sequence length (8) -> aligned reshapes


# ----------------------------------------------------------------------------
# Packed-weight layout: 3 blobs per ViT, one per column width.
# Each section starts at an 8-row (sublane-tile) aligned offset.
# ----------------------------------------------------------------------------
def _make_layout(sections):
    layout, off = {}, 0
    for name, rows in sections:
        layout[name] = (off, rows)
        off += _round8(rows)
    return layout, off


_SEC32 = [("patch_w", PATCH_DIM), ("token_bias", SEQ_P)]
for _l in range(LAYERS):
    _SEC32 += [(f"ln1_g_{_l}", 1), (f"ln1_b_{_l}", 1),
               (f"o_w_{_l}", HIDDEN), (f"o_b_{_l}", 1),
               (f"ln2_g_{_l}", 1), (f"ln2_b_{_l}", 1),
               (f"fc2_w_{_l}", INTER), (f"fc2_b_{_l}", 1)]
_SEC32 += [("ln_g", 1), ("ln_b", 1), ("pooler_w", HIDDEN), ("pooler_b", 1)]
LAYOUT32, ROWS32 = _make_layout(_SEC32)

_SEC96 = []
for _l in range(LAYERS):
    _SEC96 += [(f"qkv_w_{_l}", HIDDEN), (f"qkv_b_{_l}", 1)]
LAYOUT96, ROWS96 = _make_layout(_SEC96)

_SEC64 = []
for _l in range(LAYERS):
    _SEC64 += [(f"fc1_w_{_l}", HIDDEN), (f"fc1_b_{_l}", 1)]
LAYOUT64, ROWS64 = _make_layout(_SEC64)


# ----------------------------------------------------------------------------
# Fused kernel: 3x (patch embed -> transformer -> final LN -> pooler) + classifier.
# Called once (no grid); everything fits in VMEM (~0.4 MB total).
# ----------------------------------------------------------------------------
def _fused_model_kernel(patches_ref, b32_ref, b96_ref, b64_ref,
                        clsw_ref, clsb_ref, out_ref, *, batch):
    f32 = jnp.float32
    scale = 1.0 / math.sqrt(HEAD_DIM)
    dn_qk = (((2,), (2,)), ((0,), (0,)))   # bqd,bkd->bqk
    dn_pv = (((2,), (1,)), ((0,), (0,)))   # bqk,bkd->bqd

    def ln(x, g, b):
        mu = jnp.mean(x, axis=-1, keepdims=True)
        xc = x - mu
        var = jnp.mean(xc * xc, axis=-1, keepdims=True)
        return xc * jax.lax.rsqrt(var + LN_EPS) * g + b

    def gelu(x):
        # exact (erf-based) GELU, matching HF ViT's default activation
        return 0.5 * x * (1.0 + jax.lax.erf(x * (1.0 / math.sqrt(2.0))))

    # key-padding mask for the padded sequence positions (broadcast over queries)
    key_ids = jax.lax.broadcasted_iota(jnp.int32, (1, SEQ_P), 1)
    key_mask = jnp.where(key_ids < SEQ, 0.0, -1e30).astype(f32)      # (1, SEQ_P)

    acc = jnp.zeros((batch * SEQ_P, NUM_CLASSES), f32)

    for vi in range(NUM_VITS):
        def s32(name, _vi=vi):
            off, rows = LAYOUT32[name]
            return b32_ref[_vi, off:off + rows, :]

        def s96(name, _vi=vi):
            off, rows = LAYOUT96[name]
            return b96_ref[_vi, off:off + rows, :]

        def s64(name, _vi=vi):
            off, rows = LAYOUT64[name]
            return b64_ref[_vi, off:off + rows, :]

        # ---- patch embedding; CLS / positional / conv-bias terms are pre-folded
        #      host-side into an (SEQ_P, HIDDEN) additive "token_bias" ----
        emb = jnp.dot(patches_ref[vi], s32("patch_w"),
                      preferred_element_type=f32)                     # (B*SEQ_P, H)
        h = (emb.reshape(batch, SEQ_P, HIDDEN)
             + s32("token_bias")).reshape(batch * SEQ_P, HIDDEN)

        # ---- transformer layers (fully unrolled, weights resident in VMEM) ----
        for l in range(LAYERS):
            # --- self-attention block (pre-LN), fused QKV projection ---
            xn = ln(h, s32(f"ln1_g_{l}"), s32(f"ln1_b_{l}"))
            qkv = jnp.dot(xn, s96(f"qkv_w_{l}"),
                          preferred_element_type=f32) + s96(f"qkv_b_{l}")
            qkv3 = qkv.reshape(batch, SEQ_P, 3 * HIDDEN)              # aligned split
            o_w = s32(f"o_w_{l}")
            attn = s32(f"o_b_{l}")                                    # (1, H) -> broadcasts
            for hh in range(HEADS):
                c = hh * HEAD_DIM
                q = qkv3[:, :, c:c + HEAD_DIM]
                k = qkv3[:, :, HIDDEN + c:HIDDEN + c + HEAD_DIM]
                v = qkv3[:, :, 2 * HIDDEN + c:2 * HIDDEN + c + HEAD_DIM]
                s = jax.lax.dot_general(q, k, dimension_numbers=dn_qk,
                                        preferred_element_type=f32)
                s = s * scale + key_mask                              # mask padded keys
                s = s - jnp.max(s, axis=-1, keepdims=True)
                p = jnp.exp(s)
                p = p * pl.reciprocal(jnp.sum(p, axis=-1, keepdims=True),
                                      approx=True)
                ctx_h = jax.lax.dot_general(p, v, dimension_numbers=dn_pv,
                                            preferred_element_type=f32)
                # fold head output straight into the output projection
                attn = attn + jnp.dot(ctx_h.reshape(batch * SEQ_P, HEAD_DIM),
                                      o_w[c:c + HEAD_DIM, :],
                                      preferred_element_type=f32)
            h = h + attn

            # --- MLP block (pre-LN), fully fused ---
            xn2 = ln(h, s32(f"ln2_g_{l}"), s32(f"ln2_b_{l}"))
            mid = gelu(jnp.dot(xn2, s64(f"fc1_w_{l}"),
                               preferred_element_type=f32) + s64(f"fc1_b_{l}"))
            h = h + jnp.dot(mid, s32(f"fc2_w_{l}"),
                            preferred_element_type=f32) + s32(f"fc2_b_{l}")

        # ---- final LN + tanh pooler + classifier partial-matmul accumulation.
        #      Computed on all SEQ_P rows (same #sublane tiles as CLS-only);
        #      only the CLS rows of the output are read back in JAX. ----
        hn = ln(h, s32("ln_g"), s32("ln_b"))
        pooled = jnp.tanh(jnp.dot(hn, s32("pooler_w"),
                                  preferred_element_type=f32) + s32("pooler_b"))
        acc = acc + jnp.dot(pooled, clsw_ref[vi * HIDDEN:(vi + 1) * HIDDEN, :],
                            preferred_element_type=f32)

    out_ref[...] = (acc + clsb_ref[...]).astype(out_ref.dtype)


def fused_model_forward(fused, patches, batch):
    """patches: (3, B*SEQ_P, PATCH_DIM) -> per-token logits (B*SEQ_P, NUM_CLASSES)."""
    vmem = pl.BlockSpec(memory_space=pltpu.MemorySpace.VMEM)
    return pl.pallas_call(
        functools.partial(_fused_model_kernel, batch=batch),
        out_shape=jax.ShapeDtypeStruct((batch * SEQ_P, NUM_CLASSES), jnp.float32),
        in_specs=[vmem] * 6,
        out_specs=vmem,
    )(patches, fused["blob32"], fused["blob96"], fused["blob64"],
      fused["cls_w"], fused["cls_b"])


# ----------------------------------------------------------------------------
# JAX-side glue
# ----------------------------------------------------------------------------
def extract_patches(x):
    """NCHW -> (B, num_patches, C*P*P), same ordering as Conv2d + flatten(2).T."""
    B, C, H, W = x.shape
    nh, nw = H // PATCH, W // PATCH
    x = x.reshape(B, C, nh, PATCH, nw, PATCH)
    x = jnp.transpose(x, (0, 2, 4, 1, 3, 5))               # (B, nh, nw, C, P, P)
    return x.reshape(B, nh * nw, C * PATCH * PATCH)


def tokenize_patches(x):
    """Lay patches out as padded token rows: [cls-slot(0), patches, pad(0)] per image."""
    p = extract_patches(x)                                  # (B, NP, PD)
    B = p.shape[0]
    tok = jnp.zeros((B, SEQ_P, PATCH_DIM), jnp.float32)
    tok = tok.at[:, 1:SEQ, :].set(p)
    return tok.reshape(B * SEQ_P, PATCH_DIM)


@jax.jit
def aoi_vit_multi3(fused, x1, x2, x3):
    B = x1.shape[0]
    patches = jnp.stack([tokenize_patches(x1), tokenize_patches(x2),
                         tokenize_patches(x3)], axis=0)     # (3, B*SEQ_P, PD)
    out = fused_model_forward(fused, patches, B)            # (B*SEQ_P, NUM_CLASSES)
    # Dropout(0.1) is identity at inference time.  CLS rows sit at b*SEQ_P.
    return out.reshape(B, SEQ_P, NUM_CLASSES)[:, 0, :]


# ----------------------------------------------------------------------------
# Deterministic parameter init (synthetic weights, ViT-shaped) + fusion/packing
# ----------------------------------------------------------------------------
def _w(key, shape, scale=0.02):
    return (scale * jax.random.normal(key, shape)).astype(jnp.float32)


def init_vit_params(key):
    keys = iter(jax.random.split(key, 8 + LAYERS * 8))
    p = {
        "cls_token": _w(next(keys), (1, 1, HIDDEN)),
        "pos_emb": _w(next(keys), (1, SEQ, HIDDEN)),
        "patch_w": _w(next(keys), (PATCH_DIM, HIDDEN)),
        "patch_b": jnp.zeros((HIDDEN,), jnp.float32),
        "ln_g": jnp.ones((HIDDEN,), jnp.float32),
        "ln_b": jnp.zeros((HIDDEN,), jnp.float32),
        "pooler_w": _w(next(keys), (HIDDEN, HIDDEN)),
        "pooler_b": jnp.zeros((HIDDEN,), jnp.float32),
        "layers": [],
    }
    for _ in range(LAYERS):
        p["layers"].append({
            "ln1_g": jnp.ones((HIDDEN,), jnp.float32),
            "ln1_b": jnp.zeros((HIDDEN,), jnp.float32),
            "q_w": _w(next(keys), (HIDDEN, HIDDEN)),
            "q_b": jnp.zeros((HIDDEN,), jnp.float32),
            "k_w": _w(next(keys), (HIDDEN, HIDDEN)),
            "k_b": jnp.zeros((HIDDEN,), jnp.float32),
            "v_w": _w(next(keys), (HIDDEN, HIDDEN)),
            "v_b": jnp.zeros((HIDDEN,), jnp.float32),
            "o_w": _w(next(keys), (HIDDEN, HIDDEN)),
            "o_b": jnp.zeros((HIDDEN,), jnp.float32),
            "ln2_g": jnp.ones((HIDDEN,), jnp.float32),
            "ln2_b": jnp.zeros((HIDDEN,), jnp.float32),
            "fc1_w": _w(next(keys), (HIDDEN, INTER)),
            "fc1_b": jnp.zeros((INTER,), jnp.float32),
            "fc2_w": _w(next(keys), (INTER, HIDDEN)),
            "fc2_b": jnp.zeros((HIDDEN,), jnp.float32),
        })
    return p


def init_params(key):
    k1, k2, k3, k4 = jax.random.split(key, 4)
    return {
        "vit1": init_vit_params(k1),
        "vit2": init_vit_params(k2),
        "vit3": init_vit_params(k3),
        "cls_w": _w(k4, (3 * HIDDEN, NUM_CLASSES)),
        "cls_b": jnp.zeros((NUM_CLASSES,), jnp.float32),
    }


def _pack_blob(entries, layout, total_rows, width):
    assert set(entries.keys()) == set(layout.keys())
    blob = jnp.zeros((total_rows, width), jnp.float32)
    for name, arr in entries.items():
        off, rows = layout[name]
        blob = blob.at[off:off + rows, :].set(
            jnp.asarray(arr, jnp.float32).reshape(rows, width))
    return blob


def prepare_fused_params(params):
    """Pack each ViT's weights into 3 contiguous blobs + fuse Q/K/V per layer."""
    vits = [params["vit1"], params["vit2"], params["vit3"]]
    b32, b96, b64 = [], [], []
    for vp in vits:
        pos = vp["pos_emb"].reshape(SEQ, HIDDEN)
        cls = vp["cls_token"].reshape(1, HIDDEN)
        # Additive token bias: row0 = cls + pos0 (cls slot has zero patch pixels),
        # rows 1..SEQ-1 = pos + conv bias, padded rows = 0.
        tb = jnp.zeros((SEQ_P, HIDDEN), jnp.float32)
        tb = tb.at[0:1, :].set(cls + pos[0:1, :])
        tb = tb.at[1:SEQ, :].set(pos[1:SEQ, :] + vp["patch_b"][None, :])

        e32 = {"patch_w": vp["patch_w"], "token_bias": tb,
               "ln_g": vp["ln_g"], "ln_b": vp["ln_b"],
               "pooler_w": vp["pooler_w"], "pooler_b": vp["pooler_b"]}
        e96, e64 = {}, {}
        for l, L in enumerate(vp["layers"]):
            e32[f"ln1_g_{l}"] = L["ln1_g"]
            e32[f"ln1_b_{l}"] = L["ln1_b"]
            e32[f"o_w_{l}"] = L["o_w"]
            e32[f"o_b_{l}"] = L["o_b"]
            e32[f"ln2_g_{l}"] = L["ln2_g"]
            e32[f"ln2_b_{l}"] = L["ln2_b"]
            e32[f"fc2_w_{l}"] = L["fc2_w"]
            e32[f"fc2_b_{l}"] = L["fc2_b"]
            e96[f"qkv_w_{l}"] = jnp.concatenate([L["q_w"], L["k_w"], L["v_w"]], axis=1)
            e96[f"qkv_b_{l}"] = jnp.concatenate([L["q_b"], L["k_b"], L["v_b"]])
            e64[f"fc1_w_{l}"] = L["fc1_w"]
            e64[f"fc1_b_{l}"] = L["fc1_b"]
        b32.append(_pack_blob(e32, LAYOUT32, ROWS32, HIDDEN))
        b96.append(_pack_blob(e96, LAYOUT96, ROWS96, 3 * HIDDEN))
        b64.append(_pack_blob(e64, LAYOUT64, ROWS64, INTER))

    return {
        "blob32": jnp.stack(b32, axis=0),          # (3, 544, 32)
        "blob96": jnp.stack(b96, axis=0),          # (3, 80, 96)
        "blob64": jnp.stack(b64, axis=0),          # (3, 80, 64)
        "cls_w": params["cls_w"],                  # (96, 6)
        "cls_b": params["cls_b"].reshape(1, NUM_CLASSES),
    }


# ----------------------------------------------------------------------------
if __name__ == "__main__":
    # TODO(synk): pretrained google/vit-base-patch16-224 weights cannot be loaded
    # in-script; synthetic ViT-shaped weights at reduced dims are used instead.
    B = 2
    key = jax.random.PRNGKey(0)
    kx1, kx2, kx3 = jax.random.split(key, 3)
    x1 = jax.random.normal(kx1, (B, CHANS, IMG, IMG), jnp.float32)
    x2 = jax.random.normal(kx2, (B, CHANS, IMG, IMG), jnp.float32)
    x3 = jax.random.normal(kx3, (B, CHANS, IMG, IMG), jnp.float32)

    params = init_params(jax.random.PRNGKey(1))
    fused = prepare_fused_params(params)

    logits = aoi_vit_multi3(fused, x1, x2, x3)
    jax.block_until_ready(logits)
    assert logits.shape == (B, NUM_CLASSES), logits.shape
    print("KERNEL_OK")
</pallas_src>

<mosaic_0001>
module attributes {stable_mosaic.version = 11 : i64} {
  func.func @_fused_model_kernel(%arg0: memref<3x16x192xf32, #tpu.memory_space<vmem>>, %arg1: memref<3x544x32xf32, #tpu.memory_space<vmem>>, %arg2: memref<3x80x96xf32, #tpu.memory_space<vmem>>, %arg3: memref<3x80x64xf32, #tpu.memory_space<vmem>>, %arg4: memref<96x6xf32, #tpu.memory_space<vmem>>, %arg5: memref<1x6xf32, #tpu.memory_space<vmem>>, %arg6: memref<16x6xf32, #tpu.memory_space<vmem>>) attributes {dimension_semantics = [], scalar_prefetch = 0 : i64, scratch_operands = 0 : i64, tpu.core_type = #tpu.core_type<tc>} {
    %0 = tpu.iota {dimensions = array<i32: 1>} : vector<1x8xi32>
    %c5_i32 = arith.constant 5 : i32
    %1 = vector.broadcast %c5_i32 : i32 to vector<1x8xi32>
    %2 = arith.cmpi slt, %0, %1 : vector<1x8xi32>
    %cst = arith.constant 0.000000e+00 : f32
    %cst_0 = arith.constant -1.000000e+30 : f32
    %3 = vector.broadcast %cst : f32 to vector<1x8xf32>
    %4 = vector.broadcast %cst_0 : f32 to vector<1x8xf32>
    %5 = arith.select %2, %3, %4 : vector<1x8xi1>, vector<1x8xf32>
    %cst_1 = arith.constant 0.000000e+00 : f32
    %6 = vector.broadcast %cst_1 : f32 to vector<16x6xf32>
    %c0 = arith.constant 0 : index
    %c0_2 = arith.constant 0 : index
    %c0_3 = arith.constant 0 : index
    %7 = vector.load %arg0[%c0, %c0_2, %c0_3] : memref<3x16x192xf32, #tpu.memory_space<vmem>>, vector<1x16x192xf32>
    %8 = vector.shape_cast %7 : vector<1x16x192xf32> to vector<16x192xf32>
    %c0_4 = arith.constant 0 : index
    %c0_5 = arith.constant 0 : index
    %c0_6 = arith.constant 0 : index
    %9 = vector.load %arg1[%c0_4, %c0_5, %c0_6] : memref<3x544x32xf32, #tpu.memory_space<vmem>>, vector<1x192x32xf32>
    %10 = vector.shape_cast %9 : vector<1x192x32xf32> to vector<192x32xf32>
    %cst_7 = arith.constant dense<0.000000e+00> : vector<16x32xf32>
    %11 = tpu.matmul %8, %10, %cst_7 {dimension_numbers = #tpu.dot_dimension_numbers<[1], [0], [0], [1], [0, 0, 1, 1], [], []>} : vector<16x192xf32>, vector<192x32xf32>, vector<16x32xf32> -> vector<16x32xf32>
    %12 = vector.shape_cast %11 : vector<16x32xf32> to vector<2x8x32xf32>
    %c0_8 = arith.constant 0 : index
    %c192 = arith.constant 192 : index
    %c0_9 = arith.constant 0 : index
    %13 = vector.load %arg1[%c0_8, %c192, %c0_9] : memref<3x544x32xf32, #tpu.memory_space<vmem>>, vector<1x8x32xf32>
    %14 = vector.shape_cast %13 : vector<1x8x32xf32> to vector<8x32xf32>
    %15 = vector.shape_cast %14 : vector<8x32xf32> to vector<1x8x32xf32>
    %16 = vector.broadcast %15 : vector<1x8x32xf32> to vector<2x8x32xf32>
    %17 = arith.addf %12, %16 : vector<2x8x32xf32>
    %18 = vector.shape_cast %17 : vector<2x8x32xf32> to vector<16x32xf32>
    %c0_10 = arith.constant 0 : index
    %c200 = arith.constant 200 : index
    %c0_11 = arith.constant 0 : index
    %19 = vector.load %arg1[%c0_10, %c200, %c0_11] : memref<3x544x32xf32, #tpu.memory_space<vmem>>, vector<1x1x32xf32>
    %20 = vector.shape_cast %19 : vector<1x1x32xf32> to vector<1x32xf32>
    %c0_12 = arith.constant 0 : index
    %c208 = arith.constant 208 : index
    %c0_13 = arith.constant 0 : index
    %21 = vector.load %arg1[%c0_12, %c208, %c0_13] : memref<3x544x32xf32, #tpu.memory_space<vmem>>, vector<1x1x32xf32>
    %22 = vector.shape_cast %21 : vector<1x1x32xf32> to vector<1x32xf32>
    %cst_14 = arith.constant dense<0.000000e+00> : vector<16xf32>
    %23 = vector.multi_reduction <add>, %18, %cst_14 [1] : vector<16x32xf32> to vector<16xf32>
    %24 = vector.shape_cast %23 : vector<16xf32> to vector<16x1xf32>
    %cst_15 = arith.constant 3.200000e+01 : f32
    %25 = vector.broadcast %cst_15 : f32 to vector<16x1xf32>
    %26 = arith.divf %24, %25 : vector<16x1xf32>
    %27 = vector.broadcast %26 : vector<16x1xf32> to vector<16x32xf32>
    %28 = arith.subf %18, %27 : vector<16x32xf32>
    %29 = arith.mulf %28, %28 : vector<16x32xf32>
    %cst_16 = arith.constant dense<0.000000e+00> : vector<16xf32>
    %30 = vector.multi_reduction <add>, %29, %cst_16 [1] : vector<16x32xf32> to vector<16xf32>
    %31 = vector.shape_cast %30 : vector<16xf32> to vector<16x1xf32>
    %cst_17 = arith.constant 3.200000e+01 : f32
    %32 = vector.broadcast %cst_17 : f32 to vector<16x1xf32>
    %33 = arith.divf %31, %32 : vector<16x1xf32>
    %cst_18 = arith.constant 9.99999996E-13 : f32
    %34 = vector.broadcast %cst_18 : f32 to vector<16x1xf32>
    %35 = arith.addf %33, %34 : vector<16x1xf32>
    %36 = math.rsqrt %35 : vector<16x1xf32>
    %37 = vector.broadcast %36 : vector<16x1xf32> to vector<16x32xf32>
    %38 = arith.mulf %28, %37 : vector<16x32xf32>
    %39 = vector.broadcast %20 : vector<1x32xf32> to vector<16x32xf32>
    %40 = arith.mulf %38, %39 : vector<16x32xf32>
    %41 = vector.broadcast %22 : vector<1x32xf32> to vector<16x32xf32>
    %42 = arith.addf %40, %41 : vector<16x32xf32>
    %c0_19 = arith.constant 0 : index
    %c0_20 = arith.constant 0 : index
    %c0_21 = arith.constant 0 : index
    %43 = vector.load %arg2[%c0_19, %c0_20, %c0_21] : memref<3x80x96xf32, #tpu.memory_space<vmem>>, vector<1x32x96xf32>
    %44 = vector.shape_cast %43 : vector<1x32x96xf32> to vector<32x96xf32>
    %cst_22 = arith.constant dense<0.000000e+00> : vector<16x96xf32>
    %45 = tpu.matmul %42, %44, %cst_22 {dimension_numbers = #tpu.dot_dimension_numbers<[1], [0], [0], [1], [0, 0, 1, 1], [], []>} : vector<16x32xf32>, vector<32x96xf32>, vector<16x96xf32> -> vector<16x96xf32>
    %c0_23 = arith.constant 0 : index
    %c32 = arith.constant 32 : index
    %c0_24 = arith.constant 0 : index
    %46 = vector.load %arg2[%c0_23, %c32, %c0_24] : memref<3x80x96xf32, #tpu.memory_space<vmem>>, vector<1x1x96xf32>
    %47 = vector.shape_cast %46 : vector<1x1x96xf32> to vector<1x96xf32>
    %48 = vector.broadcast %47 : vector<1x96xf32> to vector<16x96xf32>
    %49 = arith.addf %45, %48 : vector<16x96xf32>
    %50 = vector.shape_cast %49 : vector<16x96xf32> to vector<2x8x96xf32>
    %c0_25 = arith.constant 0 : index
    %c216 = arith.constant 216 : index
    %c0_26 = arith.constant 0 : index
    %51 = vector.load %arg1[%c0_25, %c216, %c0_26] : memref<3x544x32xf32, #tpu.memory_space<vmem>>, vector<1x32x32xf32>
    %52 = vector.shape_cast %51 : vector<1x32x32xf32> to vector<32x32xf32>
    %c0_27 = arith.constant 0 : index
    %c248 = arith.constant 248 : index
    %c0_28 = arith.constant 0 : index
    %53 = vector.load %arg1[%c0_27, %c248, %c0_28] : memref<3x544x32xf32, #tpu.memory_space<vmem>>, vector<1x1x32xf32>
    %54 = vector.shape_cast %53 : vector<1x1x32xf32> to vector<1x32xf32>
    %55 = vector.extract_strided_slice %50 {offsets = [0, 0, 0], sizes = [2, 8, 16], strides = [1, 1, 1]} : vector<2x8x96xf32> to vector<2x8x16xf32>
    %56 = vector.extract_strided_slice %50 {offsets = [0, 0, 32], sizes = [2, 8, 16], strides = [1, 1, 1]} : vector<2x8x96xf32> to vector<2x8x16xf32>
    %57 = vector.extract_strided_slice %50 {offsets = [0, 0, 64], sizes = [2, 8, 16], strides = [1, 1, 1]} : vector<2x8x96xf32> to vector<2x8x16xf32>
    %cst_29 = arith.constant dense<0.000000e+00> : vector<2x8x8xf32>
    %58 = tpu.matmul %55, %56, %cst_29 {dimension_numbers = #tpu.dot_dimension_numbers<[2], [2], [1], [1], [0, 0, 0, 1, 1, 1], [0], [0]>} : vector<2x8x16xf32>, vector<2x8x16xf32>, vector<2x8x8xf32> -> vector<2x8x8xf32>
    %cst_30 = arith.constant 2.500000e-01 : f32
    %59 = vector.broadcast %cst_30 : f32 to vector<2x8x8xf32>
    %60 = arith.mulf %58, %59 : vector<2x8x8xf32>
    %61 = vector.shape_cast %5 : vector<1x8xf32> to vector<1x1x8xf32>
    %62 = vector.broadcast %61 : vector<1x1x8xf32> to vector<2x8x8xf32>
    %63 = arith.addf %60, %62 : vector<2x8x8xf32>
    %cst_31 = arith.constant dense<0xFF800000> : vector<2x8xf32>
    %64 = vector.multi_reduction <maximumf>, %63, %cst_31 [2] : vector<2x8x8xf32> to vector<2x8xf32>
    %65 = vector.shape_cast %64 : vector<2x8xf32> to vector<2x8x1xf32>
    %66 = vector.broadcast %65 : vector<2x8x1xf32> to vector<2x8x8xf32>
    %67 = arith.subf %63, %66 : vector<2x8x8xf32>
    %68 = math.exp %67 : vector<2x8x8xf32>
    %cst_32 = arith.constant dense<0.000000e+00> : vector<2x8xf32>
    %69 = vector.multi_reduction <add>, %68, %cst_32 [2] : vector<2x8x8xf32> to vector<2x8xf32>
    %70 = vector.shape_cast %69 : vector<2x8xf32> to vector<2x8x1xf32>
    %71 = tpu.reciprocal %70 {approx = true} : vector<2x8x1xf32> -> vector<2x8x1xf32>
    %72 = vector.broadcast %71 : vector<2x8x1xf32> to vector<2x8x8xf32>
    %73 = arith.mulf %68, %72 : vector<2x8x8xf32>
    %cst_33 = arith.constant dense<0.000000e+00> : vector<2x8x16xf32>
    %74 = tpu.matmul %73, %57, %cst_33 {dimension_numbers = #tpu.dot_dimension_numbers<[2], [1], [1], [2], [0, 0, 0, 1, 1, 2], [0], [0]>} : vector<2x8x8xf32>, vector<2x8x16xf32>, vector<2x8x16xf32> -> vector<2x8x16xf32>
    %75 = vector.shape_cast %74 : vector<2x8x16xf32> to vector<16x16xf32>
    %76 = vector.extract_strided_slice %52 {offsets = [0, 0], sizes = [16, 32], strides = [1, 1]} : vector<32x32xf32> to vector<16x32xf32>
    %cst_34 = arith.constant dense<0.000000e+00> : vector<16x32xf32>
    %77 = tpu.matmul %75, %76, %cst_34 {dimension_numbers = #tpu.dot_dimension_numbers<[1], [0], [0], [1], [0, 0, 1, 1], [], []>} : vector<16x16xf32>, vector<16x32xf32>, vector<16x32xf32> -> vector<16x32xf32>
    %78 = vector.broadcast %54 : vector<1x32xf32> to vector<16x32xf32>
    %79 = arith.addf %78, %77 : vector<16x32xf32>
    %80 = vector.extract_strided_slice %50 {offsets = [0, 0, 16], sizes = [2, 8, 16], strides = [1, 1, 1]} : vector<2x8x96xf32> to vector<2x8x16xf32>
    %81 = vector.extract_strided_slice %50 {offsets = [0, 0, 48], sizes = [2, 8, 16], strides = [1, 1, 1]} : vector<2x8x96xf32> to vector<2x8x16xf32>
    %82 = vector.extract_strided_slice %50 {offsets = [0, 0, 80], sizes = [2, 8, 16], strides = [1, 1, 1]} : vector<2x8x96xf32> to vector<2x8x16xf32>
    %cst_35 = arith.constant dense<0.000000e+00> : vector<2x8x8xf32>
    %83 = tpu.matmul %80, %81, %cst_35 {dimension_numbers = #tpu.dot_dimension_numbers<[2], [2], [1], [1], [0, 0, 0, 1, 1, 1], [0], [0]>} : vector<2x8x16xf32>, vector<2x8x16xf32>, vector<2x8x8xf32> -> vector<2x8x8xf32>
    %cst_36 = arith.constant 2.500000e-01 : f32
    %84 = vector.broadcast %cst_36 : f32 to vector<2x8x8xf32>
    %85 = arith.mulf %83, %84 : vector<2x8x8xf32>
    %86 = vector.shape_cast %5 : vector<1x8xf32> to vector<1x1x8xf32>
    %87 = vector.broadcast %86 : vector<1x1x8xf32> to vector<2x8x8xf32>
    %88 = arith.addf %85, %87 : vector<2x8x8xf32>
    %cst_37 = arith.constant dense<0xFF800000> : vector<2x8xf32>
    %89 = vector.multi_reduction <maximumf>, %88, %cst_37 [2] : vector<2x8x8xf32> to vector<2x8xf32>
    %90 = vector.shape_cast %89 : vector<2x8xf32> to vector<2x8x1xf32>
    %91 = vector.broadcast %90 : vector<2x8x1xf32> to vector<2x8x8xf32>
    %92 = arith.subf %88, %91 : vector<2x8x8xf32>
    %93 = math.exp %92 : vector<2x8x8xf32>
    %cst_38 = arith.constant dense<0.000000e+00> : vector<2x8xf32>
    %94 = vector.multi_reduction <add>, %93, %cst_38 [2] : vector<2x8x8xf32> to vector<2x8xf32>
    %95 = vector.shape_cast %94 : vector<2x8xf32> to vector<2x8x1xf32>
    %96 = tpu.reciprocal %95 {approx = true} : vector<2x8x1xf32> -> vector<2x8x1xf32>
    %97 = vector.broadcast %96 : vector<2x8x1xf32> to vector<2x8x8xf32>
    %98 = arith.mulf %93, %97 : vector<2x8x8xf32>
    %cst_39 = arith.constant dense<0.000000e+00> : vector<2x8x16xf32>
    %99 = tpu.matmul %98, %82, %cst_39 {dimension_numbers = #tpu.dot_dimension_numbers<[2], [1], [1], [2], [0, 0, 0, 1, 1, 2], [0], [0]>} : vector<2x8x8xf32>, vector<2x8x16xf32>, vector<2x8x16xf32> -> vector<2x8x16xf32>
    %100 = vector.shape_cast %99 : vector<2x8x16xf32> to vector<16x16xf32>
    %101 = vector.extract_strided_slice %52 {offsets = [16, 0], sizes = [16, 32], strides = [1, 1]} : vector<32x32xf32> to vector<16x32xf32>
    %cst_40 = arith.constant dense<0.000000e+00> : vector<16x32xf32>
    %102 = tpu.matmul %100, %101, %cst_40 {dimension_numbers = #tpu.dot_dimension_numbers<[1], [0], [0], [1], [0, 0, 1, 1], [], []>} : vector<16x16xf32>, vector<16x32xf32>, vector<16x32xf32> -> vector<16x32xf32>
    %103 = arith.addf %79, %102 : vector<16x32xf32>
    %104 = arith.addf %18, %103 : vector<16x32xf32>
    %c0_41 = arith.constant 0 : index
    %c256 = arith.constant 256 : index
    %c0_42 = arith.constant 0 : index
    %105 = vector.load %arg1[%c0_41, %c256, %c0_42] : memref<3x544x32xf32, #tpu.memory_space<vmem>>, vector<1x1x32xf32>
    %106 = vector.shape_cast %105 : vector<1x1x32xf32> to vector<1x32xf32>
    %c0_43 = arith.constant 0 : index
    %c264 = arith.constant 264 : index
    %c0_44 = arith.constant 0 : index
    %107 = vector.load %arg1[%c0_43, %c264, %c0_44] : memref<3x544x32xf32, #tpu.memory_space<vmem>>, vector<1x1x32xf32>
    %108 = vector.shape_cast %107 : vector<1x1x32xf32> to vector<1x32xf32>
    %cst_45 = arith.constant dense<0.000000e+00> : vector<16xf32>
    %109 = vector.multi_reduction <add>, %104, %cst_45 [1] : vector<16x32xf32> to vector<16xf32>
    %110 = vector.shape_cast %109 : vector<16xf32> to vector<16x1xf32>
    %cst_46 = arith.constant 3.200000e+01 : f32
    %111 = vector.broadcast %cst_46 : f32 to vector<16x1xf32>
    %112 = arith.divf %110, %111 : vector<16x1xf32>
    %113 = vector.broadcast %112 : vector<16x1xf32> to vector<16x32xf32>
    %114 = arith.subf %104, %113 : vector<16x32xf32>
    %115 = arith.mulf %114, %114 : vector<16x32xf32>
    %cst_47 = arith.constant dense<0.000000e+00> : vector<16xf32>
    %116 = vector.multi_reduction <add>, %115, %cst_47 [1] : vector<16x32xf32> to vector<16xf32>
    %117 = vector.shape_cast %116 : vector<16xf32> to vector<16x1xf32>
    %cst_48 = arith.constant 3.200000e+01 : f32
    %118 = vector.broadcast %cst_48 : f32 to vector<16x1xf32>
    %119 = arith.divf %117, %118 : vector<16x1xf32>
    %cst_49 = arith.constant 9.99999996E-13 : f32
    %120 = vector.broadcast %cst_49 : f32 to vector<16x1xf32>
    %121 = arith.addf %119, %120 : vector<16x1xf32>
    %122 = math.rsqrt %121 : vector<16x1xf32>
    %123 = vector.broadcast %122 : vector<16x1xf32> to vector<16x32xf32>
    %124 = arith.mulf %114, %123 : vector<16x32xf32>
    %125 = vector.broadcast %106 : vector<1x32xf32> to vector<16x32xf32>
    %126 = arith.mulf %124, %125 : vector<16x32xf32>
    %127 = vector.broadcast %108 : vector<1x32xf32> to vector<16x32xf32>
    %128 = arith.addf %126, %127 : vector<16x32xf32>
    %c0_50 = arith.constant 0 : index
    %c0_51 = arith.constant 0 : index
    %c0_52 = arith.constant 0 : index
    %129 = vector.load %arg3[%c0_50, %c0_51, %c0_52] : memref<3x80x64xf32, #tpu.memory_space<vmem>>, vector<1x32x64xf32>
    %130 = vector.shape_cast %129 : vector<1x32x64xf32> to vector<32x64xf32>
    %cst_53 = arith.constant dense<0.000000e+00> : vector<16x64xf32>
    %131 = tpu.matmul %128, %130, %cst_53 {dimension_numbers = #tpu.dot_dimension_numbers<[1], [0], [0], [1], [0, 0, 1, 1], [], []>} : vector<16x32xf32>, vector<32x64xf32>, vector<16x64xf32> -> vector<16x64xf32>
    %c0_54 = arith.constant 0 : index
    %c32_55 = arith.constant 32 : index
    %c0_56 = arith.constant 0 : index
    %132 = vector.load %arg3[%c0_54, %c32_55, %c0_56] : memref<3x80x64xf32, #tpu.memory_space<vmem>>, vector<1x1x64xf32>
    %133 = vector.shape_cast %132 : vector<1x1x64xf32> to vector<1x64xf32>
    %134 = vector.broadcast %133 : vector<1x64xf32> to vector<16x64xf32>
    %135 = arith.addf %131, %134 : vector<16x64xf32>
    %cst_57 = arith.constant 5.000000e-01 : f32
    %136 = vector.broadcast %cst_57 : f32 to vector<16x64xf32>
    %137 = arith.mulf %136, %135 : vector<16x64xf32>
    %cst_58 = arith.constant 0.707106769 : f32
    %138 = vector.broadcast %cst_58 : f32 to vector<16x64xf32>
    %139 = arith.mulf %135, %138 : vector<16x64xf32>
    %140 = math.erf %139 : vector<16x64xf32>
    %cst_59 = arith.constant 1.000000e+00 : f32
    %141 = vector.broadcast %cst_59 : f32 to vector<16x64xf32>
    %142 = arith.addf %141, %140 : vector<16x64xf32>
    %143 = arith.mulf %137, %142 : vector<16x64xf32>
    %c0_60 = arith.constant 0 : index
    %c272 = arith.constant 272 : index
    %c0_61 = arith.constant 0 : index
    %144 = vector.load %arg1[%c0_60, %c272, %c0_61] : memref<3x544x32xf32, #tpu.memory_space<vmem>>, vector<1x64x32xf32>
    %145 = vector.shape_cast %144 : vector<1x64x32xf32> to vector<64x32xf32>
    %cst_62 = arith.constant dense<0.000000e+00> : vector<16x32xf32>
    %146 = tpu.matmul %143, %145, %cst_62 {dimension_numbers = #tpu.dot_dimension_numbers<[1], [0], [0], [1], [0, 0, 1, 1], [], []>} : vector<16x64xf32>, vector<64x32xf32>, vector<16x32xf32> -> vector<16x32xf32>
    %147 = arith.addf %104, %146 : vector<16x32xf32>
    %c0_63 = arith.constant 0 : index
    %c336 = arith.constant 336 : index
    %c0_64 = arith.constant 0 : index
    %148 = vector.load %arg1[%c0_63, %c336, %c0_64] : memref<3x544x32xf32, #tpu.memory_space<vmem>>, vector<1x1x32xf32>
    %149 = vector.shape_cast %148 : vector<1x1x32xf32> to vector<1x32xf32>
    %150 = vector.broadcast %149 : vector<1x32xf32> to vector<16x32xf32>
    %151 = arith.addf %147, %150 : vector<16x32xf32>
    %c0_65 = arith.constant 0 : index
    %c344 = arith.constant 344 : index
    %c0_66 = arith.constant 0 : index
    %152 = vector.load %arg1[%c0_65, %c344, %c0_66] : memref<3x544x32xf32, #tpu.memory_space<vmem>>, vector<1x1x32xf32>
    %153 = vector.shape_cast %152 : vector<1x1x32xf32> to vector<1x32xf32>
    %c0_67 = arith.constant 0 : index
    %c352 = arith.constant 352 : index
    %c0_68 = arith.constant 0 : index
    %154 = vector.load %arg1[%c0_67, %c352, %c0_68] : memref<3x544x32xf32, #tpu.memory_space<vmem>>, vector<1x1x32xf32>
    %155 = vector.shape_cast %154 : vector<1x1x32xf32> to vector<1x32xf32>
    %cst_69 = arith.constant dense<0.000000e+00> : vector<16xf32>
    %156 = vector.multi_reduction <add>, %151, %cst_69 [1] : vector<16x32xf32> to vector<16xf32>
    %157 = vector.shape_cast %156 : vector<16xf32> to vector<16x1xf32>
    %cst_70 = arith.constant 3.200000e+01 : f32
    %158 = vector.broadcast %cst_70 : f32 to vector<16x1xf32>
    %159 = arith.divf %157, %158 : vector<16x1xf32>
    %160 = vector.broadcast %159 : vector<16x1xf32> to vector<16x32xf32>
    %161 = arith.subf %151, %160 : vector<16x32xf32>
    %162 = arith.mulf %161, %161 : vector<16x32xf32>
    %cst_71 = arith.constant dense<0.000000e+00> : vector<16xf32>
    %163 = vector.multi_reduction <add>, %162, %cst_71 [1] : vector<16x32xf32> to vector<16xf32>
    %164 = vector.shape_cast %163 : vector<16xf32> to vector<16x1xf32>
    %cst_72 = arith.constant 3.200000e+01 : f32
    %165 = vector.broadcast %cst_72 : f32 to vector<16x1xf32>
    %166 = arith.divf %164, %165 : vector<16x1xf32>
    %cst_73 = arith.constant 9.99999996E-13 : f32
    %167 = vector.broadcast %cst_73 : f32 to vector<16x1xf32>
    %168 = arith.addf %166, %167 : vector<16x1xf32>
    %169 = math.rsqrt %168 : vector<16x1xf32>
    %170 = vector.broadcast %169 : vector<16x1xf32> to vector<16x32xf32>
    %171 = arith.mulf %161, %170 : vector<16x32xf32>
    %172 = vector.broadcast %153 : vector<1x32xf32> to vector<16x32xf32>
    %173 = arith.mulf %171, %172 : vector<16x32xf32>
    %174 = vector.broadcast %155 : vector<1x32xf32> to vector<16x32xf32>
    %175 = arith.addf %173, %174 : vector<16x32xf32>
    %c0_74 = arith.constant 0 : index
    %c40 = arith.constant 40 : index
    %c0_75 = arith.constant 0 : index
    %176 = vector.load %arg2[%c0_74, %c40, %c0_75] : memref<3x80x96xf32, #tpu.memory_space<vmem>>, vector<1x32x96xf32>
    %177 = vector.shape_cast %176 : vector<1x32x96xf32> to vector<32x96xf32>
    %cst_76 = arith.constant dense<0.000000e+00> : vector<16x96xf32>
    %178 = tpu.matmul %175, %177, %cst_76 {dimension_numbers = #tpu.dot_dimension_numbers<[1], [0], [0], [1], [0, 0, 1, 1], [], []>} : vector<16x32xf32>, vector<32x96xf32>, vector<16x96xf32> -> vector<16x96xf32>
    %c0_77 = arith.constant 0 : index
    %c72 = arith.constant 72 : index
    %c0_78 = arith.constant 0 : index
    %179 = vector.load %arg2[%c0_77, %c72, %c0_78] : memref<3x80x96xf32, #tpu.memory_space<vmem>>, vector<1x1x96xf32>
    %180 = vector.shape_cast %179 : vector<1x1x96xf32> to vector<1x96xf32>
    %181 = vector.broadcast %180 : vector<1x96xf32> to vector<16x96xf32>
    %182 = arith.addf %178, %181 : vector<16x96xf32>
    %183 = vector.shape_cast %182 : vector<16x96xf32> to vector<2x8x96xf32>
    %c0_79 = arith.constant 0 : index
    %c360 = arith.constant 360 : index
    %c0_80 = arith.constant 0 : index
    %184 = vector.load %arg1[%c0_79, %c360, %c0_80] : memref<3x544x32xf32, #tpu.memory_space<vmem>>, vector<1x32x32xf32>
    %185 = vector.shape_cast %184 : vector<1x32x32xf32> to vector<32x32xf32>
    %c0_81 = arith.constant 0 : index
    %c392 = arith.constant 392 : index
    %c0_82 = arith.constant 0 : index
    %186 = vector.load %arg1[%c0_81, %c392, %c0_82] : memref<3x544x32xf32, #tpu.memory_space<vmem>>, vector<1x1x32xf32>
    %187 = vector.shape_cast %186 : vector<1x1x32xf32> to vector<1x32xf32>
    %188 = vector.extract_strided_slice %183 {offsets = [0, 0, 0], sizes = [2, 8, 16], strides = [1, 1, 1]} : vector<2x8x96xf32> to vector<2x8x16xf32>
    %189 = vector.extract_strided_slice %183 {offsets = [0, 0, 32], sizes = [2, 8, 16], strides = [1, 1, 1]} : vector<2x8x96xf32> to vector<2x8x16xf32>
    %190 = vector.extract_strided_slice %183 {offsets = [0, 0, 64], sizes = [2, 8, 16], strides = [1, 1, 1]} : vector<2x8x96xf32> to vector<2x8x16xf32>
    %cst_83 = arith.constant dense<0.000000e+00> : vector<2x8x8xf32>
    %191 = tpu.matmul %188, %189, %cst_83 {dimension_numbers = #tpu.dot_dimension_numbers<[2], [2], [1], [1], [0, 0, 0, 1, 1, 1], [0], [0]>} : vector<2x8x16xf32>, vector<2x8x16xf32>, vector<2x8x8xf32> -> vector<2x8x8xf32>
    %cst_84 = arith.constant 2.500000e-01 : f32
    %192 = vector.broadcast %cst_84 : f32 to vector<2x8x8xf32>
    %193 = arith.mulf %191, %192 : vector<2x8x8xf32>
    %194 = vector.shape_cast %5 : vector<1x8xf32> to vector<1x1x8xf32>
    %195 = vector.broadcast %194 : vector<1x1x8xf32> to vector<2x8x8xf32>
    %196 = arith.addf %193, %195 : vector<2x8x8xf32>
    %cst_85 = arith.constant dense<0xFF800000> : vector<2x8xf32>
    %197 = vector.multi_reduction <maximumf>, %196, %cst_85 [2] : vector<2x8x8xf32> to vector<2x8xf32>
    %198 = vector.shape_cast %197 : vector<2x8xf32> to vector<2x8x1xf32>
    %199 = vector.broadcast %198 : vector<2x8x1xf32> to vector<2x8x8xf32>
    %200 = arith.subf %196, %199 : vector<2x8x8xf32>
    %201 = math.exp %200 : vector<2x8x8xf32>
    %cst_86 = arith.constant dense<0.000000e+00> : vector<2x8xf32>
    %202 = vector.multi_reduction <add>, %201, %cst_86 [2] : vector<2x8x8xf32> to vector<2x8xf32>
    %203 = vector.shape_cast %202 : vector<2x8xf32> to vector<2x8x1xf32>
    %204 = tpu.reciprocal %203 {approx = true} : vector<2x8x1xf32> -> vector<2x8x1xf32>
    %205 = vector.broadcast %204 : vector<2x8x1xf32> to vector<2x8x8xf32>
    %206 = arith.mulf %201, %205 : vector<2x8x8xf32>
    %cst_87 = arith.constant dense<0.000000e+00> : vector<2x8x16xf32>
    %207 = tpu.matmul %206, %190, %cst_87 {dimension_numbers = #tpu.dot_dimension_numbers<[2], [1], [1], [2], [0, 0, 0, 1, 1, 2], [0], [0]>} : vector<2x8x8xf32>, vector<2x8x16xf32>, vector<2x8x16xf32> -> vector<2x8x16xf32>
    %208 = vector.shape_cast %207 : vector<2x8x16xf32> to vector<16x16xf32>
    %209 = vector.extract_strided_slice %185 {offsets = [0, 0], sizes = [16, 32], strides = [1, 1]} : vector<32x32xf32> to vector<16x32xf32>
    %cst_88 = arith.constant dense<0.000000e+00> : vector<16x32xf32>
    %210 = tpu.matmul %208, %209, %cst_88 {dimension_numbers = #tpu.dot_dimension_numbers<[1], [0], [0], [1], [0, 0, 1, 1], [], []>} : vector<16x16xf32>, vector<16x32xf32>, vector<16x32xf32> -> vector<16x32xf32>
    %211 = vector.broadcast %187 : vector<1x32xf32> to vector<16x32xf32>
    %212 = arith.addf %211, %210 : vector<16x32xf32>
    %213 = vector.extract_strided_slice %183 {offsets = [0, 0, 16], sizes = [2, 8, 16], strides = [1, 1, 1]} : vector<2x8x96xf32> to vector<2x8x16xf32>
    %214 = vector.extract_strided_slice %183 {offsets = [0, 0, 48], sizes = [2, 8, 16], strides = [1, 1, 1]} : vector<2x8x96xf32> to vector<2x8x16xf32>
    %215 = vector.extract_strided_slice %183 {offsets = [0, 0, 80], sizes = [2, 8, 16], strides = [1, 1, 1]} : vector<2x8x96xf32> to vector<2x8x16xf32>
    %cst_89 = arith.constant dense<0.000000e+00> : vector<2x8x8xf32>
    %216 = tpu.matmul %213, %214, %cst_89 {dimension_numbers = #tpu.dot_dimension_numbers<[2], [2], [1], [1], [0, 0, 0, 1, 1, 1], [0], [0]>} : vector<2x8x16xf32>, vector<2x8x16xf32>, vector<2x8x8xf32> -> vector<2x8x8xf32>
    %cst_90 = arith.constant 2.500000e-01 : f32
    %217 = vector.broadcast %cst_90 : f32 to vector<2x8x8xf32>
    %218 = arith.mulf %216, %217 : vector<2x8x8xf32>
    %219 = vector.shape_cast %5 : vector<1x8xf32> to vector<1x1x8xf32>
    %220 = vector.broadcast %219 : vector<1x1x8xf32> to vector<2x8x8xf32>
    %221 = arith.addf %218, %220 : vector<2x8x8xf32>
    %cst_91 = arith.constant dense<0xFF800000> : vector<2x8xf32>
    %222 = vector.multi_reduction <maximumf>, %221, %cst_91 [2] : vector<2x8x8xf32> to vector<2x8xf32>
    %223 = vector.shape_cast %222 : vector<2x8xf32> to vector<2x8x1xf32>
    %224 = vector.broadcast %223 : vector<2x8x1xf32> to vector<2x8x8xf32>
    %225 = arith.subf %221, %224 : vector<2x8x8xf32>
    %226 = math.exp %225 : vector<2x8x8xf32>
    %cst_92 = arith.constant dense<0.000000e+00> : vector<2x8xf32>
    %227 = vector.multi_reduction <add>, %226, %cst_92 [2] : vector<2x8x8xf32> to vector<2x8xf32>
    %228 = vector.shape_cast %227 : vector<2x8xf32> to vector<2x8x1xf32>
    %229 = tpu.reciprocal %228 {approx = true} : vector<2x8x1xf32> -> vector<2x8x1xf32>
    %230 = vector.broadcast %229 : vector<2x8x1xf32> to vector<2x8x8xf32>
    %231 = arith.mulf %226, %230 : vector<2x8x8xf32>
    %cst_93 = arith.constant dense<0.000000e+00> : vector<2x8x16xf32>
    %232 = tpu.matmul %231, %215, %cst_93 {dimension_numbers = #tpu.dot_dimension_numbers<[2], [1], [1], [2], [0, 0, 0, 1, 1, 2], [0], [0]>} : vector<2x8x8xf32>, vector<2x8x16xf32>, vector<2x8x16xf32> -> vector<2x8x16xf32>
    %233 = vector.shape_cast %232 : vector<2x8x16xf32> to vector<16x16xf32>
    %234 = vector.extract_strided_slice %185 {offsets = [16, 0], sizes = [16, 32], strides = [1, 1]} : vector<32x32xf32> to vector<16x32xf32>
    %cst_94 = arith.constant dense<0.000000e+00> : vector<16x32xf32>
    %235 = tpu.matmul %233, %234, %cst_94 {dimension_numbers = #tpu.dot_dimension_numbers<[1], [0], [0], [1], [0, 0, 1, 1], [], []>} : vector<16x16xf32>, vector<16x32xf32>, vector<16x32xf32> -> vector<16x32xf32>
    %236 = arith.addf %212, %235 : vector<16x32xf32>
    %237 = arith.addf %151, %236 : vector<16x32xf32>
    %c0_95 = arith.constant 0 : index
    %c400 = arith.constant 400 : index
    %c0_96 = arith.constant 0 : index
    %238 = vector.load %arg1[%c0_95, %c400, %c0_96] : memref<3x544x32xf32, #tpu.memory_space<vmem>>, vector<1x1x32xf32>
    %239 = vector.shape_cast %238 : vector<1x1x32xf32> to vector<1x32xf32>
    %c0_97 = arith.constant 0 : index
    %c408 = arith.constant 408 : index
    %c0_98 = arith.constant 0 : index
    %240 = vector.load %arg1[%c0_97, %c408, %c0_98] : memref<3x544x32xf32, #tpu.memory_space<vmem>>, vector<1x1x32xf32>
    %241 = vector.shape_cast %240 : vector<1x1x32xf32> to vector<1x32xf32>
    %cst_99 = arith.constant dense<0.000000e+00> : vector<16xf32>
    %242 = vector.multi_reduction <add>, %237, %cst_99 [1] : vector<16x32xf32> to vector<16xf32>
    %243 = vector.shape_cast %242 : vector<16xf32> to vector<16x1xf32>
    %cst_100 = arith.constant 3.200000e+01 : f32
    %244 = vector.broadcast %cst_100 : f32 to vector<16x1xf32>
    %245 = arith.divf %243, %244 : vector<16x1xf32>
    %246 = vector.broadcast %245 : vector<16x1xf32> to vector<16x32xf32>
    %247 = arith.subf %237, %246 : vector<16x32xf32>
    %248 = arith.mulf %247, %247 : vector<16x32xf32>
    %cst_101 = arith.constant dense<0.000000e+00> : vector<16xf32>
    %249 = vector.multi_reduction <add>, %248, %cst_101 [1] : vector<16x32xf32> to vector<16xf32>
    %250 = vector.shape_cast %249 : vector<16xf32> to vector<16x1xf32>
    %cst_102 = arith.constant 3.200000e+01 : f32
    %251 = vector.broadcast %cst_102 : f32 to vector<16x1xf32>
    %252 = arith.divf %250, %251 : vector<16x1xf32>
    %cst_103 = arith.constant 9.99999996E-13 : f32
    %253 = vector.broadcast %cst_103 : f32 to vector<16x1xf32>
    %254 = arith.addf %252, %253 : vector<16x1xf32>
    %255 = math.rsqrt %254 : vector<16x1xf32>
    %256 = vector.broadcast %255 : vector<16x1xf32> to vector<16x32xf32>
    %257 = arith.mulf %247, %256 : vector<16x32xf32>
    %258 = vector.broadcast %239 : vector<1x32xf32> to vector<16x32xf32>
    %259 = arith.mulf %257, %258 : vector<16x32xf32>
    %260 = vector.broadcast %241 : vector<1x32xf32> to vector<16x32xf32>
    %261 = arith.addf %259, %260 : vector<16x32xf32>
    %c0_104 = arith.constant 0 : index
    %c40_105 = arith.constant 40 : index
    %c0_106 = arith.constant 0 : index
    %262 = vector.load %arg3[%c0_104, %c40_105, %c0_106] : memref<3x80x64xf32, #tpu.memory_space<vmem>>, vector<1x32x64xf32>
    %263 = vector.shape_cast %262 : vector<1x32x64xf32> to vector<32x64xf32>
    %cst_107 = arith.constant dense<0.000000e+00> : vector<16x64xf32>
    %264 = tpu.matmul %261, %263, %cst_107 {dimension_numbers = #tpu.dot_dimension_numbers<[1], [0], [0], [1], [0, 0, 1, 1], [], []>} : vector<16x32xf32>, vector<32x64xf32>, vector<16x64xf32> -> vector<16x64xf32>
    %c0_108 = arith.constant 0 : index
    %c72_109 = arith.constant 72 : index
    %c0_110 = arith.constant 0 : index
    %265 = vector.load %arg3[%c0_108, %c72_109, %c0_110] : memref<3x80x64xf32, #tpu.memory_space<vmem>>, vector<1x1x64xf32>
    %266 = vector.shape_cast %265 : vector<1x1x64xf32> to vector<1x64xf32>
    %267 = vector.broadcast %266 : vector<1x64xf32> to vector<16x64xf32>
    %268 = arith.addf %264, %267 : vector<16x64xf32>
    %cst_111 = arith.constant 5.000000e-01 : f32
    %269 = vector.broadcast %cst_111 : f32 to vector<16x64xf32>
    %270 = arith.mulf %269, %268 : vector<16x64xf32>
    %cst_112 = arith.constant 0.707106769 : f32
    %271 = vector.broadcast %cst_112 : f32 to vector<16x64xf32>
    %272 = arith.mulf %268, %271 : vector<16x64xf32>
    %273 = math.erf %272 : vector<16x64xf32>
    %cst_113 = arith.constant 1.000000e+00 : f32
    %274 = vector.broadcast %cst_113 : f32 to vector<16x64xf32>
    %275 = arith.addf %274, %273 : vector<16x64xf32>
    %276 = arith.mulf %270, %275 : vector<16x64xf32>
    %c0_114 = arith.constant 0 : index
    %c416 = arith.constant 416 : index
    %c0_115 = arith.constant 0 : index
    %277 = vector.load %arg1[%c0_114, %c416, %c0_115] : memref<3x544x32xf32, #tpu.memory_space<vmem>>, vector<1x64x32xf32>
    %278 = vector.shape_cast %277 : vector<1x64x32xf32> to vector<64x32xf32>
    %cst_116 = arith.constant dense<0.000000e+00> : vector<16x32xf32>
    %279 = tpu.matmul %276, %278, %cst_116 {dimension_numbers = #tpu.dot_dimension_numbers<[1], [0], [0], [1], [0, 0, 1, 1], [], []>} : vector<16x64xf32>, vector<64x32xf32>, vector<16x32xf32> -> vector<16x32xf32>
    %280 = arith.addf %237, %279 : vector<16x32xf32>
    %c0_117 = arith.constant 0 : index
    %c480 = arith.constant 480 : index
    %c0_118 = arith.constant 0 : index
    %281 = vector.load %arg1[%c0_117, %c480, %c0_118] : memref<3x544x32xf32, #tpu.memory_space<vmem>>, vector<1x1x32xf32>
    %282 = vector.shape_cast %281 : vector<1x1x32xf32> to vector<1x32xf32>
    %283 = vector.broadcast %282 : vector<1x32xf32> to vector<16x32xf32>
    %284 = arith.addf %280, %283 : vector<16x32xf32>
    %c0_119 = arith.constant 0 : index
    %c488 = arith.constant 488 : index
    %c0_120 = arith.constant 0 : index
    %285 = vector.load %arg1[%c0_119, %c488, %c0_120] : memref<3x544x32xf32, #tpu.memory_space<vmem>>, vector<1x1x32xf32>
    %286 = vector.shape_cast %285 : vector<1x1x32xf32> to vector<1x32xf32>
    %c0_121 = arith.constant 0 : index
    %c496 = arith.constant 496 : index
    %c0_122 = arith.constant 0 : index
    %287 = vector.load %arg1[%c0_121, %c496, %c0_122] : memref<3x544x32xf32, #tpu.memory_space<vmem>>, vector<1x1x32xf32>
    %288 = vector.shape_cast %287 : vector<1x1x32xf32> to vector<1x32xf32>
    %cst_123 = arith.constant dense<0.000000e+00> : vector<16xf32>
    %289 = vector.multi_reduction <add>, %284, %cst_123 [1] : vector<16x32xf32> to vector<16xf32>
    %290 = vector.shape_cast %289 : vector<16xf32> to vector<16x1xf32>
    %cst_124 = arith.constant 3.200000e+01 : f32
    %291 = vector.broadcast %cst_124 : f32 to vector<16x1xf32>
    %292 = arith.divf %290, %291 : vector<16x1xf32>
    %293 = vector.broadcast %292 : vector<16x1xf32> to vector<16x32xf32>
    %294 = arith.subf %284, %293 : vector<16x32xf32>
    %295 = arith.mulf %294, %294 : vector<16x32xf32>
    %cst_125 = arith.constant dense<0.000000e+00> : vector<16xf32>
    %296 = vector.multi_reduction <add>, %295, %cst_125 [1] : vector<16x32xf32> to vector<16xf32>
    %297 = vector.shape_cast %296 : vector<16xf32> to vector<16x1xf32>
    %cst_126 = arith.constant 3.200000e+01 : f32
    %298 = vector.broadcast %cst_126 : f32 to vector<16x1xf32>
    %299 = arith.divf %297, %298 : vector<16x1xf32>
    %cst_127 = arith.constant 9.99999996E-13 : f32
    %300 = vector.broadcast %cst_127 : f32 to vector<16x1xf32>
    %301 = arith.addf %299, %300 : vector<16x1xf32>
    %302 = math.rsqrt %301 : vector<16x1xf32>
    %303 = vector.broadcast %302 : vector<16x1xf32> to vector<16x32xf32>
    %304 = arith.mulf %294, %303 : vector<16x32xf32>
    %305 = vector.broadcast %286 : vector<1x32xf32> to vector<16x32xf32>
    %306 = arith.mulf %304, %305 : vector<16x32xf32>
    %307 = vector.broadcast %288 : vector<1x32xf32> to vector<16x32xf32>
    %308 = arith.addf %306, %307 : vector<16x32xf32>
    %c0_128 = arith.constant 0 : index
    %c504 = arith.constant 504 : index
    %c0_129 = arith.constant 0 : index
    %309 = vector.load %arg1[%c0_128, %c504, %c0_129] : memref<3x544x32xf32, #tpu.memory_space<vmem>>, vector<1x32x32xf32>
    %310 = vector.shape_cast %309 : vector<1x32x32xf32> to vector<32x32xf32>
    %cst_130 = arith.constant dense<0.000000e+00> : vector<16x32xf32>
    %311 = tpu.matmul %308, %310, %cst_130 {dimension_numbers = #tpu.dot_dimension_numbers<[1], [0], [0], [1], [0, 0, 1, 1], [], []>} : vector<16x32xf32>, vector<32x32xf32>, vector<16x32xf32> -> vector<16x32xf32>
    %c0_131 = arith.constant 0 : index
    %c536 = arith.constant 536 : index
    %c0_132 = arith.constant 0 : index
    %312 = vector.load %arg1[%c0_131, %c536, %c0_132] : memref<3x544x32xf32, #tpu.memory_space<vmem>>, vector<1x1x32xf32>
    %313 = vector.shape_cast %312 : vector<1x1x32xf32> to vector<1x32xf32>
    %314 = vector.broadcast %313 : vector<1x32xf32> to vector<16x32xf32>
    %315 = arith.addf %311, %314 : vector<16x32xf32>
    %316 = math.tanh %315 : vector<16x32xf32>
    %c0_133 = arith.constant 0 : index
    %c0_134 = arith.constant 0 : index
    %317 = vector.load %arg4[%c0_133, %c0_134] : memref<96x6xf32, #tpu.memory_space<vmem>>, vector<32x6xf32>
    %cst_135 = arith.constant dense<0.000000e+00> : vector<16x6xf32>
    %318 = tpu.matmul %316, %317, %cst_135 {dimension_numbers = #tpu.dot_dimension_numbers<[1], [0], [0], [1], [0, 0, 1, 1], [], []>} : vector<16x32xf32>, vector<32x6xf32>, vector<16x6xf32> -> vector<16x6xf32>
    %319 = arith.addf %6, %318 : vector<16x6xf32>
    %c1 = arith.constant 1 : index
    %c0_136 = arith.constant 0 : index
    %c0_137 = arith.constant 0 : index
    %320 = vector.load %arg0[%c1, %c0_136, %c0_137] : memref<3x16x192xf32, #tpu.memory_space<vmem>>, vector<1x16x192xf32>
    %321 = vector.shape_cast %320 : vector<1x16x192xf32> to vector<16x192xf32>
    %c1_138 = arith.constant 1 : index
    %c0_139 = arith.constant 0 : index
    %c0_140 = arith.constant 0 : index
    %322 = vector.load %arg1[%c1_138, %c0_139, %c0_140] : memref<3x544x32xf32, #tpu.memory_space<vmem>>, vector<1x192x32xf32>
    %323 = vector.shape_cast %322 : vector<1x192x32xf32> to vector<192x32xf32>
    %cst_141 = arith.constant dense<0.000000e+00> : vector<16x32xf32>
    %324 = tpu.matmul %321, %323, %cst_141 {dimension_numbers = #tpu.dot_dimension_numbers<[1], [0], [0], [1], [0, 0, 1, 1], [], []>} : vector<16x192xf32>, vector<192x32xf32>, vector<16x32xf32> -> vector<16x32xf32>
    %325 = vector.shape_cast %324 : vector<16x32xf32> to vector<2x8x32xf32>
    %c1_142 = arith.constant 1 : index
    %c192_143 = arith.constant 192 : index
    %c0_144 = arith.constant 0 : index
    %326 = vector.load %arg1[%c1_142, %c192_143, %c0_144] : memref<3x544x32xf32, #tpu.memory_space<vmem>>, vector<1x8x32xf32>
    %327 = vector.shape_cast %326 : vector<1x8x32xf32> to vector<8x32xf32>
    %328 = vector.shape_cast %327 : vector<8x32xf32> to vector<1x8x32xf32>
    %329 = vector.broadcast %328 : vector<1x8x32xf32> to vector<2x8x32xf32>
    %330 = arith.addf %325, %329 : vector<2x8x32xf32>
    %331 = vector.shape_cast %330 : vector<2x8x32xf32> to vector<16x32xf32>
    %c1_145 = arith.constant 1 : index
    %c200_146 = arith.constant 200 : index
    %c0_147 = arith.constant 0 : index
    %332 = vector.load %arg1[%c1_145, %c200_146, %c0_147] : memref<3x544x32xf32, #tpu.memory_space<vmem>>, vector<1x1x32xf32>
    %333 = vector.shape_cast %332 : vector<1x1x32xf32> to vector<1x32xf32>
    %c1_148 = arith.constant 1 : index
    %c208_149 = arith.constant 208 : index
    %c0_150 = arith.constant 0 : index
    %334 = vector.load %arg1[%c1_148, %c208_149, %c0_150] : memref<3x544x32xf32, #tpu.memory_space<vmem>>, vector<1x1x32xf32>
    %335 = vector.shape_cast %334 : vector<1x1x32xf32> to vector<1x32xf32>
    %cst_151 = arith.constant dense<0.000000e+00> : vector<16xf32>
    %336 = vector.multi_reduction <add>, %331, %cst_151 [1] : vector<16x32xf32> to vector<16xf32>
    %337 = vector.shape_cast %336 : vector<16xf32> to vector<16x1xf32>
    %cst_152 = arith.constant 3.200000e+01 : f32
    %338 = vector.broadcast %cst_152 : f32 to vector<16x1xf32>
    %339 = arith.divf %337, %338 : vector<16x1xf32>
    %340 = vector.broadcast %339 : vector<16x1xf32> to vector<16x32xf32>
    %341 = arith.subf %331, %340 : vector<16x32xf32>
    %342 = arith.mulf %341, %341 : vector<16x32xf32>
    %cst_153 = arith.constant dense<0.000000e+00> : vector<16xf32>
    %343 = vector.multi_reduction <add>, %342, %cst_153 [1] : vector<16x32xf32> to vector<16xf32>
    %344 = vector.shape_cast %343 : vector<16xf32> to vector<16x1xf32>
    %cst_154 = arith.constant 3.200000e+01 : f32
    %345 = vector.broadcast %cst_154 : f32 to vector<16x1xf32>
    %346 = arith.divf %344, %345 : vector<16x1xf32>
    %cst_155 = arith.constant 9.99999996E-13 : f32
    %347 = vector.broadcast %cst_155 : f32 to vector<16x1xf32>
    %348 = arith.addf %346, %347 : vector<16x1xf32>
    %349 = math.rsqrt %348 : vector<16x1xf32>
    %350 = vector.broadcast %349 : vector<16x1xf32> to vector<16x32xf32>
    %351 = arith.mulf %341, %350 : vector<16x32xf32>
    %352 = vector.broadcast %333 : vector<1x32xf32> to vector<16x32xf32>
    %353 = arith.mulf %351, %352 : vector<16x32xf32>
    %354 = vector.broadcast %335 : vector<1x32xf32> to vector<16x32xf32>
    %355 = arith.addf %353, %354 : vector<16x32xf32>
    %c1_156 = arith.constant 1 : index
    %c0_157 = arith.constant 0 : index
    %c0_158 = arith.constant 0 : index
    %356 = vector.load %arg2[%c1_156, %c0_157, %c0_158] : memref<3x80x96xf32, #tpu.memory_space<vmem>>, vector<1x32x96xf32>
    %357 = vector.shape_cast %356 : vector<1x32x96xf32> to vector<32x96xf32>
    %cst_159 = arith.constant dense<0.000000e+00> : vector<16x96xf32>
    %358 = tpu.matmul %355, %357, %cst_159 {dimension_numbers = #tpu.dot_dimension_numbers<[1], [0], [0], [1], [0, 0, 1, 1], [], []>} : vector<16x32xf32>, vector<32x96xf32>, vector<16x96xf32> -> vector<16x96xf32>
    %c1_160 = arith.constant 1 : index
    %c32_161 = arith.constant 32 : index
    %c0_162 = arith.constant 0 : index
    %359 = vector.load %arg2[%c1_160, %c32_161, %c0_162] : memref<3x80x96xf32, #tpu.memory_space<vmem>>, vector<1x1x96xf32>
    %360 = vector.shape_cast %359 : vector<1x1x96xf32> to vector<1x96xf32>
    %361 = vector.broadcast %360 : vector<1x96xf32> to vector<16x96xf32>
    %362 = arith.addf %358, %361 : vector<16x96xf32>
    %363 = vector.shape_cast %362 : vector<16x96xf32> to vector<2x8x96xf32>
    %c1_163 = arith.constant 1 : index
    %c216_164 = arith.constant 216 : index
    %c0_165 = arith.constant 0 : index
    %364 = vector.load %arg1[%c1_163, %c216_164, %c0_165] : memref<3x544x32xf32, #tpu.memory_space<vmem>>, vector<1x32x32xf32>
    %365 = vector.shape_cast %364 : vector<1x32x32xf32> to vector<32x32xf32>
    %c1_166 = arith.constant 1 : index
    %c248_167 = arith.constant 248 : index
    %c0_168 = arith.constant 0 : index
    %366 = vector.load %arg1[%c1_166, %c248_167, %c0_168] : memref<3x544x32xf32, #tpu.memory_space<vmem>>, vector<1x1x32xf32>
    %367 = vector.shape_cast %366 : vector<1x1x32xf32> to vector<1x32xf32>
    %368 = vector.extract_strided_slice %363 {offsets = [0, 0, 0], sizes = [2, 8, 16], strides = [1, 1, 1]} : vector<2x8x96xf32> to vector<2x8x16xf32>
    %369 = vector.extract_strided_slice %363 {offsets = [0, 0, 32], sizes = [2, 8, 16], strides = [1, 1, 1]} : vector<2x8x96xf32> to vector<2x8x16xf32>
    %370 = vector.extract_strided_slice %363 {offsets = [0, 0, 64], sizes = [2, 8, 16], strides = [1, 1, 1]} : vector<2x8x96xf32> to vector<2x8x16xf32>
    %cst_169 = arith.constant dense<0.000000e+00> : vector<2x8x8xf32>
    %371 = tpu.matmul %368, %369, %cst_169 {dimension_numbers = #tpu.dot_dimension_numbers<[2], [2], [1], [1], [0, 0, 0, 1, 1, 1], [0], [0]>} : vector<2x8x16xf32>, vector<2x8x16xf32>, vector<2x8x8xf32> -> vector<2x8x8xf32>
    %cst_170 = arith.constant 2.500000e-01 : f32
    %372 = vector.broadcast %cst_170 : f32 to vector<2x8x8xf32>
    %373 = arith.mulf %371, %372 : vector<2x8x8xf32>
    %374 = vector.shape_cast %5 : vector<1x8xf32> to vector<1x1x8xf32>
    %375 = vector.broadcast %374 : vector<1x1x8xf32> to vector<2x8x8xf32>
    %376 = arith.addf %373, %375 : vector<2x8x8xf32>
    %cst_171 = arith.constant dense<0xFF800000> : vector<2x8xf32>
    %377 = vector.multi_reduction <maximumf>, %376, %cst_171 [2] : vector<2x8x8xf32> to vector<2x8xf32>
    %378 = vector.shape_cast %377 : vector<2x8xf32> to vector<2x8x1xf32>
    %379 = vector.broadcast %378 : vector<2x8x1xf32> to vector<2x8x8xf32>
    %380 = arith.subf %376, %379 : vector<2x8x8xf32>
    %381 = math.exp %380 : vector<2x8x8xf32>
    %cst_172 = arith.constant dense<0.000000e+00> : vector<2x8xf32>
    %382 = vector.multi_reduction <add>, %381, %cst_172 [2] : vector<2x8x8xf32> to vector<2x8xf32>
    %383 = vector.shape_cast %382 : vector<2x8xf32> to vector<2x8x1xf32>
    %384 = tpu.reciprocal %383 {approx = true} : vector<2x8x1xf32> -> vector<2x8x1xf32>
    %385 = vector.broadcast %384 : vector<2x8x1xf32> to vector<2x8x8xf32>
    %386 = arith.mulf %381, %385 : vector<2x8x8xf32>
    %cst_173 = arith.constant dense<0.000000e+00> : vector<2x8x16xf32>
    %387 = tpu.matmul %386, %370, %cst_173 {dimension_numbers = #tpu.dot_dimension_numbers<[2], [1], [1], [2], [0, 0, 0, 1, 1, 2], [0], [0]>} : vector<2x8x8xf32>, vector<2x8x16xf32>, vector<2x8x16xf32> -> vector<2x8x16xf32>
    %388 = vector.shape_cast %387 : vector<2x8x16xf32> to vector<16x16xf32>
    %389 = vector.extract_strided_slice %365 {offsets = [0, 0], sizes = [16, 32], strides = [1, 1]} : vector<32x32xf32> to vector<16x32xf32>
    %cst_174 = arith.constant dense<0.000000e+00> : vector<16x32xf32>
    %390 = tpu.matmul %388, %389, %cst_174 {dimension_numbers = #tpu.dot_dimension_numbers<[1], [0], [0], [1], [0, 0, 1, 1], [], []>} : vector<16x16xf32>, vector<16x32xf32>, vector<16x32xf32> -> vector<16x32xf32>
    %391 = vector.broadcast %367 : vector<1x32xf32> to vector<16x32xf32>
    %392 = arith.addf %391, %390 : vector<16x32xf32>
    %393 = vector.extract_strided_slice %363 {offsets = [0, 0, 16], sizes = [2, 8, 16], strides = [1, 1, 1]} : vector<2x8x96xf32> to vector<2x8x16xf32>
    %394 = vector.extract_strided_slice %363 {offsets = [0, 0, 48], sizes = [2, 8, 16], strides = [1, 1, 1]} : vector<2x8x96xf32> to vector<2x8x16xf32>
    %395 = vector.extract_strided_slice %363 {offsets = [0, 0, 80], sizes = [2, 8, 16], strides = [1, 1, 1]} : vector<2x8x96xf32> to vector<2x8x16xf32>
    %cst_175 = arith.constant dense<0.000000e+00> : vector<2x8x8xf32>
    %396 = tpu.matmul %393, %394, %cst_175 {dimension_numbers = #tpu.dot_dimension_numbers<[2], [2], [1], [1], [0, 0, 0, 1, 1, 1], [0], [0]>} : vector<2x8x16xf32>, vector<2x8x16xf32>, vector<2x8x8xf32> -> vector<2x8x8xf32>
    %cst_176 = arith.constant 2.500000e-01 : f32
    %397 = vector.broadcast %cst_176 : f32 to vector<2x8x8xf32>
    %398 = arith.mulf %396, %397 : vector<2x8x8xf32>
    %399 = vector.shape_cast %5 : vector<1x8xf32> to vector<1x1x8xf32>
    %400 = vector.broadcast %399 : vector<1x1x8xf32> to vector<2x8x8xf32>
    %401 = arith.addf %398, %400 : vector<2x8x8xf32>
    %cst_177 = arith.constant dense<0xFF800000> : vector<2x8xf32>
    %402 = vector.multi_reduction <maximumf>, %401, %cst_177 [2] : vector<2x8x8xf32> to vector<2x8xf32>
    %403 = vector.shape_cast %402 : vector<2x8xf32> to vector<2x8x1xf32>
    %404 = vector.broadcast %403 : vector<2x8x1xf32> to vector<2x8x8xf32>
    %405 = arith.subf %401, %404 : vector<2x8x8xf32>
    %406 = math.exp %405 : vector<2x8x8xf32>
    %cst_178 = arith.constant dense<0.000000e+00> : vector<2x8xf32>
    %407 = vector.multi_reduction <add>, %406, %cst_178 [2] : vector<2x8x8xf32> to vector<2x8xf32>
    %408 = vector.shape_cast %407 : vector<2x8xf32> to vector<2x8x1xf32>
    %409 = tpu.reciprocal %408 {approx = true} : vector<2x8x1xf32> -> vector<2x8x1xf32>
    %410 = vector.broadcast %409 : vector<2x8x1xf32> to vector<2x8x8xf32>
    %411 = arith.mulf %406, %410 : vector<2x8x8xf32>
    %cst_179 = arith.constant dense<0.000000e+00> : vector<2x8x16xf32>
    %412 = tpu.matmul %411, %395, %cst_179 {dimension_numbers = #tpu.dot_dimension_numbers<[2], [1], [1], [2], [0, 0, 0, 1, 1, 2], [0], [0]>} : vector<2x8x8xf32>, vector<2x8x16xf32>, vector<2x8x16xf32> -> vector<2x8x16xf32>
    %413 = vector.shape_cast %412 : vector<2x8x16xf32> to vector<16x16xf32>
    %414 = vector.extract_strided_slice %365 {offsets = [16, 0], sizes = [16, 32], strides = [1, 1]} : vector<32x32xf32> to vector<16x32xf32>
    %cst_180 = arith.constant dense<0.000000e+00> : vector<16x32xf32>
    %415 = tpu.matmul %413, %414, %cst_180 {dimension_numbers = #tpu.dot_dimension_numbers<[1], [0], [0], [1], [0, 0, 1, 1], [], []>} : vector<16x16xf32>, vector<16x32xf32>, vector<16x32xf32> -> vector<16x32xf32>
    %416 = arith.addf %392, %415 : vector<16x32xf32>
    %417 = arith.addf %331, %416 : vector<16x32xf32>
    %c1_181 = arith.constant 1 : index
    %c256_182 = arith.constant 256 : index
    %c0_183 = arith.constant 0 : index
    %418 = vector.load %arg1[%c1_181, %c256_182, %c0_183] : memref<3x544x32xf32, #tpu.memory_space<vmem>>, vector<1x1x32xf32>
    %419 = vector.shape_cast %418 : vector<1x1x32xf32> to vector<1x32xf32>
    %c1_184 = arith.constant 1 : index
    %c264_185 = arith.constant 264 : index
    %c0_186 = arith.constant 0 : index
    %420 = vector.load %arg1[%c1_184, %c264_185, %c0_186] : memref<3x544x32xf32, #tpu.memory_space<vmem>>, vector<1x1x32xf32>
    %421 = vector.shape_cast %420 : vector<1x1x32xf32> to vector<1x32xf32>
    %cst_187 = arith.constant dense<0.000000e+00> : vector<16xf32>
    %422 = vector.multi_reduction <add>, %417, %cst_187 [1] : vector<16x32xf32> to vector<16xf32>
    %423 = vector.shape_cast %422 : vector<16xf32> to vector<16x1xf32>
    %cst_188 = arith.constant 3.200000e+01 : f32
    %424 = vector.broadcast %cst_188 : f32 to vector<16x1xf32>
    %425 = arith.divf %423, %424 : vector<16x1xf32>
    %426 = vector.broadcast %425 : vector<16x1xf32> to vector<16x32xf32>
    %427 = arith.subf %417, %426 : vector<16x32xf32>
    %428 = arith.mulf %427, %427 : vector<16x32xf32>
    %cst_189 = arith.constant dense<0.000000e+00> : vector<16xf32>
    %429 = vector.multi_reduction <add>, %428, %cst_189 [1] : vector<16x32xf32> to vector<16xf32>
    %430 = vector.shape_cast %429 : vector<16xf32> to vector<16x1xf32>
    %cst_190 = arith.constant 3.200000e+01 : f32
    %431 = vector.broadcast %cst_190 : f32 to vector<16x1xf32>
    %432 = arith.divf %430, %431 : vector<16x1xf32>
    %cst_191 = arith.constant 9.99999996E-13 : f32
    %433 = vector.broadcast %cst_191 : f32 to vector<16x1xf32>
    %434 = arith.addf %432, %433 : vector<16x1xf32>
    %435 = math.rsqrt %434 : vector<16x1xf32>
    %436 = vector.broadcast %435 : vector<16x1xf32> to vector<16x32xf32>
    %437 = arith.mulf %427, %436 : vector<16x32xf32>
    %438 = vector.broadcast %419 : vector<1x32xf32> to vector<16x32xf32>
    %439 = arith.mulf %437, %438 : vector<16x32xf32>
    %440 = vector.broadcast %421 : vector<1x32xf32> to vector<16x32xf32>
    %441 = arith.addf %439, %440 : vector<16x32xf32>
    %c1_192 = arith.constant 1 : index
    %c0_193 = arith.constant 0 : index
    %c0_194 = arith.constant 0 : index
    %442 = vector.load %arg3[%c1_192, %c0_193, %c0_194] : memref<3x80x64xf32, #tpu.memory_space<vmem>>, vector<1x32x64xf32>
    %443 = vector.shape_cast %442 : vector<1x32x64xf32> to vector<32x64xf32>
    %cst_195 = arith.constant dense<0.000000e+00> : vector<16x64xf32>
    %444 = tpu.matmul %441, %443, %cst_195 {dimension_numbers = #tpu.dot_dimension_numbers<[1], [0], [0], [1], [0, 0, 1, 1], [], []>} : vector<16x32xf32>, vector<32x64xf32>, vector<16x64xf32> -> vector<16x64xf32>
    %c1_196 = arith.constant 1 : index
    %c32_197 = arith.constant 32 : index
    %c0_198 = arith.constant 0 : index
    %445 = vector.load %arg3[%c1_196, %c32_197, %c0_198] : memref<3x80x64xf32, #tpu.memory_space<vmem>>, vector<1x1x64xf32>
    %446 = vector.shape_cast %445 : vector<1x1x64xf32> to vector<1x64xf32>
    %447 = vector.broadcast %446 : vector<1x64xf32> to vector<16x64xf32>
    %448 = arith.addf %444, %447 : vector<16x64xf32>
    %cst_199 = arith.constant 5.000000e-01 : f32
    %449 = vector.broadcast %cst_199 : f32 to vector<16x64xf32>
    %450 = arith.mulf %449, %448 : vector<16x64xf32>
    %cst_200 = arith.constant 0.707106769 : f32
    %451 = vector.broadcast %cst_200 : f32 to vector<16x64xf32>
    %452 = arith.mulf %448, %451 : vector<16x64xf32>
    %453 = math.erf %452 : vector<16x64xf32>
    %cst_201 = arith.constant 1.000000e+00 : f32
    %454 = vector.broadcast %cst_201 : f32 to vector<16x64xf32>
    %455 = arith.addf %454, %453 : vector<16x64xf32>
    %456 = arith.mulf %450, %455 : vector<16x64xf32>
    %c1_202 = arith.constant 1 : index
    %c272_203 = arith.constant 272 : index
    %c0_204 = arith.constant 0 : index
    %457 = vector.load %arg1[%c1_202, %c272_203, %c0_204] : memref<3x544x32xf32, #tpu.memory_space<vmem>>, vector<1x64x32xf32>
    %458 = vector.shape_cast %457 : vector<1x64x32xf32> to vector<64x32xf32>
    %cst_205 = arith.constant dense<0.000000e+00> : vector<16x32xf32>
    %459 = tpu.matmul %456, %458, %cst_205 {dimension_numbers = #tpu.dot_dimension_numbers<[1], [0], [0], [1], [0, 0, 1, 1], [], []>} : vector<16x64xf32>, vector<64x32xf32>, vector<16x32xf32> -> vector<16x32xf32>
    %460 = arith.addf %417, %459 : vector<16x32xf32>
    %c1_206 = arith.constant 1 : index
    %c336_207 = arith.constant 336 : index
    %c0_208 = arith.constant 0 : index
    %461 = vector.load %arg1[%c1_206, %c336_207, %c0_208] : memref<3x544x32xf32, #tpu.memory_space<vmem>>, vector<1x1x32xf32>
    %462 = vector.shape_cast %461 : vector<1x1x32xf32> to vector<1x32xf32>
    %463 = vector.broadcast %462 : vector<1x32xf32> to vector<16x32xf32>
    %464 = arith.addf %460, %463 : vector<16x32xf32>
    %c1_209 = arith.constant 1 : index
    %c344_210 = arith.constant 344 : index
    %c0_211 = arith.constant 0 : index
    %465 = vector.load %arg1[%c1_209, %c344_210, %c0_211] : memref<3x544x32xf32, #tpu.memory_space<vmem>>, vector<1x1x32xf32>
    %466 = vector.shape_cast %465 : vector<1x1x32xf32> to vector<1x32xf32>
    %c1_212 = arith.constant 1 : index
    %c352_213 = arith.constant 352 : index
    %c0_214 = arith.constant 0 : index
    %467 = vector.load %arg1[%c1_212, %c352_213, %c0_214] : memref<3x544x32xf32, #tpu.memory_space<vmem>>, vector<1x1x32xf32>
    %468 = vector.shape_cast %467 : vector<1x1x32xf32> to vector<1x32xf32>
    %cst_215 = arith.constant dense<0.000000e+00> : vector<16xf32>
    %469 = vector.multi_reduction <add>, %464, %cst_215 [1] : vector<16x32xf32> to vector<16xf32>
    %470 = vector.shape_cast %469 : vector<16xf32> to vector<16x1xf32>
    %cst_216 = arith.constant 3.200000e+01 : f32
    %471 = vector.broadcast %cst_216 : f32 to vector<16x1xf32>
    %472 = arith.divf %470, %471 : vector<16x1xf32>
    %473 = vector.broadcast %472 : vector<16x1xf32> to vector<16x32xf32>
    %474 = arith.subf %464, %473 : vector<16x32xf32>
    %475 = arith.mulf %474, %474 : vector<16x32xf32>
    %cst_217 = arith.constant dense<0.000000e+00> : vector<16xf32>
    %476 = vector.multi_reduction <add>, %475, %cst_217 [1] : vector<16x32xf32> to vector<16xf32>
    %477 = vector.shape_cast %476 : vector<16xf32> to vector<16x1xf32>
    %cst_218 = arith.constant 3.200000e+01 : f32
    %478 = vector.broadcast %cst_218 : f32 to vector<16x1xf32>
    %479 = arith.divf %477, %478 : vector<16x1xf32>
    %cst_219 = arith.constant 9.99999996E-13 : f32
    %480 = vector.broadcast %cst_219 : f32 to vector<16x1xf32>
    %481 = arith.addf %479, %480 : vector<16x1xf32>
    %482 = math.rsqrt %481 : vector<16x1xf32>
    %483 = vector.broadcast %482 : vector<16x1xf32> to vector<16x32xf32>
    %484 = arith.mulf %474, %483 : vector<16x32xf32>
    %485 = vector.broadcast %466 : vector<1x32xf32> to vector<16x32xf32>
    %486 = arith.mulf %484, %485 : vector<16x32xf32>
    %487 = vector.broadcast %468 : vector<1x32xf32> to vector<16x32xf32>
    %488 = arith.addf %486, %487 : vector<16x32xf32>
    %c1_220 = arith.constant 1 : index
    %c40_221 = arith.constant 40 : index
    %c0_222 = arith.constant 0 : index
    %489 = vector.load %arg2[%c1_220, %c40_221, %c0_222] : memref<3x80x96xf32, #tpu.memory_space<vmem>>, vector<1x32x96xf32>
    %490 = vector.shape_cast %489 : vector<1x32x96xf32> to vector<32x96xf32>
    %cst_223 = arith.constant dense<0.000000e+00> : vector<16x96xf32>
    %491 = tpu.matmul %488, %490, %cst_223 {dimension_numbers = #tpu.dot_dimension_numbers<[1], [0], [0], [1], [0, 0, 1, 1], [], []>} : vector<16x32xf32>, vector<32x96xf32>, vector<16x96xf32> -> vector<16x96xf32>
    %c1_224 = arith.constant 1 : index
    %c72_225 = arith.constant 72 : index
    %c0_226 = arith.constant 0 : index
    %492 = vector.load %arg2[%c1_224, %c72_225, %c0_226] : memref<3x80x96xf32, #tpu.memory_space<vmem>>, vector<1x1x96xf32>
    %493 = vector.shape_cast %492 : vector<1x1x96xf32> to vector<1x96xf32>
    %494 = vector.broadcast %493 : vector<1x96xf32> to vector<16x96xf32>
    %495 = arith.addf %491, %494 : vector<16x96xf32>
    %496 = vector.shape_cast %495 : vector<16x96xf32> to vector<2x8x96xf32>
    %c1_227 = arith.constant 1 : index
    %c360_228 = arith.constant 360 : index
    %c0_229 = arith.constant 0 : index
    %497 = vector.load %arg1[%c1_227, %c360_228, %c0_229] : memref<3x544x32xf32, #tpu.memory_space<vmem>>, vector<1x32x32xf32>
    %498 = vector.shape_cast %497 : vector<1x32x32xf32> to vector<32x32xf32>
    %c1_230 = arith.constant 1 : index
    %c392_231 = arith.constant 392 : index
    %c0_232 = arith.constant 0 : index
    %499 = vector.load %arg1[%c1_230, %c392_231, %c0_232] : memref<3x544x32xf32, #tpu.memory_space<vmem>>, vector<1x1x32xf32>
    %500 = vector.shape_cast %499 : vector<1x1x32xf32> to vector<1x32xf32>
    %501 = vector.extract_strided_slice %496 {offsets = [0, 0, 0], sizes = [2, 8, 16], strides = [1, 1, 1]} : vector<2x8x96xf32> to vector<2x8x16xf32>
    %502 = vector.extract_strided_slice %496 {offsets = [0, 0, 32], sizes = [2, 8, 16], strides = [1, 1, 1]} : vector<2x8x96xf32> to vector<2x8x16xf32>
    %503 = vector.extract_strided_slice %496 {offsets = [0, 0, 64], sizes = [2, 8, 16], strides = [1, 1, 1]} : vector<2x8x96xf32> to vector<2x8x16xf32>
    %cst_233 = arith.constant dense<0.000000e+00> : vector<2x8x8xf32>
    %504 = tpu.matmul %501, %502, %cst_233 {dimension_numbers = #tpu.dot_dimension_numbers<[2], [2], [1], [1], [0, 0, 0, 1, 1, 1], [0], [0]>} : vector<2x8x16xf32>, vector<2x8x16xf32>, vector<2x8x8xf32> -> vector<2x8x8xf32>
    %cst_234 = arith.constant 2.500000e-01 : f32
    %505 = vector.broadcast %cst_234 : f32 to vector<2x8x8xf32>
    %506 = arith.mulf %504, %505 : vector<2x8x8xf32>
    %507 = vector.shape_cast %5 : vector<1x8xf32> to vector<1x1x8xf32>
    %508 = vector.broadcast %507 : vector<1x1x8xf32> to vector<2x8x8xf32>
    %509 = arith.addf %506, %508 : vector<2x8x8xf32>
    %cst_235 = arith.constant dense<0xFF800000> : vector<2x8xf32>
    %510 = vector.multi_reduction <maximumf>, %509, %cst_235 [2] : vector<2x8x8xf32> to vector<2x8xf32>
    %511 = vector.shape_cast %510 : vector<2x8xf32> to vector<2x8x1xf32>
    %512 = vector.broadcast %511 : vector<2x8x1xf32> to vector<2x8x8xf32>
    %513 = arith.subf %509, %512 : vector<2x8x8xf32>
    %514 = math.exp %513 : vector<2x8x8xf32>
    %cst_236 = arith.constant dense<0.000000e+00> : vector<2x8xf32>
    %515 = vector.multi_reduction <add>, %514, %cst_236 [2] : vector<2x8x8xf32> to vector<2x8xf32>
    %516 = vector.shape_cast %515 : vector<2x8xf32> to vector<2x8x1xf32>
    %517 = tpu.reciprocal %516 {approx = true} : vector<2x8x1xf32> -> vector<2x8x1xf32>
    %518 = vector.broadcast %517 : vector<2x8x1xf32> to vector<2x8x8xf32>
    %519 = arith.mulf %514, %518 : vector<2x8x8xf32>
    %cst_237 = arith.constant dense<0.000000e+00> : vector<2x8x16xf32>
    %520 = tpu.matmul %519, %503, %cst_237 {dimension_numbers = #tpu.dot_dimension_numbers<[2], [1], [1], [2], [0, 0, 0, 1, 1, 2], [0], [0]>} : vector<2x8x8xf32>, vector<2x8x16xf32>, vector<2x8x16xf32> -> vector<2x8x16xf32>
    %521 = vector.shape_cast %520 : vector<2x8x16xf32> to vector<16x16xf32>
    %522 = vector.extract_strided_slice %498 {offsets = [0, 0], sizes = [16, 32], strides = [1, 1]} : vector<32x32xf32> to vector<16x32xf32>
    %cst_238 = arith.constant dense<0.000000e+00> : vector<16x32xf32>
    %523 = tpu.matmul %521, %522, %cst_238 {dimension_numbers = #tpu.dot_dimension_numbers<[1], [0], [0], [1], [0, 0, 1, 1], [], []>} : vector<16x16xf32>, vector<16x32xf32>, vector<16x32xf32> -> vector<16x32xf32>
    %524 = vector.broadcast %500 : vector<1x32xf32> to vector<16x32xf32>
    %525 = arith.addf %524, %523 : vector<16x32xf32>
    %526 = vector.extract_strided_slice %496 {offsets = [0, 0, 16], sizes = [2, 8, 16], strides = [1, 1, 1]} : vector<2x8x96xf32> to vector<2x8x16xf32>
    %527 = vector.extract_strided_slice %496 {offsets = [0, 0, 48], sizes = [2, 8, 16], strides = [1, 1, 1]} : vector<2x8x96xf32> to vector<2x8x16xf32>
    %528 = vector.extract_strided_slice %496 {offsets = [0, 0, 80], sizes = [2, 8, 16], strides = [1, 1, 1]} : vector<2x8x96xf32> to vector<2x8x16xf32>
    %cst_239 = arith.constant dense<0.000000e+00> : vector<2x8x8xf32>
    %529 = tpu.matmul %526, %527, %cst_239 {dimension_numbers = #tpu.dot_dimension_numbers<[2], [2], [1], [1], [0, 0, 0, 1, 1, 1], [0], [0]>} : vector<2x8x16xf32>, vector<2x8x16xf32>, vector<2x8x8xf32> -> vector<2x8x8xf32>
    %cst_240 = arith.constant 2.500000e-01 : f32
    %530 = vector.broadcast %cst_240 : f32 to vector<2x8x8xf32>
    %531 = arith.mulf %529, %530 : vector<2x8x8xf32>
    %532 = vector.shape_cast %5 : vector<1x8xf32> to vector<1x1x8xf32>
    %533 = vector.broadcast %532 : vector<1x1x8xf32> to vector<2x8x8xf32>
    %534 = arith.addf %531, %533 : vector<2x8x8xf32>
    %cst_241 = arith.constant dense<0xFF800000> : vector<2x8xf32>
    %535 = vector.multi_reduction <maximumf>, %534, %cst_241 [2] : vector<2x8x8xf32> to vector<2x8xf32>
    %536 = vector.shape_cast %535 : vector<2x8xf32> to vector<2x8x1xf32>
    %537 = vector.broadcast %536 : vector<2x8x1xf32> to vector<2x8x8xf32>
    %538 = arith.subf %534, %537 : vector<2x8x8xf32>
    %539 = math.exp %538 : vector<2x8x8xf32>
    %cst_242 = arith.constant dense<0.000000e+00> : vector<2x8xf32>
    %540 = vector.multi_reduction <add>, %539, %cst_242 [2] : vector<2x8x8xf32> to vector<2x8xf32>
    %541 = vector.shape_cast %540 : vector<2x8xf32> to vector<2x8x1xf32>
    %542 = tpu.reciprocal %541 {approx = true} : vector<2x8x1xf32> -> vector<2x8x1xf32>
    %543 = vector.broadcast %542 : vector<2x8x1xf32> to vector<2x8x8xf32>
    %544 = arith.mulf %539, %543 : vector<2x8x8xf32>
    %cst_243 = arith.constant dense<0.000000e+00> : vector<2x8x16xf32>
    %545 = tpu.matmul %544, %528, %cst_243 {dimension_numbers = #tpu.dot_dimension_numbers<[2], [1], [1], [2], [0, 0, 0, 1, 1, 2], [0], [0]>} : vector<2x8x8xf32>, vector<2x8x16xf32>, vector<2x8x16xf32> -> vector<2x8x16xf32>
    %546 = vector.shape_cast %545 : vector<2x8x16xf32> to vector<16x16xf32>
    %547 = vector.extract_strided_slice %498 {offsets = [16, 0], sizes = [16, 32], strides = [1, 1]} : vector<32x32xf32> to vector<16x32xf32>
    %cst_244 = arith.constant dense<0.000000e+00> : vector<16x32xf32>
    %548 = tpu.matmul %546, %547, %cst_244 {dimension_numbers = #tpu.dot_dimension_numbers<[1], [0], [0], [1], [0, 0, 1, 1], [], []>} : vector<16x16xf32>, vector<16x32xf32>, vector<16x32xf32> -> vector<16x32xf32>
    %549 = arith.addf %525, %548 : vector<16x32xf32>
    %550 = arith.addf %464, %549 : vector<16x32xf32>
    %c1_245 = arith.constant 1 : index
    %c400_246 = arith.constant 400 : index
    %c0_247 = arith.constant 0 : index
    %551 = vector.load %arg1[%c1_245, %c400_246, %c0_247] : memref<3x544x32xf32, #tpu.memory_space<vmem>>, vector<1x1x32xf32>
    %552 = vector.shape_cast %551 : vector<1x1x32xf32> to vector<1x32xf32>
    %c1_248 = arith.constant 1 : index
    %c408_249 = arith.constant 408 : index
    %c0_250 = arith.constant 0 : index
    %553 = vector.load %arg1[%c1_248, %c408_249, %c0_250] : memref<3x544x32xf32, #tpu.memory_space<vmem>>, vector<1x1x32xf32>
    %554 = vector.shape_cast %553 : vector<1x1x32xf32> to vector<1x32xf32>
    %cst_251 = arith.constant dense<0.000000e+00> : vector<16xf32>
    %555 = vector.multi_reduction <add>, %550, %cst_251 [1] : vector<16x32xf32> to vector<16xf32>
    %556 = vector.shape_cast %555 : vector<16xf32> to vector<16x1xf32>
    %cst_252 = arith.constant 3.200000e+01 : f32
    %557 = vector.broadcast %cst_252 : f32 to vector<16x1xf32>
    %558 = arith.divf %556, %557 : vector<16x1xf32>
    %559 = vector.broadcast %558 : vector<16x1xf32> to vector<16x32xf32>
    %560 = arith.subf %550, %559 : vector<16x32xf32>
    %561 = arith.mulf %560, %560 : vector<16x32xf32>
    %cst_253 = arith.constant dense<0.000000e+00> : vector<16xf32>
    %562 = vector.multi_reduction <add>, %561, %cst_253 [1] : vector<16x32xf32> to vector<16xf32>
    %563 = vector.shape_cast %562 : vector<16xf32> to vector<16x1xf32>
    %cst_254 = arith.constant 3.200000e+01 : f32
    %564 = vector.broadcast %cst_254 : f32 to vector<16x1xf32>
    %565 = arith.divf %563, %564 : vector<16x1xf32>
    %cst_255 = arith.constant 9.99999996E-13 : f32
    %566 = vector.broadcast %cst_255 : f32 to vector<16x1xf32>
    %567 = arith.addf %565, %566 : vector<16x1xf32>
    %568 = math.rsqrt %567 : vector<16x1xf32>
    %569 = vector.broadcast %568 : vector<16x1xf32> to vector<16x32xf32>
    %570 = arith.mulf %560, %569 : vector<16x32xf32>
    %571 = vector.broadcast %552 : vector<1x32xf32> to vector<16x32xf32>
    %572 = arith.mulf %570, %571 : vector<16x32xf32>
    %573 = vector.broadcast %554 : vector<1x32xf32> to vector<16x32xf32>
    %574 = arith.addf %572, %573 : vector<16x32xf32>
    %c1_256 = arith.constant 1 : index
    %c40_257 = arith.constant 40 : index
    %c0_258 = arith.constant 0 : index
    %575 = vector.load %arg3[%c1_256, %c40_257, %c0_258] : memref<3x80x64xf32, #tpu.memory_space<vmem>>, vector<1x32x64xf32>
    %576 = vector.shape_cast %575 : vector<1x32x64xf32> to vector<32x64xf32>
    %cst_259 = arith.constant dense<0.000000e+00> : vector<16x64xf32>
    %577 = tpu.matmul %574, %576, %cst_259 {dimension_numbers = #tpu.dot_dimension_numbers<[1], [0], [0], [1], [0, 0, 1, 1], [], []>} : vector<16x32xf32>, vector<32x64xf32>, vector<16x64xf32> -> vector<16x64xf32>
    %c1_260 = arith.constant 1 : index
    %c72_261 = arith.constant 72 : index
    %c0_262 = arith.constant 0 : index
    %578 = vector.load %arg3[%c1_260, %c72_261, %c0_262] : memref<3x80x64xf32, #tpu.memory_space<vmem>>, vector<1x1x64xf32>
    %579 = vector.shape_cast %578 : vector<1x1x64xf32> to vector<1x64xf32>
    %580 = vector.broadcast %579 : vector<1x64xf32> to vector<16x64xf32>
    %581 = arith.addf %577, %580 : vector<16x64xf32>
    %cst_263 = arith.constant 5.000000e-01 : f32
    %582 = vector.broadcast %cst_263 : f32 to vector<16x64xf32>
    %583 = arith.mulf %582, %581 : vector<16x64xf32>
    %cst_264 = arith.constant 0.707106769 : f32
    %584 = vector.broadcast %cst_264 : f32 to vector<16x64xf32>
    %585 = arith.mulf %581, %584 : vector<16x64xf32>
    %586 = math.erf %585 : vector<16x64xf32>
    %cst_265 = arith.constant 1.000000e+00 : f32
    %587 = vector.broadcast %cst_265 : f32 to vector<16x64xf32>
    %588 = arith.addf %587, %586 : vector<16x64xf32>
    %589 = arith.mulf %583, %588 : vector<16x64xf32>
    %c1_266 = arith.constant 1 : index
    %c416_267 = arith.constant 416 : index
    %c0_268 = arith.constant 0 : index
    %590 = vector.load %arg1[%c1_266, %c416_267, %c0_268] : memref<3x544x32xf32, #tpu.memory_space<vmem>>, vector<1x64x32xf32>
    %591 = vector.shape_cast %590 : vector<1x64x32xf32> to vector<64x32xf32>
    %cst_269 = arith.constant dense<0.000000e+00> : vector<16x32xf32>
    %592 = tpu.matmul %589, %591, %cst_269 {dimension_numbers = #tpu.dot_dimension_numbers<[1], [0], [0], [1], [0, 0, 1, 1], [], []>} : vector<16x64xf32>, vector<64x32xf32>, vector<16x32xf32> -> vector<16x32xf32>
    %593 = arith.addf %550, %592 : vector<16x32xf32>
    %c1_270 = arith.constant 1 : index
    %c480_271 = arith.constant 480 : index
    %c0_272 = arith.constant 0 : index
    %594 = vector.load %arg1[%c1_270, %c480_271, %c0_272] : memref<3x544x32xf32, #tpu.memory_space<vmem>>, vector<1x1x32xf32>
    %595 = vector.shape_cast %594 : vector<1x1x32xf32> to vector<1x32xf32>
    %596 = vector.broadcast %595 : vector<1x32xf32> to vector<16x32xf32>
    %597 = arith.addf %593, %596 : vector<16x32xf32>
    %c1_273 = arith.constant 1 : index
    %c488_274 = arith.constant 488 : index
    %c0_275 = arith.constant 0 : index
    %598 = vector.load %arg1[%c1_273, %c488_274, %c0_275] : memref<3x544x32xf32, #tpu.memory_space<vmem>>, vector<1x1x32xf32>
    %599 = vector.shape_cast %598 : vector<1x1x32xf32> to vector<1x32xf32>
    %c1_276 = arith.constant 1 : index
    %c496_277 = arith.constant 496 : index
    %c0_278 = arith.constant 0 : index
    %600 = vector.load %arg1[%c1_276, %c496_277, %c0_278] : memref<3x544x32xf32, #tpu.memory_space<vmem>>, vector<1x1x32xf32>
    %601 = vector.shape_cast %600 : vector<1x1x32xf32> to vector<1x32xf32>
    %cst_279 = arith.constant dense<0.000000e+00> : vector<16xf32>
    %602 = vector.multi_reduction <add>, %597, %cst_279 [1] : vector<16x32xf32> to vector<16xf32>
    %603 = vector.shape_cast %602 : vector<16xf32> to vector<16x1xf32>
    %cst_280 = arith.constant 3.200000e+01 : f32
    %604 = vector.broadcast %cst_280 : f32 to vector<16x1xf32>
    %605 = arith.divf %603, %604 : vector<16x1xf32>
    %606 = vector.broadcast %605 : vector<16x1xf32> to vector<16x32xf32>
    %607 = arith.subf %597, %606 : vector<16x32xf32>
    %608 = arith.mulf %607, %607 : vector<16x32xf32>
    %cst_281 = arith.constant dense<0.000000e+00> : vector<16xf32>
    %609 = vector.multi_reduction <add>, %608, %cst_281 [1] : vector<16x32xf32> to vector<16xf32>
    %610 = vector.shape_cast %609 : vector<16xf32> to vector<16x1xf32>
    %cst_282 = arith.constant 3.200000e+01 : f32
    %611 = vector.broadcast %cst_282 : f32 to vector<16x1xf32>
    %612 = arith.divf %610, %611 : vector<16x1xf32>
    %cst_283 = arith.constant 9.99999996E-13 : f32
    %613 = vector.broadcast %cst_283 : f32 to vector<16x1xf32>
    %614 = arith.addf %612, %613 : vector<16x1xf32>
    %615 = math.rsqrt %614 : vector<16x1xf32>
    %616 = vector.broadcast %615 : vector<16x1xf32> to vector<16x32xf32>
    %617 = arith.mulf %607, %616 : vector<16x32xf32>
    %618 = vector.broadcast %599 : vector<1x32xf32> to vector<16x32xf32>
    %619 = arith.mulf %617, %618 : vector<16x32xf32>
    %620 = vector.broadcast %601 : vector<1x32xf32> to vector<16x32xf32>
    %621 = arith.addf %619, %620 : vector<16x32xf32>
    %c1_284 = arith.constant 1 : index
    %c504_285 = arith.constant 504 : index
    %c0_286 = arith.constant 0 : index
    %622 = vector.load %arg1[%c1_284, %c504_285, %c0_286] : memref<3x544x32xf32, #tpu.memory_space<vmem>>, vector<1x32x32xf32>
    %623 = vector.shape_cast %622 : vector<1x32x32xf32> to vector<32x32xf32>
    %cst_287 = arith.constant dense<0.000000e+00> : vector<16x32xf32>
    %624 = tpu.matmul %621, %623, %cst_287 {dimension_numbers = #tpu.dot_dimension_numbers<[1], [0], [0], [1], [0, 0, 1, 1], [], []>} : vector<16x32xf32>, vector<32x32xf32>, vector<16x32xf32> -> vector<16x32xf32>
    %c1_288 = arith.constant 1 : index
    %c536_289 = arith.constant 536 : index
    %c0_290 = arith.constant 0 : index
    %625 = vector.load %arg1[%c1_288, %c536_289, %c0_290] : memref<3x544x32xf32, #tpu.memory_space<vmem>>, vector<1x1x32xf32>
    %626 = vector.shape_cast %625 : vector<1x1x32xf32> to vector<1x32xf32>
    %627 = vector.broadcast %626 : vector<1x32xf32> to vector<16x32xf32>
    %628 = arith.addf %624, %627 : vector<16x32xf32>
    %629 = math.tanh %628 : vector<16x32xf32>
    %c32_291 = arith.constant 32 : index
    %c0_292 = arith.constant 0 : index
    %630 = vector.load %arg4[%c32_291, %c0_292] : memref<96x6xf32, #tpu.memory_space<vmem>>, vector<32x6xf32>
    %cst_293 = arith.constant dense<0.000000e+00> : vector<16x6xf32>
    %631 = tpu.matmul %629, %630, %cst_293 {dimension_numbers = #tpu.dot_dimension_numbers<[1], [0], [0], [1], [0, 0, 1, 1], [], []>} : vector<16x32xf32>, vector<32x6xf32>, vector<16x6xf32> -> vector<16x6xf32>
    %632 = arith.addf %319, %631 : vector<16x6xf32>
    %c2 = arith.constant 2 : index
    %c0_294 = arith.constant 0 : index
    %c0_295 = arith.constant 0 : index
    %633 = vector.load %arg0[%c2, %c0_294, %c0_295] : memref<3x16x192xf32, #tpu.memory_space<vmem>>, vector<1x16x192xf32>
    %634 = vector.shape_cast %633 : vector<1x16x192xf32> to vector<16x192xf32>
    %c2_296 = arith.constant 2 : index
    %c0_297 = arith.constant 0 : index
    %c0_298 = arith.constant 0 : index
    %635 = vector.load %arg1[%c2_296, %c0_297, %c0_298] : memref<3x544x32xf32, #tpu.memory_space<vmem>>, vector<1x192x32xf32>
    %636 = vector.shape_cast %635 : vector<1x192x32xf32> to vector<192x32xf32>
    %cst_299 = arith.constant dense<0.000000e+00> : vector<16x32xf32>
    %637 = tpu.matmul %634, %636, %cst_299 {dimension_numbers = #tpu.dot_dimension_numbers<[1], [0], [0], [1], [0, 0, 1, 1], [], []>} : vector<16x192xf32>, vector<192x32xf32>, vector<16x32xf32> -> vector<16x32xf32>
    %638 = vector.shape_cast %637 : vector<16x32xf32> to vector<2x8x32xf32>
    %c2_300 = arith.constant 2 : index
    %c192_301 = arith.constant 192 : index
    %c0_302 = arith.constant 0 : index
    %639 = vector.load %arg1[%c2_300, %c192_301, %c0_302] : memref<3x544x32xf32, #tpu.memory_space<vmem>>, vector<1x8x32xf32>
    %640 = vector.shape_cast %639 : vector<1x8x32xf32> to vector<8x32xf32>
    %641 = vector.shape_cast %640 : vector<8x32xf32> to vector<1x8x32xf32>
    %642 = vector.broadcast %641 : vector<1x8x32xf32> to vector<2x8x32xf32>
    %643 = arith.addf %638, %642 : vector<2x8x32xf32>
    %644 = vector.shape_cast %643 : vector<2x8x32xf32> to vector<16x32xf32>
    %c2_303 = arith.constant 2 : index
    %c200_304 = arith.constant 200 : index
    %c0_305 = arith.constant 0 : index
    %645 = vector.load %arg1[%c2_303, %c200_304, %c0_305] : memref<3x544x32xf32, #tpu.memory_space<vmem>>, vector<1x1x32xf32>
    %646 = vector.shape_cast %645 : vector<1x1x32xf32> to vector<1x32xf32>
    %c2_306 = arith.constant 2 : index
    %c208_307 = arith.constant 208 : index
    %c0_308 = arith.constant 0 : index
    %647 = vector.load %arg1[%c2_306, %c208_307, %c0_308] : memref<3x544x32xf32, #tpu.memory_space<vmem>>, vector<1x1x32xf32>
    %648 = vector.shape_cast %647 : vector<1x1x32xf32> to vector<1x32xf32>
    %cst_309 = arith.constant dense<0.000000e+00> : vector<16xf32>
    %649 = vector.multi_reduction <add>, %644, %cst_309 [1] : vector<16x32xf32> to vector<16xf32>
    %650 = vector.shape_cast %649 : vector<16xf32> to vector<16x1xf32>
    %cst_310 = arith.constant 3.200000e+01 : f32
    %651 = vector.broadcast %cst_310 : f32 to vector<16x1xf32>
    %652 = arith.divf %650, %651 : vector<16x1xf32>
    %653 = vector.broadcast %652 : vector<16x1xf32> to vector<16x32xf32>
    %654 = arith.subf %644, %653 : vector<16x32xf32>
    %655 = arith.mulf %654, %654 : vector<16x32xf32>
    %cst_311 = arith.constant dense<0.000000e+00> : vector<16xf32>
    %656 = vector.multi_reduction <add>, %655, %cst_311 [1] : vector<16x32xf32> to vector<16xf32>
    %657 = vector.shape_cast %656 : vector<16xf32> to vector<16x1xf32>
    %cst_312 = arith.constant 3.200000e+01 : f32
    %658 = vector.broadcast %cst_312 : f32 to vector<16x1xf32>
    %659 = arith.divf %657, %658 : vector<16x1xf32>
    %cst_313 = arith.constant 9.99999996E-13 : f32
    %660 = vector.broadcast %cst_313 : f32 to vector<16x1xf32>
    %661 = arith.addf %659, %660 : vector<16x1xf32>
    %662 = math.rsqrt %661 : vector<16x1xf32>
    %663 = vector.broadcast %662 : vector<16x1xf32> to vector<16x32xf32>
    %664 = arith.mulf %654, %663 : vector<16x32xf32>
    %665 = vector.broadcast %646 : vector<1x32xf32> to vector<16x32xf32>
    %666 = arith.mulf %664, %665 : vector<16x32xf32>
    %667 = vector.broadcast %648 : vector<1x32xf32> to vector<16x32xf32>
    %668 = arith.addf %666, %667 : vector<16x32xf32>
    %c2_314 = arith.constant 2 : index
    %c0_315 = arith.constant 0 : index
    %c0_316 = arith.constant 0 : index
    %669 = vector.load %arg2[%c2_314, %c0_315, %c0_316] : memref<3x80x96xf32, #tpu.memory_space<vmem>>, vector<1x32x96xf32>
    %670 = vector.shape_cast %669 : vector<1x32x96xf32> to vector<32x96xf32>
    %cst_317 = arith.constant dense<0.000000e+00> : vector<16x96xf32>
    %671 = tpu.matmul %668, %670, %cst_317 {dimension_numbers = #tpu.dot_dimension_numbers<[1], [0], [0], [1], [0, 0, 1, 1], [], []>} : vector<16x32xf32>, vector<32x96xf32>, vector<16x96xf32> -> vector<16x96xf32>
    %c2_318 = arith.constant 2 : index
    %c32_319 = arith.constant 32 : index
    %c0_320 = arith.constant 0 : index
    %672 = vector.load %arg2[%c2_318, %c32_319, %c0_320] : memref<3x80x96xf32, #tpu.memory_space<vmem>>, vector<1x1x96xf32>
    %673 = vector.shape_cast %672 : vector<1x1x96xf32> to vector<1x96xf32>
    %674 = vector.broadcast %673 : vector<1x96xf32> to vector<16x96xf32>
    %675 = arith.addf %671, %674 : vector<16x96xf32>
    %676 = vector.shape_cast %675 : vector<16x96xf32> to vector<2x8x96xf32>
    %c2_321 = arith.constant 2 : index
    %c216_322 = arith.constant 216 : index
    %c0_323 = arith.constant 0 : index
    %677 = vector.load %arg1[%c2_321, %c216_322, %c0_323] : memref<3x544x32xf32, #tpu.memory_space<vmem>>, vector<1x32x32xf32>
    %678 = vector.shape_cast %677 : vector<1x32x32xf32> to vector<32x32xf32>
    %c2_324 = arith.constant 2 : index
    %c248_325 = arith.constant 248 : index
    %c0_326 = arith.constant 0 : index
    %679 = vector.load %arg1[%c2_324, %c248_325, %c0_326] : memref<3x544x32xf32, #tpu.memory_space<vmem>>, vector<1x1x32xf32>
    %680 = vector.shape_cast %679 : vector<1x1x32xf32> to vector<1x32xf32>
    %681 = vector.extract_strided_slice %676 {offsets = [0, 0, 0], sizes = [2, 8, 16], strides = [1, 1, 1]} : vector<2x8x96xf32> to vector<2x8x16xf32>
    %682 = vector.extract_strided_slice %676 {offsets = [0, 0, 32], sizes = [2, 8, 16], strides = [1, 1, 1]} : vector<2x8x96xf32> to vector<2x8x16xf32>
    %683 = vector.extract_strided_slice %676 {offsets = [0, 0, 64], sizes = [2, 8, 16], strides = [1, 1, 1]} : vector<2x8x96xf32> to vector<2x8x16xf32>
    %cst_327 = arith.constant dense<0.000000e+00> : vector<2x8x8xf32>
    %684 = tpu.matmul %681, %682, %cst_327 {dimension_numbers = #tpu.dot_dimension_numbers<[2], [2], [1], [1], [0, 0, 0, 1, 1, 1], [0], [0]>} : vector<2x8x16xf32>, vector<2x8x16xf32>, vector<2x8x8xf32> -> vector<2x8x8xf32>
    %cst_328 = arith.constant 2.500000e-01 : f32
    %685 = vector.broadcast %cst_328 : f32 to vector<2x8x8xf32>
    %686 = arith.mulf %684, %685 : vector<2x8x8xf32>
    %687 = vector.shape_cast %5 : vector<1x8xf32> to vector<1x1x8xf32>
    %688 = vector.broadcast %687 : vector<1x1x8xf32> to vector<2x8x8xf32>
    %689 = arith.addf %686, %688 : vector<2x8x8xf32>
    %cst_329 = arith.constant dense<0xFF800000> : vector<2x8xf32>
    %690 = vector.multi_reduction <maximumf>, %689, %cst_329 [2] : vector<2x8x8xf32> to vector<2x8xf32>
    %691 = vector.shape_cast %690 : vector<2x8xf32> to vector<2x8x1xf32>
    %692 = vector.broadcast %691 : vector<2x8x1xf32> to vector<2x8x8xf32>
    %693 = arith.subf %689, %692 : vector<2x8x8xf32>
    %694 = math.exp %693 : vector<2x8x8xf32>
    %cst_330 = arith.constant dense<0.000000e+00> : vector<2x8xf32>
    %695 = vector.multi_reduction <add>, %694, %cst_330 [2] : vector<2x8x8xf32> to vector<2x8xf32>
    %696 = vector.shape_cast %695 : vector<2x8xf32> to vector<2x8x1xf32>
    %697 = tpu.reciprocal %696 {approx = true} : vector<2x8x1xf32> -> vector<2x8x1xf32>
    %698 = vector.broadcast %697 : vector<2x8x1xf32> to vector<2x8x8xf32>
    %699 = arith.mulf %694, %698 : vector<2x8x8xf32>
    %cst_331 = arith.constant dense<0.000000e+00> : vector<2x8x16xf32>
    %700 = tpu.matmul %699, %683, %cst_331 {dimension_numbers = #tpu.dot_dimension_numbers<[2], [1], [1], [2], [0, 0, 0, 1, 1, 2], [0], [0]>} : vector<2x8x8xf32>, vector<2x8x16xf32>, vector<2x8x16xf32> -> vector<2x8x16xf32>
    %701 = vector.shape_cast %700 : vector<2x8x16xf32> to vector<16x16xf32>
    %702 = vector.extract_strided_slice %678 {offsets = [0, 0], sizes = [16, 32], strides = [1, 1]} : vector<32x32xf32> to vector<16x32xf32>
    %cst_332 = arith.constant dense<0.000000e+00> : vector<16x32xf32>
    %703 = tpu.matmul %701, %702, %cst_332 {dimension_numbers = #tpu.dot_dimension_numbers<[1], [0], [0], [1], [0, 0, 1, 1], [], []>} : vector<16x16xf32>, vector<16x32xf32>, vector<16x32xf32> -> vector<16x32xf32>
    %704 = vector.broadcast %680 : vector<1x32xf32> to vector<16x32xf32>
    %705 = arith.addf %704, %703 : vector<16x32xf32>
    %706 = vector.extract_strided_slice %676 {offsets = [0, 0, 16], sizes = [2, 8, 16], strides = [1, 1, 1]} : vector<2x8x96xf32> to vector<2x8x16xf32>
    %707 = vector.extract_strided_slice %676 {offsets = [0, 0, 48], sizes = [2, 8, 16], strides = [1, 1, 1]} : vector<2x8x96xf32> to vector<2x8x16xf32>
    %708 = vector.extract_strided_slice %676 {offsets = [0, 0, 80], sizes = [2, 8, 16], strides = [1, 1, 1]} : vector<2x8x96xf32> to vector<2x8x16xf32>
    %cst_333 = arith.constant dense<0.000000e+00> : vector<2x8x8xf32>
    %709 = tpu.matmul %706, %707, %cst_333 {dimension_numbers = #tpu.dot_dimension_numbers<[2], [2], [1], [1], [0, 0, 0, 1, 1, 1], [0], [0]>} : vector<2x8x16xf32>, vector<2x8x16xf32>, vector<2x8x8xf32> -> vector<2x8x8xf32>
    %cst_334 = arith.constant 2.500000e-01 : f32
    %710 = vector.broadcast %cst_334 : f32 to vector<2x8x8xf32>
    %711 = arith.mulf %709, %710 : vector<2x8x8xf32>
    %712 = vector.shape_cast %5 : vector<1x8xf32> to vector<1x1x8xf32>
    %713 = vector.broadcast %712 : vector<1x1x8xf32> to vector<2x8x8xf32>
    %714 = arith.addf %711, %713 : vector<2x8x8xf32>
    %cst_335 = arith.constant dense<0xFF800000> : vector<2x8xf32>
    %715 = vector.multi_reduction <maximumf>, %714, %cst_335 [2] : vector<2x8x8xf32> to vector<2x8xf32>
    %716 = vector.shape_cast %715 : vector<2x8xf32> to vector<2x8x1xf32>
    %717 = vector.broadcast %716 : vector<2x8x1xf32> to vector<2x8x8xf32>
    %718 = arith.subf %714, %717 : vector<2x8x8xf32>
    %719 = math.exp %718 : vector<2x8x8xf32>
    %cst_336 = arith.constant dense<0.000000e+00> : vector<2x8xf32>
    %720 = vector.multi_reduction <add>, %719, %cst_336 [2] : vector<2x8x8xf32> to vector<2x8xf32>
    %721 = vector.shape_cast %720 : vector<2x8xf32> to vector<2x8x1xf32>
    %722 = tpu.reciprocal %721 {approx = true} : vector<2x8x1xf32> -> vector<2x8x1xf32>
    %723 = vector.broadcast %722 : vector<2x8x1xf32> to vector<2x8x8xf32>
    %724 = arith.mulf %719, %723 : vector<2x8x8xf32>
    %cst_337 = arith.constant dense<0.000000e+00> : vector<2x8x16xf32>
    %725 = tpu.matmul %724, %708, %cst_337 {dimension_numbers = #tpu.dot_dimension_numbers<[2], [1], [1], [2], [0, 0, 0, 1, 1, 2], [0], [0]>} : vector<2x8x8xf32>, vector<2x8x16xf32>, vector<2x8x16xf32> -> vector<2x8x16xf32>
    %726 = vector.shape_cast %725 : vector<2x8x16xf32> to vector<16x16xf32>
    %727 = vector.extract_strided_slice %678 {offsets = [16, 0], sizes = [16, 32], strides = [1, 1]} : vector<32x32xf32> to vector<16x32xf32>
    %cst_338 = arith.constant dense<0.000000e+00> : vector<16x32xf32>
    %728 = tpu.matmul %726, %727, %cst_338 {dimension_numbers = #tpu.dot_dimension_numbers<[1], [0], [0], [1], [0, 0, 1, 1], [], []>} : vector<16x16xf32>, vector<16x32xf32>, vector<16x32xf32> -> vector<16x32xf32>
    %729 = arith.addf %705, %728 : vector<16x32xf32>
    %730 = arith.addf %644, %729 : vector<16x32xf32>
    %c2_339 = arith.constant 2 : index
    %c256_340 = arith.constant 256 : index
    %c0_341 = arith.constant 0 : index
    %731 = vector.load %arg1[%c2_339, %c256_340, %c0_341] : memref<3x544x32xf32, #tpu.memory_space<vmem>>, vector<1x1x32xf32>
    %732 = vector.shape_cast %731 : vector<1x1x32xf32> to vector<1x32xf32>
    %c2_342 = arith.constant 2 : index
    %c264_343 = arith.constant 264 : index
    %c0_344 = arith.constant 0 : index
    %733 = vector.load %arg1[%c2_342, %c264_343, %c0_344] : memref<3x544x32xf32, #tpu.memory_space<vmem>>, vector<1x1x32xf32>
    %734 = vector.shape_cast %733 : vector<1x1x32xf32> to vector<1x32xf32>
    %cst_345 = arith.constant dense<0.000000e+00> : vector<16xf32>
    %735 = vector.multi_reduction <add>, %730, %cst_345 [1] : vector<16x32xf32> to vector<16xf32>
    %736 = vector.shape_cast %735 : vector<16xf32> to vector<16x1xf32>
    %cst_346 = arith.constant 3.200000e+01 : f32
    %737 = vector.broadcast %cst_346 : f32 to vector<16x1xf32>
    %738 = arith.divf %736, %737 : vector<16x1xf32>
    %739 = vector.broadcast %738 : vector<16x1xf32> to vector<16x32xf32>
    %740 = arith.subf %730, %739 : vector<16x32xf32>
    %741 = arith.mulf %740, %740 : vector<16x32xf32>
    %cst_347 = arith.constant dense<0.000000e+00> : vector<16xf32>
    %742 = vector.multi_reduction <add>, %741, %cst_347 [1] : vector<16x32xf32> to vector<16xf32>
    %743 = vector.shape_cast %742 : vector<16xf32> to vector<16x1xf32>
    %cst_348 = arith.constant 3.200000e+01 : f32
    %744 = vector.broadcast %cst_348 : f32 to vector<16x1xf32>
    %745 = arith.divf %743, %744 : vector<16x1xf32>
    %cst_349 = arith.constant 9.99999996E-13 : f32
    %746 = vector.broadcast %cst_349 : f32 to vector<16x1xf32>
    %747 = arith.addf %745, %746 : vector<16x1xf32>
    %748 = math.rsqrt %747 : vector<16x1xf32>
    %749 = vector.broadcast %748 : vector<16x1xf32> to vector<16x32xf32>
    %750 = arith.mulf %740, %749 : vector<16x32xf32>
    %751 = vector.broadcast %732 : vector<1x32xf32> to vector<16x32xf32>
    %752 = arith.mulf %750, %751 : vector<16x32xf32>
    %753 = vector.broadcast %734 : vector<1x32xf32> to vector<16x32xf32>
    %754 = arith.addf %752, %753 : vector<16x32xf32>
    %c2_350 = arith.constant 2 : index
    %c0_351 = arith.constant 0 : index
    %c0_352 = arith.constant 0 : index
    %755 = vector.load %arg3[%c2_350, %c0_351, %c0_352] : memref<3x80x64xf32, #tpu.memory_space<vmem>>, vector<1x32x64xf32>
    %756 = vector.shape_cast %755 : vector<1x32x64xf32> to vector<32x64xf32>
    %cst_353 = arith.constant dense<0.000000e+00> : vector<16x64xf32>
    %757 = tpu.matmul %754, %756, %cst_353 {dimension_numbers = #tpu.dot_dimension_numbers<[1], [0], [0], [1], [0, 0, 1, 1], [], []>} : vector<16x32xf32>, vector<32x64xf32>, vector<16x64xf32> -> vector<16x64xf32>
    %c2_354 = arith.constant 2 : index
    %c32_355 = arith.constant 32 : index
    %c0_356 = arith.constant 0 : index
    %758 = vector.load %arg3[%c2_354, %c32_355, %c0_356] : memref<3x80x64xf32, #tpu.memory_space<vmem>>, vector<1x1x64xf32>
    %759 = vector.shape_cast %758 : vector<1x1x64xf32> to vector<1x64xf32>
    %760 = vector.broadcast %759 : vector<1x64xf32> to vector<16x64xf32>
    %761 = arith.addf %757, %760 : vector<16x64xf32>
    %cst_357 = arith.constant 5.000000e-01 : f32
    %762 = vector.broadcast %cst_357 : f32 to vector<16x64xf32>
    %763 = arith.mulf %762, %761 : vector<16x64xf32>
    %cst_358 = arith.constant 0.707106769 : f32
    %764 = vector.broadcast %cst_358 : f32 to vector<16x64xf32>
    %765 = arith.mulf %761, %764 : vector<16x64xf32>
    %766 = math.erf %765 : vector<16x64xf32>
    %cst_359 = arith.constant 1.000000e+00 : f32
    %767 = vector.broadcast %cst_359 : f32 to vector<16x64xf32>
    %768 = arith.addf %767, %766 : vector<16x64xf32>
    %769 = arith.mulf %763, %768 : vector<16x64xf32>
    %c2_360 = arith.constant 2 : index
    %c272_361 = arith.constant 272 : index
    %c0_362 = arith.constant 0 : index
    %770 = vector.load %arg1[%c2_360, %c272_361, %c0_362] : memref<3x544x32xf32, #tpu.memory_space<vmem>>, vector<1x64x32xf32>
    %771 = vector.shape_cast %770 : vector<1x64x32xf32> to vector<64x32xf32>
    %cst_363 = arith.constant dense<0.000000e+00> : vector<16x32xf32>
    %772 = tpu.matmul %769, %771, %cst_363 {dimension_numbers = #tpu.dot_dimension_numbers<[1], [0], [0], [1], [0, 0, 1, 1], [], []>} : vector<16x64xf32>, vector<64x32xf32>, vector<16x32xf32> -> vector<16x32xf32>
    %773 = arith.addf %730, %772 : vector<16x32xf32>
    %c2_364 = arith.constant 2 : index
    %c336_365 = arith.constant 336 : index
    %c0_366 = arith.constant 0 : index
    %774 = vector.load %arg1[%c2_364, %c336_365, %c0_366] : memref<3x544x32xf32, #tpu.memory_space<vmem>>, vector<1x1x32xf32>
    %775 = vector.shape_cast %774 : vector<1x1x32xf32> to vector<1x32xf32>
    %776 = vector.broadcast %775 : vector<1x32xf32> to vector<16x32xf32>
    %777 = arith.addf %773, %776 : vector<16x32xf32>
    %c2_367 = arith.constant 2 : index
    %c344_368 = arith.constant 344 : index
    %c0_369 = arith.constant 0 : index
    %778 = vector.load %arg1[%c2_367, %c344_368, %c0_369] : memref<3x544x32xf32, #tpu.memory_space<vmem>>, vector<1x1x32xf32>
    %779 = vector.shape_cast %778 : vector<1x1x32xf32> to vector<1x32xf32>
    %c2_370 = arith.constant 2 : index
    %c352_371 = arith.constant 352 : index
    %c0_372 = arith.constant 0 : index
    %780 = vector.load %arg1[%c2_370, %c352_371, %c0_372] : memref<3x544x32xf32, #tpu.memory_space<vmem>>, vector<1x1x32xf32>
    %781 = vector.shape_cast %780 : vector<1x1x32xf32> to vector<1x32xf32>
    %cst_373 = arith.constant dense<0.000000e+00> : vector<16xf32>
    %782 = vector.multi_reduction <add>, %777, %cst_373 [1] : vector<16x32xf32> to vector<16xf32>
    %783 = vector.shape_cast %782 : vector<16xf32> to vector<16x1xf32>
    %cst_374 = arith.constant 3.200000e+01 : f32
    %784 = vector.broadcast %cst_374 : f32 to vector<16x1xf32>
    %785 = arith.divf %783, %784 : vector<16x1xf32>
    %786 = vector.broadcast %785 : vector<16x1xf32> to vector<16x32xf32>
    %787 = arith.subf %777, %786 : vector<16x32xf32>
    %788 = arith.mulf %787, %787 : vector<16x32xf32>
    %cst_375 = arith.constant dense<0.000000e+00> : vector<16xf32>
    %789 = vector.multi_reduction <add>, %788, %cst_375 [1] : vector<16x32xf32> to vector<16xf32>
    %790 = vector.shape_cast %789 : vector<16xf32> to vector<16x1xf32>
    %cst_376 = arith.constant 3.200000e+01 : f32
    %791 = vector.broadcast %cst_376 : f32 to vector<16x1xf32>
    %792 = arith.divf %790, %791 : vector<16x1xf32>
    %cst_377 = arith.constant 9.99999996E-13 : f32
    %793 = vector.broadcast %cst_377 : f32 to vector<16x1xf32>
    %794 = arith.addf %792, %793 : vector<16x1xf32>
    %795 = math.rsqrt %794 : vector<16x1xf32>
    %796 = vector.broadcast %795 : vector<16x1xf32> to vector<16x32xf32>
    %797 = arith.mulf %787, %796 : vector<16x32xf32>
    %798 = vector.broadcast %779 : vector<1x32xf32> to vector<16x32xf32>
    %799 = arith.mulf %797, %798 : vector<16x32xf32>
    %800 = vector.broadcast %781 : vector<1x32xf32> to vector<16x32xf32>
    %801 = arith.addf %799, %800 : vector<16x32xf32>
    %c2_378 = arith.constant 2 : index
    %c40_379 = arith.constant 40 : index
    %c0_380 = arith.constant 0 : index
    %802 = vector.load %arg2[%c2_378, %c40_379, %c0_380] : memref<3x80x96xf32, #tpu.memory_space<vmem>>, vector<1x32x96xf32>
    %803 = vector.shape_cast %802 : vector<1x32x96xf32> to vector<32x96xf32>
    %cst_381 = arith.constant dense<0.000000e+00> : vector<16x96xf32>
    %804 = tpu.matmul %801, %803, %cst_381 {dimension_numbers = #tpu.dot_dimension_numbers<[1], [0], [0], [1], [0, 0, 1, 1], [], []>} : vector<16x32xf32>, vector<32x96xf32>, vector<16x96xf32> -> vector<16x96xf32>
    %c2_382 = arith.constant 2 : index
    %c72_383 = arith.constant 72 : index
    %c0_384 = arith.constant 0 : index
    %805 = vector.load %arg2[%c2_382, %c72_383, %c0_384] : memref<3x80x96xf32, #tpu.memory_space<vmem>>, vector<1x1x96xf32>
    %806 = vector.shape_cast %805 : vector<1x1x96xf32> to vector<1x96xf32>
    %807 = vector.broadcast %806 : vector<1x96xf32> to vector<16x96xf32>
    %808 = arith.addf %804, %807 : vector<16x96xf32>
    %809 = vector.shape_cast %808 : vector<16x96xf32> to vector<2x8x96xf32>
    %c2_385 = arith.constant 2 : index
    %c360_386 = arith.constant 360 : index
    %c0_387 = arith.constant 0 : index
    %810 = vector.load %arg1[%c2_385, %c360_386, %c0_387] : memref<3x544x32xf32, #tpu.memory_space<vmem>>, vector<1x32x32xf32>
    %811 = vector.shape_cast %810 : vector<1x32x32xf32> to vector<32x32xf32>
    %c2_388 = arith.constant 2 : index
    %c392_389 = arith.constant 392 : index
    %c0_390 = arith.constant 0 : index
    %812 = vector.load %arg1[%c2_388, %c392_389, %c0_390] : memref<3x544x32xf32, #tpu.memory_space<vmem>>, vector<1x1x32xf32>
    %813 = vector.shape_cast %812 : vector<1x1x32xf32> to vector<1x32xf32>
    %814 = vector.extract_strided_slice %809 {offsets = [0, 0, 0], sizes = [2, 8, 16], strides = [1, 1, 1]} : vector<2x8x96xf32> to vector<2x8x16xf32>
    %815 = vector.extract_strided_slice %809 {offsets = [0, 0, 32], sizes = [2, 8, 16], strides = [1, 1, 1]} : vector<2x8x96xf32> to vector<2x8x16xf32>
    %816 = vector.extract_strided_slice %809 {offsets = [0, 0, 64], sizes = [2, 8, 16], strides = [1, 1, 1]} : vector<2x8x96xf32> to vector<2x8x16xf32>
    %cst_391 = arith.constant dense<0.000000e+00> : vector<2x8x8xf32>
    %817 = tpu.matmul %814, %815, %cst_391 {dimension_numbers = #tpu.dot_dimension_numbers<[2], [2], [1], [1], [0, 0, 0, 1, 1, 1], [0], [0]>} : vector<2x8x16xf32>, vector<2x8x16xf32>, vector<2x8x8xf32> -> vector<2x8x8xf32>
    %cst_392 = arith.constant 2.500000e-01 : f32
    %818 = vector.broadcast %cst_392 : f32 to vector<2x8x8xf32>
    %819 = arith.mulf %817, %818 : vector<2x8x8xf32>
    %820 = vector.shape_cast %5 : vector<1x8xf32> to vector<1x1x8xf32>
    %821 = vector.broadcast %820 : vector<1x1x8xf32> to vector<2x8x8xf32>
    %822 = arith.addf %819, %821 : vector<2x8x8xf32>
    %cst_393 = arith.constant dense<0xFF800000> : vector<2x8xf32>
    %823 = vector.multi_reduction <maximumf>, %822, %cst_393 [2] : vector<2x8x8xf32> to vector<2x8xf32>
    %824 = vector.shape_cast %823 : vector<2x8xf32> to vector<2x8x1xf32>
    %825 = vector.broadcast %824 : vector<2x8x1xf32> to vector<2x8x8xf32>
    %826 = arith.subf %822, %825 : vector<2x8x8xf32>
    %827 = math.exp %826 : vector<2x8x8xf32>
    %cst_394 = arith.constant dense<0.000000e+00> : vector<2x8xf32>
    %828 = vector.multi_reduction <add>, %827, %cst_394 [2] : vector<2x8x8xf32> to vector<2x8xf32>
    %829 = vector.shape_cast %828 : vector<2x8xf32> to vector<2x8x1xf32>
    %830 = tpu.reciprocal %829 {approx = true} : vector<2x8x1xf32> -> vector<2x8x1xf32>
    %831 = vector.broadcast %830 : vector<2x8x1xf32> to vector<2x8x8xf32>
    %832 = arith.mulf %827, %831 : vector<2x8x8xf32>
    %cst_395 = arith.constant dense<0.000000e+00> : vector<2x8x16xf32>
    %833 = tpu.matmul %832, %816, %cst_395 {dimension_numbers = #tpu.dot_dimension_numbers<[2], [1], [1], [2], [0, 0, 0, 1, 1, 2], [0], [0]>} : vector<2x8x8xf32>, vector<2x8x16xf32>, vector<2x8x16xf32> -> vector<2x8x16xf32>
    %834 = vector.shape_cast %833 : vector<2x8x16xf32> to vector<16x16xf32>
    %835 = vector.extract_strided_slice %811 {offsets = [0, 0], sizes = [16, 32], strides = [1, 1]} : vector<32x32xf32> to vector<16x32xf32>
    %cst_396 = arith.constant dense<0.000000e+00> : vector<16x32xf32>
    %836 = tpu.matmul %834, %835, %cst_396 {dimension_numbers = #tpu.dot_dimension_numbers<[1], [0], [0], [1], [0, 0, 1, 1], [], []>} : vector<16x16xf32>, vector<16x32xf32>, vector<16x32xf32> -> vector<16x32xf32>
    %837 = vector.broadcast %813 : vector<1x32xf32> to vector<16x32xf32>
    %838 = arith.addf %837, %836 : vector<16x32xf32>
    %839 = vector.extract_strided_slice %809 {offsets = [0, 0, 16], sizes = [2, 8, 16], strides = [1, 1, 1]} : vector<2x8x96xf32> to vector<2x8x16xf32>
    %840 = vector.extract_strided_slice %809 {offsets = [0, 0, 48], sizes = [2, 8, 16], strides = [1, 1, 1]} : vector<2x8x96xf32> to vector<2x8x16xf32>
    %841 = vector.extract_strided_slice %809 {offsets = [0, 0, 80], sizes = [2, 8, 16], strides = [1, 1, 1]} : vector<2x8x96xf32> to vector<2x8x16xf32>
    %cst_397 = arith.constant dense<0.000000e+00> : vector<2x8x8xf32>
    %842 = tpu.matmul %839, %840, %cst_397 {dimension_numbers = #tpu.dot_dimension_numbers<[2], [2], [1], [1], [0, 0, 0, 1, 1, 1], [0], [0]>} : vector<2x8x16xf32>, vector<2x8x16xf32>, vector<2x8x8xf32> -> vector<2x8x8xf32>
    %cst_398 = arith.constant 2.500000e-01 : f32
    %843 = vector.broadcast %cst_398 : f32 to vector<2x8x8xf32>
    %844 = arith.mulf %842, %843 : vector<2x8x8xf32>
    %845 = vector.shape_cast %5 : vector<1x8xf32> to vector<1x1x8xf32>
    %846 = vector.broadcast %845 : vector<1x1x8xf32> to vector<2x8x8xf32>
    %847 = arith.addf %844, %846 : vector<2x8x8xf32>
    %cst_399 = arith.constant dense<0xFF800000> : vector<2x8xf32>
    %848 = vector.multi_reduction <maximumf>, %847, %cst_399 [2] : vector<2x8x8xf32> to vector<2x8xf32>
    %849 = vector.shape_cast %848 : vector<2x8xf32> to vector<2x8x1xf32>
    %850 = vector.broadcast %849 : vector<2x8x1xf32> to vector<2x8x8xf32>
    %851 = arith.subf %847, %850 : vector<2x8x8xf32>
    %852 = math.exp %851 : vector<2x8x8xf32>
    %cst_400 = arith.constant dense<0.000000e+00> : vector<2x8xf32>
    %853 = vector.multi_reduction <add>, %852, %cst_400 [2] : vector<2x8x8xf32> to vector<2x8xf32>
    %854 = vector.shape_cast %853 : vector<2x8xf32> to vector<2x8x1xf32>
    %855 = tpu.reciprocal %854 {approx = true} : vector<2x8x1xf32> -> vector<2x8x1xf32>
    %856 = vector.broadcast %855 : vector<2x8x1xf32> to vector<2x8x8xf32>
    %857 = arith.mulf %852, %856 : vector<2x8x8xf32>
    %cst_401 = arith.constant dense<0.000000e+00> : vector<2x8x16xf32>
    %858 = tpu.matmul %857, %841, %cst_401 {dimension_numbers = #tpu.dot_dimension_numbers<[2], [1], [1], [2], [0, 0, 0, 1, 1, 2], [0], [0]>} : vector<2x8x8xf32>, vector<2x8x16xf32>, vector<2x8x16xf32> -> vector<2x8x16xf32>
    %859 = vector.shape_cast %858 : vector<2x8x16xf32> to vector<16x16xf32>
    %860 = vector.extract_strided_slice %811 {offsets = [16, 0], sizes = [16, 32], strides = [1, 1]} : vector<32x32xf32> to vector<16x32xf32>
    %cst_402 = arith.constant dense<0.000000e+00> : vector<16x32xf32>
    %861 = tpu.matmul %859, %860, %cst_402 {dimension_numbers = #tpu.dot_dimension_numbers<[1], [0], [0], [1], [0, 0, 1, 1], [], []>} : vector<16x16xf32>, vector<16x32xf32>, vector<16x32xf32> -> vector<16x32xf32>
    %862 = arith.addf %838, %861 : vector<16x32xf32>
    %863 = arith.addf %777, %862 : vector<16x32xf32>
    %c2_403 = arith.constant 2 : index
    %c400_404 = arith.constant 400 : index
    %c0_405 = arith.constant 0 : index
    %864 = vector.load %arg1[%c2_403, %c400_404, %c0_405] : memref<3x544x32xf32, #tpu.memory_space<vmem>>, vector<1x1x32xf32>
    %865 = vector.shape_cast %864 : vector<1x1x32xf32> to vector<1x32xf32>
    %c2_406 = arith.constant 2 : index
    %c408_407 = arith.constant 408 : index
    %c0_408 = arith.constant 0 : index
    %866 = vector.load %arg1[%c2_406, %c408_407, %c0_408] : memref<3x544x32xf32, #tpu.memory_space<vmem>>, vector<1x1x32xf32>
    %867 = vector.shape_cast %866 : vector<1x1x32xf32> to vector<1x32xf32>
    %cst_409 = arith.constant dense<0.000000e+00> : vector<16xf32>
    %868 = vector.multi_reduction <add>, %863, %cst_409 [1] : vector<16x32xf32> to vector<16xf32>
    %869 = vector.shape_cast %868 : vector<16xf32> to vector<16x1xf32>
    %cst_410 = arith.constant 3.200000e+01 : f32
    %870 = vector.broadcast %cst_410 : f32 to vector<16x1xf32>
    %871 = arith.divf %869, %870 : vector<16x1xf32>
    %872 = vector.broadcast %871 : vector<16x1xf32> to vector<16x32xf32>
    %873 = arith.subf %863, %872 : vector<16x32xf32>
    %874 = arith.mulf %873, %873 : vector<16x32xf32>
    %cst_411 = arith.constant dense<0.000000e+00> : vector<16xf32>
    %875 = vector.multi_reduction <add>, %874, %cst_411 [1] : vector<16x32xf32> to vector<16xf32>
    %876 = vector.shape_cast %875 : vector<16xf32> to vector<16x1xf32>
    %cst_412 = arith.constant 3.200000e+01 : f32
    %877 = vector.broadcast %cst_412 : f32 to vector<16x1xf32>
    %878 = arith.divf %876, %877 : vector<16x1xf32>
    %cst_413 = arith.constant 9.99999996E-13 : f32
    %879 = vector.broadcast %cst_413 : f32 to vector<16x1xf32>
    %880 = arith.addf %878, %879 : vector<16x1xf32>
    %881 = math.rsqrt %880 : vector<16x1xf32>
    %882 = vector.broadcast %881 : vector<16x1xf32> to vector<16x32xf32>
    %883 = arith.mulf %873, %882 : vector<16x32xf32>
    %884 = vector.broadcast %865 : vector<1x32xf32> to vector<16x32xf32>
    %885 = arith.mulf %883, %884 : vector<16x32xf32>
    %886 = vector.broadcast %867 : vector<1x32xf32> to vector<16x32xf32>
    %887 = arith.addf %885, %886 : vector<16x32xf32>
    %c2_414 = arith.constant 2 : index
    %c40_415 = arith.constant 40 : index
    %c0_416 = arith.constant 0 : index
    %888 = vector.load %arg3[%c2_414, %c40_415, %c0_416] : memref<3x80x64xf32, #tpu.memory_space<vmem>>, vector<1x32x64xf32>
    %889 = vector.shape_cast %888 : vector<1x32x64xf32> to vector<32x64xf32>
    %cst_417 = arith.constant dense<0.000000e+00> : vector<16x64xf32>
    %890 = tpu.matmul %887, %889, %cst_417 {dimension_numbers = #tpu.dot_dimension_numbers<[1], [0], [0], [1], [0, 0, 1, 1], [], []>} : vector<16x32xf32>, vector<32x64xf32>, vector<16x64xf32> -> vector<16x64xf32>
    %c2_418 = arith.constant 2 : index
    %c72_419 = arith.constant 72 : index
    %c0_420 = arith.constant 0 : index
    %891 = vector.load %arg3[%c2_418, %c72_419, %c0_420] : memref<3x80x64xf32, #tpu.memory_space<vmem>>, vector<1x1x64xf32>
    %892 = vector.shape_cast %891 : vector<1x1x64xf32> to vector<1x64xf32>
    %893 = vector.broadcast %892 : vector<1x64xf32> to vector<16x64xf32>
    %894 = arith.addf %890, %893 : vector<16x64xf32>
    %cst_421 = arith.constant 5.000000e-01 : f32
    %895 = vector.broadcast %cst_421 : f32 to vector<16x64xf32>
    %896 = arith.mulf %895, %894 : vector<16x64xf32>
    %cst_422 = arith.constant 0.707106769 : f32
    %897 = vector.broadcast %cst_422 : f32 to vector<16x64xf32>
    %898 = arith.mulf %894, %897 : vector<16x64xf32>
    %899 = math.erf %898 : vector<16x64xf32>
    %cst_423 = arith.constant 1.000000e+00 : f32
    %900 = vector.broadcast %cst_423 : f32 to vector<16x64xf32>
    %901 = arith.addf %900, %899 : vector<16x64xf32>
    %902 = arith.mulf %896, %901 : vector<16x64xf32>
    %c2_424 = arith.constant 2 : index
    %c416_425 = arith.constant 416 : index
    %c0_426 = arith.constant 0 : index
    %903 = vector.load %arg1[%c2_424, %c416_425, %c0_426] : memref<3x544x32xf32, #tpu.memory_space<vmem>>, vector<1x64x32xf32>
    %904 = vector.shape_cast %903 : vector<1x64x32xf32> to vector<64x32xf32>
    %cst_427 = arith.constant dense<0.000000e+00> : vector<16x32xf32>
    %905 = tpu.matmul %902, %904, %cst_427 {dimension_numbers = #tpu.dot_dimension_numbers<[1], [0], [0], [1], [0, 0, 1, 1], [], []>} : vector<16x64xf32>, vector<64x32xf32>, vector<16x32xf32> -> vector<16x32xf32>
    %906 = arith.addf %863, %905 : vector<16x32xf32>
    %c2_428 = arith.constant 2 : index
    %c480_429 = arith.constant 480 : index
    %c0_430 = arith.constant 0 : index
    %907 = vector.load %arg1[%c2_428, %c480_429, %c0_430] : memref<3x544x32xf32, #tpu.memory_space<vmem>>, vector<1x1x32xf32>
    %908 = vector.shape_cast %907 : vector<1x1x32xf32> to vector<1x32xf32>
    %909 = vector.broadcast %908 : vector<1x32xf32> to vector<16x32xf32>
    %910 = arith.addf %906, %909 : vector<16x32xf32>
    %c2_431 = arith.constant 2 : index
    %c488_432 = arith.constant 488 : index
    %c0_433 = arith.constant 0 : index
    %911 = vector.load %arg1[%c2_431, %c488_432, %c0_433] : memref<3x544x32xf32, #tpu.memory_space<vmem>>, vector<1x1x32xf32>
    %912 = vector.shape_cast %911 : vector<1x1x32xf32> to vector<1x32xf32>
    %c2_434 = arith.constant 2 : index
    %c496_435 = arith.constant 496 : index
    %c0_436 = arith.constant 0 : index
    %913 = vector.load %arg1[%c2_434, %c496_435, %c0_436] : memref<3x544x32xf32, #tpu.memory_space<vmem>>, vector<1x1x32xf32>
    %914 = vector.shape_cast %913 : vector<1x1x32xf32> to vector<1x32xf32>
    %cst_437 = arith.constant dense<0.000000e+00> : vector<16xf32>
    %915 = vector.multi_reduction <add>, %910, %cst_437 [1] : vector<16x32xf32> to vector<16xf32>
    %916 = vector.shape_cast %915 : vector<16xf32> to vector<16x1xf32>
    %cst_438 = arith.constant 3.200000e+01 : f32
    %917 = vector.broadcast %cst_438 : f32 to vector<16x1xf32>
    %918 = arith.divf %916, %917 : vector<16x1xf32>
    %919 = vector.broadcast %918 : vector<16x1xf32> to vector<16x32xf32>
    %920 = arith.subf %910, %919 : vector<16x32xf32>
    %921 = arith.mulf %920, %920 : vector<16x32xf32>
    %cst_439 = arith.constant dense<0.000000e+00> : vector<16xf32>
    %922 = vector.multi_reduction <add>, %921, %cst_439 [1] : vector<16x32xf32> to vector<16xf32>
    %923 = vector.shape_cast %922 : vector<16xf32> to vector<16x1xf32>
    %cst_440 = arith.constant 3.200000e+01 : f32
    %924 = vector.broadcast %cst_440 : f32 to vector<16x1xf32>
    %925 = arith.divf %923, %924 : vector<16x1xf32>
    %cst_441 = arith.constant 9.99999996E-13 : f32
    %926 = vector.broadcast %cst_441 : f32 to vector<16x1xf32>
    %927 = arith.addf %925, %926 : vector<16x1xf32>
    %928 = math.rsqrt %927 : vector<16x1xf32>
    %929 = vector.broadcast %928 : vector<16x1xf32> to vector<16x32xf32>
    %930 = arith.mulf %920, %929 : vector<16x32xf32>
    %931 = vector.broadcast %912 : vector<1x32xf32> to vector<16x32xf32>
    %932 = arith.mulf %930, %931 : vector<16x32xf32>
    %933 = vector.broadcast %914 : vector<1x32xf32> to vector<16x32xf32>
    %934 = arith.addf %932, %933 : vector<16x32xf32>
    %c2_442 = arith.constant 2 : index
    %c504_443 = arith.constant 504 : index
    %c0_444 = arith.constant 0 : index
    %935 = vector.load %arg1[%c2_442, %c504_443, %c0_444] : memref<3x544x32xf32, #tpu.memory_space<vmem>>, vector<1x32x32xf32>
    %936 = vector.shape_cast %935 : vector<1x32x32xf32> to vector<32x32xf32>
    %cst_445 = arith.constant dense<0.000000e+00> : vector<16x32xf32>
    %937 = tpu.matmul %934, %936, %cst_445 {dimension_numbers = #tpu.dot_dimension_numbers<[1], [0], [0], [1], [0, 0, 1, 1], [], []>} : vector<16x32xf32>, vector<32x32xf32>, vector<16x32xf32> -> vector<16x32xf32>
    %c2_446 = arith.constant 2 : index
    %c536_447 = arith.constant 536 : index
    %c0_448 = arith.constant 0 : index
    %938 = vector.load %arg1[%c2_446, %c536_447, %c0_448] : memref<3x544x32xf32, #tpu.memory_space<vmem>>, vector<1x1x32xf32>
    %939 = vector.shape_cast %938 : vector<1x1x32xf32> to vector<1x32xf32>
    %940 = vector.broadcast %939 : vector<1x32xf32> to vector<16x32xf32>
    %941 = arith.addf %937, %940 : vector<16x32xf32>
    %942 = math.tanh %941 : vector<16x32xf32>
    %c64 = arith.constant 64 : index
    %c0_449 = arith.constant 0 : index
    %943 = vector.load %arg4[%c64, %c0_449] : memref<96x6xf32, #tpu.memory_space<vmem>>, vector<32x6xf32>
    %cst_450 = arith.constant dense<0.000000e+00> : vector<16x6xf32>
    %944 = tpu.matmul %942, %943, %cst_450 {dimension_numbers = #tpu.dot_dimension_numbers<[1], [0], [0], [1], [0, 0, 1, 1], [], []>} : vector<16x32xf32>, vector<32x6xf32>, vector<16x6xf32> -> vector<16x6xf32>
    %945 = arith.addf %632, %944 : vector<16x6xf32>
    %c0_451 = arith.constant 0 : index
    %c0_452 = arith.constant 0 : index
    %946 = vector.load %arg5[%c0_451, %c0_452] : memref<1x6xf32, #tpu.memory_space<vmem>>, vector<1x6xf32>
    %947 = vector.broadcast %946 : vector<1x6xf32> to vector<16x6xf32>
    %948 = arith.addf %945, %947 : vector<16x6xf32>
    %c0_453 = arith.constant 0 : index
    %c0_454 = arith.constant 0 : index
    %949 = vector.load %arg6[%c0_453, %c0_454] : memref<16x6xf32, #tpu.memory_space<vmem>>, vector<16x6xf32>
    tpu.vector_store %arg6[%c0_453, %c0_454], %948 {strides = array<i32>} : memref<16x6xf32, #tpu.memory_space<vmem>>, vector<16x6xf32>,
    return
  }
}

</mosaic_0001>

<bundles_post_ra>
// kernel: aoi_vit_multi3.1
= control target key start
LH: loop header
LB: loop body
LE: loop exit
PB: predicated region body
PF: predicated region fallthrough
CT: control target
= control target key end

     0   :  { %v10276_v0 = vmov 0.0|0.0   ;;  %vm55_vm0 = vcmask 523264   ;;  %vm142_vm1 = vcmask 261120   ;;  %vm10278_vm2 = vmmov 0   ;;  %s10279_s21 = smov 96   ;;  %s10281_s22 = smov 64   ;;  %s11949_s1 = inlined_call_operand.vmem [shape: f32[3,544,32], index: 1, kind: input, shape index: {}]   ;;  %s11950_s0 = inlined_call_operand.vmem [shape: f32[3,16,192], index: 0, kind: input, shape index: {}]   ;;  %s11951_s2 = inlined_call_operand.vmem [shape: f32[3,80,96], index: 2, kind: input, shape index: {}]   ;;  %s11952_s3 = inlined_call_operand.vmem [shape: f32[3,80,64], index: 3, kind: input, shape index: {}]   ;;  %s11953_s4 = inlined_call_operand.vmem [shape: f32[96,6], index: 4, kind: input, shape index: {}]   ;;  %s11954_s5 = inlined_call_operand.vmem [shape: f32[1,6], index: 5, kind: input, shape index: {}]   ;;  %s11955_s6 = inlined_call_operand.vmem [shape: f32[16,6], index: 6, kind: output, shape index: {}]  }
   0x1   :  { %9651 = vmatprep.subr.bf16.mxu0 %v10276_v0  ;;  %v31_v1 = vld [vmem:[%s11949_s1] sm:$0xff]  ;;  %v32_v2 = vld [vmem:[%s11949_s1 + $0x8] sm:$0xff]  ;;  %v33_v3 = vld [vmem:[%s11949_s1 + $0x10] sm:$0xff]  ;;  %vm280_vm3 = vcmask 130048   ;;  %vm436_vm5 = vcmask 64512   ;;  %s10282_s23 = smov 80  }
   0x2   :  { %v9652_v4 = vpack.c.bf16 %v32_v2, %v31_v1  ;;  %v34_v5 = vld [vmem:[%s11949_s1 + $0x18] sm:$0xff]  ;;  %v35_v7 = vld [vmem:[%s11949_s1 + $0x20] sm:$0xff]  ;;  %v36_v8 = vld [vmem:[%s11949_s1 + $0x28] sm:$0xff]  ;;  %s10283_s24 = smov 112   ;;  %s10284_s29 = smov 48   ;;  %vm8304_vm6 = vcmask 48128  }
   0x3   :  { %v9655_v6 = vpack.c.bf16 %v34_v5, %v33_v3  ;;  %v9658_v9 = vpack.c.bf16 %v36_v8, %v35_v7  ;;  %v37_v10 = vld [vmem:[%s11949_s1 + $0x30] sm:$0xff]  ;;  %v38_v11 = vld [vmem:[%s11949_s1 + $0x38] sm:$0xff]  ;;  %v28_v12 = vld [vmem:[%s11950_s0 + $0x8] sm:$0xff] }
   0x4   :  { %9653 = vmatpush1.bf16.msra.mxu0 %v9652_v4  ;;  %8311 = vmatprep.mubr.msk.f32.mxu0 %vm55_vm0, %v28_v12  ;;  %v9661_v13 = vpack.c.bf16 %v38_v11, %v37_v10  ;;  %v39_v14 = vld [vmem:[%s11949_s1 + $0x40] sm:$0xff]  ;;  %v40_v15 = vld [vmem:[%s11949_s1 + $0x48] sm:$0xff]  ;;  %v41_v17 = vld [vmem:[%s11949_s1 + $0x50] sm:$0xff] }
   0x5   :  { %9654 = vmatprep.subr.bf16.mxu0 %v10276_v0  ;;  %v9664_v16 = vpack.c.bf16 %v40_v15, %v39_v14  ;;  %v42_v18 = vld [vmem:[%s11949_s1 + $0x58] sm:$0xff]  ;;  %v43_v20 = vld [vmem:[%s11949_s1 + $0x60] sm:$0xff]  ;;  %v44_v21 = vld [vmem:[%s11949_s1 + $0x68] sm:$0xff] }
   0x6   :  { %v9667_v19 = vpack.c.bf16 %v42_v18, %v41_v17  ;;  %v9670_v22 = vpack.c.bf16 %v44_v21, %v43_v20  ;;  %v45_v23 = vld [vmem:[%s11949_s1 + $0x70] sm:$0xff]  ;;  %v46_v24 = vld [vmem:[%s11949_s1 + $0x78] sm:$0xff]  ;;  %v47_v26 = vld [vmem:[%s11949_s1 + $0x80] sm:$0xff] }
   0x7   :  { %v9673_v25 = vpack.c.bf16 %v46_v24, %v45_v23  ;;  %v48_v27 = vld [vmem:[%s11949_s1 + $0x88] sm:$0xff]  ;;  %v49_v29 = vld [vmem:[%s11949_s1 + $0x90] sm:$0xff]  ;;  %v50_v30 = vld [vmem:[%s11949_s1 + $0x98] sm:$0xff] }
   0x8   :  { %9656 = vmatpush1.bf16.msra.mxu0 %v9655_v6  ;;  %v9676_v28 = vpack.c.bf16 %v48_v27, %v47_v26  ;;  %v9679_v31 = vpack.c.bf16 %v50_v30, %v49_v29  ;;  %v51_v32 = vld [vmem:[%s11949_s1 + $0xa0] sm:$0xff]  ;;  %v52_v33 = vld [vmem:[%s11949_s1 + $0xa8] sm:$0xff]  ;;  %v53_v35 = vld [vmem:[%s11949_s1 + $0xb0] sm:$0xff]  ;;  %v23_v27 = vlaneseq  ;;  %v10280_v30 = vmov -1e+30  }
   0x9   :  { %9657 = vmatprep.subr.bf16.mxu0 %v10276_v0  ;;  %v9682_v34 = vpack.c.bf16 %v52_v33, %v51_v32  ;;  %v54_v36 = vld [vmem:[%s11949_s1 + $0xb8] sm:$0xff]  ;;  %v27_v38 = vld [vmem:[%s11950_s0] sm:$0xff]  ;;  %v29_v40 = vld [vmem:[%s11950_s0 + $0x10] sm:$0xff] }
   0xa   :  { %v9685_v37 = vpack.c.bf16 %v54_v36, %v53_v35  ;;  %v30_v39 = vld [vmem:[%s11950_s0 + $0x18] sm:$0xff]  ;;  %v137_v41 = vld [vmem:[%s11949_s1 + $0xc0] sm:$0xff]  ;;  %v183_v61 = vld [vmem:[%s11951_s2 + $0x8] sm:$0xff] }
   0xb   :  { %v182_v60 = vld [vmem:[%s11951_s2] sm:$0xff]  ;;  %v184_v62 = vld [vmem:[%s11951_s2 + $0x10] sm:$0xff]  ;;  %v185_v1 = vld [vmem:[%s11951_s2 + $0x18] sm:$0xff] }
   0xc   :  { %9659 = vmatpush1.bf16.msra.mxu0 %v9658_v9  ;;  %v9687_v63 = vpack.c.bf16 %v183_v61, %v182_v60  ;;  %v9691_v2 = vpack.c.bf16 %v185_v1, %v184_v62  ;;  %v8313_v10 = vld [vmem:[%s11949_s1 + $0xc8] ss:$0 sm:$0xff]  ;;  %v8314_v12 = vld [vmem:[%s11949_s1 + $0xd0] ss:$0 sm:$0xff]  ;;  %v8315_v20 = vld [vmem:[%s11951_s2 + $0x20] ss:$0 sm:$0xff] }
   0xd   :  { %9660 = vmatprep.subr.bf16.mxu0 %v10276_v0 }
   0xe   :  { %9688 = vmatprep.subr.bf16.mxu1 %v9687_v63 }
   0xf   :  { %9690 = vmatpush3.bf16.msra.mxu1 %v9687_v63 }
  0x10   :  { %9662 = vmatpush1.bf16.msra.mxu0 %v9661_v13  ;;  %9692 = vmatprep.subr.bf16.mxu1 %v9691_v2 }
  0x11   :  { %9663 = vmatprep.subr.bf16.mxu0 %v10276_v0 }
  0x13   :  { %9694 = vmatpush3.bf16.msra.mxu1 %v9691_v2 }
  0x14   :  { %9665 = vmatpush1.bf16.msra.mxu0 %v9664_v16 }
  0x15   :  { %9666 = vmatprep.subr.bf16.mxu0 %v10276_v0 }
  0x18   :  { %9668 = vmatpush1.bf16.msra.mxu0 %v9667_v19  ;;  %v10277_v19 = vmov 0.0  }
  0x19   :  { %9669 = vmatprep.subr.bf16.mxu0 %v10276_v0  ;;  %9026 = vmatprep.subr.mxu1 %v10277_v19 }
  0x1c   :  { %9671 = vmatpush1.bf16.msra.mxu0 %v9670_v22 }
  0x1d   :  { %9672 = vmatprep.subr.bf16.mxu0 %v10276_v0 }
  0x20   :  { %9674 = vmatpush1.bf16.msra.mxu0 %v9673_v25 }
  0x21   :  { %9675 = vmatprep.subr.bf16.mxu0 %v10276_v0 }
  0x24   :  { %9677 = vmatpush1.bf16.msra.mxu0 %v9676_v28  ;;  %v24_v28 = vand.u32 127, %v23_v27 }
  0x25   :  { %9678 = vmatprep.subr.bf16.mxu0 %v10276_v0 }
  0x26   :  { %vm25_vm4 = vcmp.lt.s32.totalorder %v24_v28, 5 }
  0x28   :  { %9680 = vmatpush1.bf16.msra.mxu0 %v9679_v31  ;;  %v10479_v31 = vsel %vm25_vm4, 0.0, %v10280_v30 }
  0x29   :  { %9681 = vmatprep.subr.bf16.mxu0 %v10276_v0 }
  0x2c   :  { %9683 = vmatpush1.bf16.msra.mxu0 %v9682_v34 }
  0x2d   :  { %9684 = vmatprep.subr.bf16.mxu0 %v10276_v0 }
  0x30   :  { %9686 = vmatpush1.bf16.msra.mxu0 %v9685_v37 }
  0x33   :  { %127 = vmatmul.mubr.f32.vlgmr.msra.gmra.mrb[0].mxu0 %v27_v38 }
  0x34   :  { %8312 = vmatprep.mubr.msk.f32.mxu0 %vm55_vm0, %v30_v39 }
  0x37   :  { %132 = vmatmul.mubr.f32.gmra.mrb[2].mxu0 %v29_v40 }
 0x106   :  { %v128_v42 = vpop.f32.mrb[0].mxu0 }
 0x107   :  { %v10421_v43 = vadd.f32 %v137_v41, %v128_v42  ;;  %v130_v44 = vpop.f32.mrb[1].mxu0 }
 0x109   :  { %v143_v45 = vsel %vm142_vm1, %v10421_v43, 0.0 }
 0x10a   :  { %144 = vadd.xlane.f32.xlu0 %v143_v45  ;;  %v133_v46 = vpop.f32.mrb[2].mxu0 }
 0x10b   :  { %v10425_v47 = vadd.f32 %v137_v41, %v133_v46  ;;  %v135_v48 = vpop.f32.mrb[3].mxu0 }
 0x10d   :  { %v146_v49 = vsel %vm142_vm1, %v10425_v47, 0.0 }
 0x10e   :  { %147 = vadd.xlane.f32.xlu0 %v146_v49 }
 0x197   :  { %v145_v50 = vpop.xlane.xlu0 %144 }
 0x198   :  { %v150_v51 = vmul.f32 0.03125, %v145_v50 }
 0x19a   :  { %v152_v52 = vsub.f32 %v10421_v43, %v150_v51 }
 0x19b   :  { %v148_v53 = vpop.xlane.xlu0 %147 }
 0x19c   :  { %v151_v54 = vmul.f32 0.03125, %v148_v53  ;;  %v154_v55 = vmul.f32 %v152_v52, %v152_v52 }
 0x19e   :  { %v153_v56 = vsub.f32 %v10425_v47, %v151_v54  ;;  %v156_v57 = vsel %vm142_vm1, %v154_v55, 0.0 }
 0x19f   :  { %157 = vadd.xlane.f32.xlu1 %v156_v57  ;;  %v273_v57 = vld [vmem:[%s11949_s1 + $0xe0] sm:$0xff] }
 0x1a0   :  { %v155_v58 = vmul.f32 %v153_v56, %v153_v56 }
 0x1a2   :  { %v159_v59 = vsel %vm142_vm1, %v155_v58, 0.0 }
 0x1a3   :  { %160 = vadd.xlane.f32.xlu1 %v159_v59 }
 0x22c   :  { %v158_v3 = vpop.xlane.xlu1 %157 }
 0x22d   :  { %v162_v4 = vmul.f32 0.03125, %v158_v3 }
 0x22f   :  { %v164_v5 = vadd.f32 1e-12, %v162_v4 }
 0x230   :  { %v161_v6 = vpop.xlane.xlu1 %160 }
 0x231   :  { %10084 = vrsqrt.f32 %v164_v5  ;;  %v163_v7 = vmul.f32 0.03125, %v161_v6 }
 0x233   :  { %v165_v8 = vadd.f32 1e-12, %v163_v7 }
 0x235   :  { %10086 = vrsqrt.f32 %v165_v8 }
 0x23b   :  { %v10085_v9 = vpop.eup %10084 }
 0x23c   :  { %v168_v11 = vmul.f32 %v10085_v9, %v152_v52 }
 0x23e   :  { %v174_v13 = vmul.f32 %v8313_v10, %v168_v11 }
 0x23f   :  { %v10087_v14 = vpop.eup %10086 }
 0x240   :  { %v169_v15 = vmul.f32 %v10087_v14, %v153_v56  ;;  %v180_v16 = vadd.f32 %v8314_v12, %v174_v13  ;;  %v272_v56 = vld [vmem:[%s11949_s1 + $0xd8] sm:$0xff] }
 0x241   :  { %v9695_v60 = vpack.c.bf16 %v273_v57, %v272_v56 }
 0x242   :  { %v175_v17 = vmul.f32 %v8313_v10, %v169_v15  ;;  %9023 = vmatprep.mubr.msk.f32.mxu1 %vm142_vm1, %v180_v16 }
 0x244   :  { %v181_v18 = vadd.f32 %v8314_v12, %v175_v17 }
 0x246   :  { %9024 = vmatmul.mubr.msk.f32.vlgmr.msra.gmra.mrb[0].mxu1 %vm142_vm1, %v181_v18 }
 0x247   :  { %9028 = vmatprep.mubr.msk.f32.mxu1 %vm10278_vm2, %v10277_v19 }
 0x319   :  { %v9025_v21 = vpop.f32.mrb[0].mxu1 }
 0x31a   :  { %v10459_v22 = vadd.f32 %v9025_v21, %v8315_v20  ;;  %v263_v23 = vpop.f32.mrb[1].mxu1 }
 0x31b   :  { %v10461_v24 = vadd.f32 %v8315_v20, %v263_v23 }
 0x31c   :  { %356 = vrot.lane.b32.xlu1 %v10459_v22, %s10279_s21 }
 0x31d   :  { %278 = vrot.lane.b32.xlu0 %v10461_v24, %s10279_s21 }
 0x38e   :  { %v357_v26 = vpop.permute.xlu1 %356 }
 0x38f   :  { %v279_v25 = vpop.permute.xlu0 %278 }
 0x390   :  { %9027 = vmatpush3.xpose.msk.msra.mxu1 %vm280_vm3, %v279_v25 }
 0x391   :  { %9031 = vmatprep.subr.mxu1 %v10277_v19 }
 0x393   :  { %9029 = vmatmul.mubr.msk.f32.vlgmr.msra.gmra.mrb[2].mxu1 %vm280_vm3, %v10461_v24 }
 0x394   :  { %9032 = vmatpush3.xpose.msk.msra.mxu1 %vm280_vm3, %v357_v26  ;;  %9033 = vmatprep.mubr.msk.f32.mxu1 %vm10278_vm2, %v10277_v19 }
 0x395   :  { %9036 = vmatprep.subr.mxu1 %v10277_v19 }
 0x397   :  { %9034 = vmatmul.mubr.msk.f32.vlgmr.msra.gmra.mrb[4].mxu1 %vm280_vm3, %v10459_v22 }
 0x398   :  { %9038 = vmatprep.mubr.msk.f32.mxu1 %vm10278_vm2, %v10277_v19 }
 0x466   :  { %v351_v29 = vpop.f32.mrb[2].mxu1 }
 0x467   :  { %v432_v32 = vmul.f32 0.25, %v351_v29  ;;  %v9030_v33 = vpop.f32.mrb[3].mxu1 }
 0x469   :  { %v434_v34 = vadd.f32 %v432_v32, %v10479_v31 }
 0x46a   :  { %v428_v35 = vpop.f32.mrb[4].mxu1 }
 0x46b   :  { %v433_v36 = vmul.f32 0.25, %v428_v35  ;;  %v9035_v37 = vpop.f32.mrb[5].mxu1  ;;  %v437_v38 = vsel %vm436_vm5, %v434_v34, -inf }
 0x46c   :  { %438 = vmax.xlane.f32.xlu1 %v437_v38 }
 0x46d   :  { %v435_v39 = vadd.f32 %v433_v36, %v10479_v31 }
 0x46f   :  { %v440_v40 = vsel %vm436_vm5, %v435_v39, -inf }
 0x470   :  { %441 = vmax.xlane.f32.xlu0 %v440_v40  ;;  %v275_v40 = vld [vmem:[%s11949_s1 + $0xf0] sm:$0xff] }
 0x4f9   :  { %v439_v41 = vpop.xlane.xlu1 %438 }
 0x4fa   :  { %v443_v42 = vsub.f32 %v434_v34, %v439_v41 }
 0x4fc   :  { %v445_v44 = vmul.f32 1.442695, %v443_v42 }
 0x4fd   :  { %v442_v45 = vpop.xlane.xlu0 %441 }
 0x4fe   :  { %10088 = vpow2.f32 %v445_v44  ;;  %v444_v46 = vsub.f32 %v435_v39, %v442_v45 }
 0x500   :  { %v447_v48 = vmul.f32 1.442695, %v444_v46 }
 0x502   :  { %10090 = vpow2.f32 %v447_v48  ;;  %v8326_v48 = vld [vmem:[%s11949_s1 + $0xf8] ss:$0 sm:$0xff] }
 0x508   :  { %v10089_v49 = vpop.eup %10088 }
 0x509   :  { %v449_v50 = vsel %vm436_vm5, %v10089_v49, 0.0 }
 0x50a   :  { %450 = vadd.xlane.f32.xlu0 %v449_v50 }
 0x50c   :  { %v10091_v51 = vpop.eup %10090 }
 0x50d   :  { %v452_v52 = vsel %vm436_vm5, %v10091_v51, 0.0 }
 0x50e   :  { %453 = vadd.xlane.f32.xlu1 %v452_v52 }
 0x51f   :  { %535 = vrot.lane.b32.xlu1 %v10459_v22, %s10281_s22 }
 0x520   :  { %459 = vrot.lane.b32.xlu0 %v10461_v24, %s10281_s22 }
 0x523   :  { %700 = vrot.lane.b32.xlu1 %v10461_v24, %s10282_s23 }
 0x524   :  { %778 = vrot.lane.b32.xlu0 %v10459_v22, %s10282_s23 }
 0x527   :  { %698 = vrot.lane.b32.xlu1 %v10461_v24, %s10283_s24 }
 0x52b   :  { %776 = vrot.lane.b32.xlu1 %v10459_v22, %s10283_s24 }
 0x597   :  { %v451_v53 = vpop.xlane.xlu0 %450 }
 0x598   :  { %10092 = vrcp.f32 %v451_v53 }
 0x59b   :  { %v454_v54 = vpop.xlane.xlu1 %453  ;;  %v460_v55 = vpop.permute.xlu0 %459 }
 0x59c   :  { %10094 = vrcp.f32 %v454_v54  ;;  %9037 = vmatpush3.msra.mxu1 %v460_v55 }
 0x59d   :  { %9041 = vmatprep.subr.mxu1 %v10277_v19 }
 0x59f   :  { %v536_v61 = vpop.permute.xlu1 %535  ;;  %v779_v7 = vpop.permute.xlu0 %778 }
 0x5a2   :  { %v10093_v58 = vpop.eup %10092 }
 0x5a3   :  { %v457_v59 = vmul.f32 %v10093_v58, %v10089_v49  ;;  %v701_v1 = vpop.permute.xlu1 %700 }
 0x5a5   :  { %9039 = vmatmul.mubr.msk.f32.vlgmr.msra.gmra.mrb[6].mxu1 %vm436_vm5, %v457_v59 }
 0x5a6   :  { %v10095_v62 = vpop.eup %10094  ;;  %9042 = vmatpush3.msra.mxu1 %v536_v61  ;;  %9043 = vmatprep.mubr.msk.f32.mxu1 %vm10278_vm2, %v10277_v19 }
 0x5a7   :  { %v458_v63 = vmul.f32 %v10095_v62, %v10091_v51  ;;  %9696 = vmatprep.subr.bf16.mxu1 %v9695_v60  ;;  %v699_v6 = vpop.permute.xlu1 %698 }
 0x5a9   :  { %9044 = vmatmul.mubr.msk.f32.vlgmr.msra.gmra.mrb[8].mxu1 %vm436_vm5, %v458_v63 }
 0x5aa   :  { %9698 = vmatpush3.bf16.msra.mxu1 %v9695_v60 }
 0x5ab   :  { %9053 = vmatprep.subr.mxu1 %v10277_v19  ;;  %v777_v8 = vpop.permute.xlu1 %776 }
 0x678   :  { %v531_v2 = vpop.f32.mrb[6].mxu1 }
 0x679   :  { %v9040_v3 = vpop.f32.mrb[7].mxu1  ;;  %9050 = vmatprep.mubr.msk.f32.mxu1 %vm280_vm3, %v531_v2  ;;  %v1157_v2 = vld [vmem:[%s11952_s3] sm:$0xff] }
 0x67a   :  { %v1158_v3 = vld [vmem:[%s11952_s3 + $0x8] sm:$0xff] }
 0x67c   :  { %v607_v4 = vpop.f32.mrb[8].mxu1 }
 0x67d   :  { %v9045_v5 = vpop.f32.mrb[9].mxu1  ;;  %9051 = vmatmul.mubr.msk.f32.vlgmr.msra.gmra.mrb[10].mxu1 %vm280_vm3, %v607_v4  ;;  %v1159_v4 = vld [vmem:[%s11952_s3 + $0x10] sm:$0xff] }
 0x67e   :  { %9054 = vmatpush3.xpose.msk.msra.mxu1 %vm280_vm3, %v701_v1  ;;  %9055 = vmatprep.mubr.msk.f32.mxu1 %vm10278_vm2, %v10277_v19  ;;  %v9703_v5 = vpack.c.bf16 %v1158_v3, %v1157_v2 }
 0x67f   :  { %9058 = vmatprep.subr.mxu1 %v10277_v19 }
 0x680   :  { %9704 = vmatprep.subr.bf16.mxu0 %v9703_v5 }
 0x681   :  { %9056 = vmatmul.mubr.msk.f32.vlgmr.msra.gmra.mrb[12].mxu1 %vm280_vm3, %v699_v6  ;;  %v1160_v6 = vld [vmem:[%s11952_s3 + $0x18] sm:$0xff]  ;;  %9706 = vmatpush3.bf16.msra.mxu0 %v9703_v5 }
 0x682   :  { %9059 = vmatpush3.xpose.msk.msra.mxu1 %vm280_vm3, %v779_v7  ;;  %9060 = vmatprep.mubr.msk.f32.mxu1 %vm10278_vm2, %v10277_v19  ;;  %v9707_v7 = vpack.c.bf16 %v1160_v6, %v1159_v4 }
 0x683   :  { %9063 = vmatprep.subr.mxu1 %v10277_v19 }
 0x684   :  { %9708 = vmatprep.subr.bf16.mxu0 %v9707_v7 }
 0x685   :  { %9061 = vmatmul.mubr.msk.f32.vlgmr.msra.gmra.mrb[14].mxu1 %vm280_vm3, %v777_v8  ;;  %9710 = vmatpush3.bf16.msra.mxu0 %v9707_v7 }
 0x686   :  { %9065 = vmatprep.mubr.msk.f32.mxu1 %vm10278_vm2, %v10277_v19 }
 0x754   :  { %v772_v9 = vpop.f32.mrb[12].mxu1 }
 0x755   :  { %v854_v10 = vmul.f32 0.25, %v772_v9  ;;  %v9057_v11 = vpop.f32.mrb[13].mxu1 }
 0x757   :  { %v856_v12 = vadd.f32 %v854_v10, %v10479_v31 }
 0x758   :  { %v850_v13 = vpop.f32.mrb[14].mxu1 }
 0x759   :  { %v855_v14 = vmul.f32 0.25, %v850_v13  ;;  %v9062_v15 = vpop.f32.mrb[15].mxu1  ;;  %v858_v16 = vsel %vm436_vm5, %v856_v12, -inf }
 0x75a   :  { %859 = vmax.xlane.f32.xlu0 %v858_v16  ;;  %v8335_v15 = vld [vmem:[%s11949_s1 + $0x100] ss:$0 sm:$0xff] }
 0x75b   :  { %v857_v17 = vadd.f32 %v855_v14, %v10479_v31 }
 0x75d   :  { %v861_v18 = vsel %vm436_vm5, %v857_v17, -inf }
 0x75e   :  { %862 = vmax.xlane.f32.xlu1 %v861_v18 }
 0x76f   :  { %956 = vrot.lane.b32.xlu1 %v10459_v22, %s10284_s29 }
 0x7e7   :  { %v860_v20 = vpop.xlane.xlu0 %859 }
 0x7e8   :  { %v864_v21 = vsub.f32 %v856_v12, %v860_v20  ;;  %v8336_v20 = vld [vmem:[%s11949_s1 + $0x108] ss:$0 sm:$0xff] }
 0x7ea   :  { %v866_v23 = vmul.f32 1.442695, %v864_v21 }
 0x7eb   :  { %v863_v25 = vpop.xlane.xlu1 %862 }
 0x7ec   :  { %10096 = vpow2.f32 %v866_v23  ;;  %v865_v26 = vsub.f32 %v857_v17, %v863_v25 }
 0x7ee   :  { %v868_v27 = vmul.f32 1.442695, %v865_v26 }
 0x7ef   :  { %v957_v37 = vpop.permute.xlu1 %956 }
 0x7f0   :  { %10098 = vpow2.f32 %v868_v27  ;;  %v1257_v27 = vld [vmem:[%s11949_s1 + $0x110] sm:$0xff] }
 0x7f6   :  { %v10097_v28 = vpop.eup %10096 }
 0x7f7   :  { %v870_v29 = vsel %vm436_vm5, %v10097_v28, 0.0 }
 0x7f8   :  { %871 = vadd.xlane.f32.xlu0 %v870_v29 }
 0x7fa   :  { %v10099_v30 = vpop.eup %10098 }
 0x7fb   :  { %v873_v32 = vsel %vm436_vm5, %v10099_v30, 0.0 }
 0x7fc   :  { %874 = vadd.xlane.f32.xlu0 %v873_v32  ;;  %v1260_v32 = vld [vmem:[%s11949_s1 + $0x128] sm:$0xff] }
 0x812   :  { %880 = vrot.lane.b32.xlu0 %v10461_v24, %s10284_s29  ;;  %v274_v24 = vld [vmem:[%s11949_s1 + $0xe8] sm:$0xff] }
 0x813   :  { %v9699_v41 = vpack.c.bf16 %v275_v40, %v274_v24 }
 0x885   :  { %v872_v22 = vpop.xlane.xlu0 %871 }
 0x886   :  { %10100 = vrcp.f32 %v872_v22 }
 0x889   :  { %v875_v33 = vpop.xlane.xlu0 %874 }
 0x88a   :  { %10102 = vrcp.f32 %v875_v33  ;;  %v1261_v33 = vld [vmem:[%s11949_s1 + $0x130] sm:$0xff] }
 0x88d   :  { %v881_v34 = vpop.permute.xlu0 %880 }
 0x88e   :  { %9064 = vmatpush3.msra.mxu1 %v881_v34  ;;  %v1262_v34 = vld [vmem:[%s11949_s1 + $0x138] sm:$0xff] }
 0x88f   :  { %9068 = vmatprep.subr.mxu1 %v10277_v19 }
 0x890   :  { %v10101_v35 = vpop.eup %10100 }
 0x891   :  { %v878_v36 = vmul.f32 %v10101_v35, %v10097_v28  ;;  %v1258_v28 = vld [vmem:[%s11949_s1 + $0x118] sm:$0xff]  ;;  %v9719_v35 = vpack.c.bf16 %v1262_v34, %v1261_v33  ;;  %v8345_v34 = vld [vmem:[%s11951_s2 + $0x48] ss:$0 sm:$0xff] }
 0x892   :  { %v9711_v29 = vpack.c.bf16 %v1258_v28, %v1257_v27 }
 0x893   :  { %9066 = vmatmul.mubr.msk.f32.vlgmr.msra.gmra.mrb[16].mxu1 %vm436_vm5, %v878_v36  ;;  %v1263_v36 = vld [vmem:[%s11949_s1 + $0x140] sm:$0xff] }
 0x894   :  { %v10103_v38 = vpop.eup %10102  ;;  %9069 = vmatpush3.msra.mxu1 %v957_v37  ;;  %9070 = vmatprep.mubr.msk.f32.mxu1 %vm10278_vm2, %v10277_v19  ;;  %v1264_v37 = vld [vmem:[%s11949_s1 + $0x148] sm:$0xff] }
 0x895   :  { %v879_v39 = vmul.f32 %v10103_v38, %v10099_v30  ;;  %9700 = vmatprep.subr.bf16.mxu1 %v9699_v41  ;;  %v1259_v30 = vld [vmem:[%s11949_s1 + $0x120] sm:$0xff]  ;;  %v9723_v38 = vpack.c.bf16 %v1264_v37, %v1263_v36 }
 0x896   :  { %v9715_v22 = vpack.c.bf16 %v1260_v32, %v1259_v30 }
 0x897   :  { %9071 = vmatmul.mubr.msk.f32.vlgmr.msra.gmra.mrb[18].mxu1 %vm436_vm5, %v879_v39  ;;  %v8337_v39 = vld [vmem:[%s11952_s3 + $0x20] ss:$0 sm:$0xff] }
 0x898   :  { %9702 = vmatpush3.bf16.msra.mxu1 %v9699_v41 }
 0x899   :  { %9712 = vmatprep.subr.bf16.mxu1 %v9711_v29 }
 0x966   :  { %v952_v42 = vpop.f32.mrb[16].mxu1 }
 0x967   :  { %v9067_v44 = vpop.f32.mrb[17].mxu1  ;;  %9077 = vmatprep.mubr.msk.f32.mxu1 %vm280_vm3, %v952_v42 }
 0x96a   :  { %v1028_v45 = vpop.f32.mrb[18].mxu1 }
 0x96b   :  { %v9072_v46 = vpop.f32.mrb[19].mxu1  ;;  %9078 = vmatmul.mubr.msk.f32.vlgmr.msra.gmra.mrb[10].mxu1 %vm280_vm3, %v1028_v45 }
 0x96c   :  { %9714 = vmatpush3.bf16.msra.mxu1 %v9711_v29  ;;  %v8344_v29 = vld [vmem:[%s11949_s1 + $0x160] ss:$0 sm:$0xff] }
 0x96d   :  { %9716 = vmatprep.subr.bf16.mxu1 %v9715_v22 }
 0x970   :  { %9718 = vmatpush3.bf16.msra.mxu1 %v9715_v22 }
 0x971   :  { %9720 = vmatprep.subr.bf16.mxu1 %v9719_v35 }
 0x974   :  { %9722 = vmatpush3.bf16.msra.mxu1 %v9719_v35 }
 0x975   :  { %9724 = vmatprep.subr.bf16.mxu1 %v9723_v38 }
 0x978   :  { %9726 = vmatpush3.bf16.msra.mxu1 %v9723_v38 }
 0x979   :  { %9126 = vmatprep.subr.mxu1 %v10277_v19 }
 0xa3e   :  { %v9079_v49 = vpop.f32.mrb[10].mxu1 }
 0xa3f   :  { %v10047_v50 = vadd.f32 %v9079_v49, %v8326_v48  ;;  %v1104_v51 = vpop.f32.mrb[11].mxu1 }
 0xa40   :  { %v10048_v52 = vadd.f32 %v8326_v48, %v1104_v51 }
 0xa41   :  { %v10552_v53 = vadd.f32 %v10047_v50, %v10425_v47 }
 0xa42   :  { %v10555_v54 = vadd.f32 %v10048_v52, %v10421_v43 }
 0xa43   :  { %v1122_v55 = vsel %vm142_vm1, %v10552_v53, 0.0 }
 0xa44   :  { %1123 = vadd.xlane.f32.xlu0 %v1122_v55  ;;  %v1119_v56 = vsel %vm142_vm1, %v10555_v54, 0.0 }
 0xa45   :  { %1120 = vadd.xlane.f32.xlu1 %v1119_v56 }
 0xad1   :  { %v1124_v57 = vpop.xlane.xlu0 %1123 }
 0xad2   :  { %v1126_v58 = vmul.f32 0.03125, %v1124_v57  ;;  %v1121_v59 = vpop.xlane.xlu1 %1120 }
 0xad3   :  { %v1125_v60 = vmul.f32 0.03125, %v1121_v59 }
 0xad4   :  { %v1128_v61 = vsub.f32 %v10552_v53, %v1126_v58  ;;  %v8342_v58 = vld [vmem:[%s11949_s1 + $0x150] ss:$0 sm:$0xff] }
 0xad5   :  { %v1127_v47 = vsub.f32 %v10555_v54, %v1125_v60 }
 0xad6   :  { %v1130_v62 = vmul.f32 %v1128_v61, %v1128_v61 }
 0xad7   :  { %v1129_v63 = vmul.f32 %v1127_v47, %v1127_v47 }
 0xad8   :  { %v1134_v43 = vsel %vm142_vm1, %v1130_v62, 0.0 }
 0xad9   :  { %1135 = vadd.xlane.f32.xlu1 %v1134_v43  ;;  %v1131_v1 = vsel %vm142_vm1, %v1129_v63, 0.0 }
 0xada   :  { %1132 = vadd.xlane.f32.xlu0 %v1131_v1 }
 0xb66   :  { %v1136_v8 = vpop.xlane.xlu1 %1135 }
 0xb67   :  { %v1138_v9 = vmul.f32 0.03125, %v1136_v8  ;;  %v1133_v10 = vpop.xlane.xlu0 %1132 }
 0xb68   :  { %v1137_v11 = vmul.f32 0.03125, %v1133_v10  ;;  %v1396_v10 = vld [vmem:[%s11951_s2 + $0x30] sm:$0xff] }
 0xb69   :  { %v1140_v12 = vadd.f32 1e-12, %v1138_v9  ;;  %v1395_v9 = vld [vmem:[%s11951_s2 + $0x28] sm:$0xff] }
 0xb6a   :  { %v1139_v13 = vadd.f32 1e-12, %v1137_v11  ;;  %v1397_v11 = vld [vmem:[%s11951_s2 + $0x38] sm:$0xff] }
 0xb6b   :  { %10104 = vrsqrt.f32 %v1140_v12  ;;  %v9727_v12 = vpack.c.bf16 %v1396_v10, %v1395_v9 }
 0xb6c   :  { %10106 = vrsqrt.f32 %v1139_v13  ;;  %v1398_v13 = vld [vmem:[%s11951_s2 + $0x40] sm:$0xff] }
 0xb6d   :  { %9728 = vmatprep.subr.bf16.mxu0 %v9727_v12 }
 0xb75   :  { %v10105_v14 = vpop.eup %10104 }
 0xb76   :  { %v10107_v16 = vpop.eup %10106  ;;  %v1144_v17 = vmul.f32 %v10105_v14, %v1128_v61  ;;  %v9731_v14 = vpack.c.bf16 %v1398_v13, %v1397_v11 }
 0xb77   :  { %v1143_v18 = vmul.f32 %v10107_v16, %v1127_v47 }
 0xb78   :  { %v1150_v21 = vmul.f32 %v8335_v15, %v1144_v17 }
 0xb79   :  { %v1149_v23 = vmul.f32 %v8335_v15, %v1143_v18 }
 0xb7a   :  { %v1156_v26 = vadd.f32 %v8336_v20, %v1150_v21 }
 0xb7b   :  { %v1155_v25 = vadd.f32 %v8336_v20, %v1149_v23 }
 0xb7d   :  { %9088 = vmatprep.mubr.msk.f32.mxu0 %vm142_vm1, %v1155_v25  ;;  %v8343_v25 = vld [vmem:[%s11949_s1 + $0x158] ss:$0 sm:$0xff] }
 0xb7e   :  { %9089 = vmatmul.mubr.msk.f32.vlgmr.msra.gmra.mrb[4].mxu0 %vm142_vm1, %v1156_v26 }
 0xb7f   :  { %9730 = vmatpush3.bf16.msra.mxu0 %v9727_v12 }
 0xb80   :  { %9732 = vmatprep.subr.bf16.mxu0 %v9731_v14 }
 0xb83   :  { %9734 = vmatpush3.bf16.msra.mxu0 %v9731_v14 }
 0xb84   :  { %9121 = vmatprep.subr.mxu0 %v10277_v19 }
 0xc51   :  { %v9090_v24 = vpop.f32.mrb[4].mxu0 }
 0xc52   :  { %v1244_v40 = vadd.f32 %v9090_v24, %v8337_v39  ;;  %v1238_v41 = vpop.f32.mrb[5].mxu0 }
 0xc53   :  { %v1239_v42 = vadd.f32 %v8337_v39, %v1238_v41 }
 0xc54   :  { %v1250_v44 = vmul.f32 0.70710677, %v1244_v40  ;;  %v1248_v52 = vmul.f32 0.5, %v1244_v40 }
 0xc55   :  { %v1249_v45 = vmul.f32 0.70710677, %v1239_v42  ;;  %v1247_v50 = vmul.f32 0.5, %v1239_v42 }
 0xc56   :  { %10108 = verf.f32 %v1250_v44 }
 0xc57   :  { %10110 = verf.f32 %v1249_v45 }
 0xc60   :  { %v10109_v46 = vpop.eup %10108 }
 0xc61   :  { %v10111_v48 = vpop.eup %10110  ;;  %v1254_v49 = vadd.f32 1.0, %v10109_v46 }
 0xc62   :  { %v1253_v51 = vadd.f32 1.0, %v10111_v48 }
 0xc63   :  { %v1256_v56 = vmul.f32 %v1254_v49, %v1248_v52 }
 0xc64   :  { %v1255_v55 = vmul.f32 %v1253_v51, %v1247_v50 }
 0xc66   :  { %9107 = vmatprep.mubr.msk.f32.mxu1 %vm55_vm0, %v1255_v55 }
 0xc67   :  { %9108 = vmatmul.mubr.msk.f32.vlgmr.msra.gmra.mrb[20].mxu1 %vm55_vm0, %v1256_v56 }
 0xc68   :  { %9128 = vmatprep.mubr.msk.f32.mxu1 %vm10278_vm2, %v10277_v19 }
 0xd3a   :  { %v9109_v57 = vpop.f32.mrb[20].mxu1 }
 0xd3b   :  { %v1347_v59 = vadd.f32 %v9109_v57, %v10552_v53  ;;  %v1337_v60 = vpop.f32.mrb[21].mxu1 }
 0xd3c   :  { %v1346_v61 = vadd.f32 %v1337_v60, %v10555_v54 }
 0xd3d   :  { %v10622_v47 = vadd.f32 %v8342_v58, %v1347_v59 }
 0xd3e   :  { %v10624_v62 = vadd.f32 %v8342_v58, %v1346_v61 }
 0xd3f   :  { %v1360_v63 = vsel %vm142_vm1, %v10622_v47, 0.0 }
 0xd40   :  { %1361 = vadd.xlane.f32.xlu1 %v1360_v63  ;;  %v1357_v43 = vsel %vm142_vm1, %v10624_v62, 0.0 }
 0xd41   :  { %1358 = vadd.xlane.f32.xlu0 %v1357_v43 }
 0xdcd   :  { %v1362_v1 = vpop.xlane.xlu1 %1361 }
 0xdce   :  { %v1364_v2 = vmul.f32 0.03125, %v1362_v1  ;;  %v1359_v3 = vpop.xlane.xlu0 %1358 }
 0xdcf   :  { %v1363_v4 = vmul.f32 0.03125, %v1359_v3  ;;  %v1486_v3 = vld [vmem:[%s11949_s1 + $0x170] sm:$0xff] }
 0xdd0   :  { %v1366_v53 = vsub.f32 %v10622_v47, %v1364_v2  ;;  %v1485_v2 = vld [vmem:[%s11949_s1 + $0x168] sm:$0xff] }
 0xdd1   :  { %v1365_v54 = vsub.f32 %v10624_v62, %v1363_v4 }
 0xdd2   :  { %v1368_v5 = vmul.f32 %v1366_v53, %v1366_v53 }
 0xdd3   :  { %v1367_v6 = vmul.f32 %v1365_v54, %v1365_v54 }
 0xdd4   :  { %v1372_v7 = vsel %vm142_vm1, %v1368_v5, 0.0 }
 0xdd5   :  { %1373 = vadd.xlane.f32.xlu1 %v1372_v7  ;;  %v1369_v8 = vsel %vm142_vm1, %v1367_v6, 0.0 }
 0xdd6   :  { %1370 = vadd.xlane.f32.xlu0 %v1369_v8 }
 0xe62   :  { %v1374_v15 = vpop.xlane.xlu1 %1373 }
 0xe63   :  { %v1376_v16 = vmul.f32 0.03125, %v1374_v15  ;;  %v1371_v17 = vpop.xlane.xlu0 %1370 }
 0xe64   :  { %v1375_v18 = vmul.f32 0.03125, %v1371_v17 }
 0xe65   :  { %v1378_v20 = vadd.f32 1e-12, %v1376_v16 }
 0xe66   :  { %v1377_v21 = vadd.f32 1e-12, %v1375_v18 }
 0xe67   :  { %10112 = vrsqrt.f32 %v1378_v20 }
 0xe68   :  { %10114 = vrsqrt.f32 %v1377_v21 }
 0xe71   :  { %v10113_v23 = vpop.eup %10112 }
 0xe72   :  { %v10115_v26 = vpop.eup %10114  ;;  %v1382_v27 = vmul.f32 %v10113_v23, %v1366_v53  ;;  %v9735_v53 = vpack.c.bf16 %v1486_v3, %v1485_v2 }
 0xe73   :  { %v1381_v28 = vmul.f32 %v10115_v26, %v1365_v54 }
 0xe74   :  { %v1388_v30 = vmul.f32 %v8343_v25, %v1382_v27 }
 0xe75   :  { %v1387_v32 = vmul.f32 %v8343_v25, %v1381_v28 }
 0xe76   :  { %v1394_v33 = vadd.f32 %v8344_v29, %v1388_v30 }
 0xe77   :  { %v1393_v22 = vadd.f32 %v8344_v29, %v1387_v32 }
 0xe79   :  { %9118 = vmatprep.mubr.msk.f32.mxu0 %vm142_vm1, %v1393_v22 }
 0xe7a   :  { %9119 = vmatmul.mubr.msk.f32.vlgmr.msra.gmra.mrb[6].mxu0 %vm142_vm1, %v1394_v33 }
 0xe7b   :  { %9123 = vmatprep.mubr.msk.f32.mxu0 %vm10278_vm2, %v10277_v19 }
 0xf4d   :  { %v9120_v35 = vpop.f32.mrb[6].mxu0 }
 0xf4e   :  { %v10660_v36 = vadd.f32 %v9120_v35, %v8345_v34  ;;  %v1476_v37 = vpop.f32.mrb[7].mxu0 }
 0xf4f   :  { %v10662_v38 = vadd.f32 %v8345_v34, %v1476_v37 }
 0xf50   :  { %1568 = vrot.lane.b32.xlu1 %v10660_v36, %s10279_s21 }
 0xf51   :  { %1491 = vrot.lane.b32.xlu0 %v10662_v38, %s10279_s21 }
 0xfc2   :  { %v1569_v39 = vpop.permute.xlu1 %1568 }
 0xfc3   :  { %9127 = vmatpush3.xpose.msk.msra.mxu1 %vm280_vm3, %v1569_v39  ;;  %v1492_v24 = vpop.permute.xlu0 %1491 }
 0xfc4   :  { %9122 = vmatpush3.xpose.msk.msra.mxu0 %vm280_vm3, %v1492_v24  ;;  %9136 = vmatprep.subr.mxu1 %v10277_v19 }
 0xfc5   :  { %9131 = vmatprep.subr.mxu0 %v10277_v19 }
 0xfc6   :  { %9129 = vmatmul.mubr.msk.f32.vlgmr.msra.gmra.mrb[22].mxu1 %vm280_vm3, %v10660_v36 }
 0xfc7   :  { %9124 = vmatmul.mubr.msk.f32.vlgmr.msra.gmra.mrb[8].mxu0 %vm280_vm3, %v10662_v38  ;;  %9138 = vmatprep.mubr.msk.f32.mxu1 %vm10278_vm2, %v10277_v19 }
 0xfc8   :  { %9133 = vmatprep.mubr.msk.f32.mxu0 %vm10278_vm2, %v10277_v19 }
0x1099   :  { %v1640_v40 = vpop.f32.mrb[22].mxu1 }
0x109a   :  { %v1645_v41 = vmul.f32 0.25, %v1640_v40  ;;  %v1563_v42 = vpop.f32.mrb[8].mxu0  ;;  %v9130_v44 = vpop.f32.mrb[23].mxu1 }
0x109b   :  { %v1644_v45 = vmul.f32 0.25, %v1563_v42  ;;  %v9125_v46 = vpop.f32.mrb[9].mxu0 }
0x109c   :  { %v1647_v48 = vadd.f32 %v1645_v41, %v10479_v31 }
0x109d   :  { %v1646_v49 = vadd.f32 %v1644_v45, %v10479_v31 }
0x109e   :  { %v1651_v50 = vsel %vm436_vm5, %v1647_v48, -inf }
0x109f   :  { %1652 = vmax.xlane.f32.xlu0 %v1651_v50  ;;  %v1648_v51 = vsel %vm436_vm5, %v1646_v49, -inf }
0x10a0   :  { %1649 = vmax.xlane.f32.xlu1 %v1648_v51  ;;  %v1487_v51 = vld [vmem:[%s11949_s1 + $0x178] sm:$0xff] }
0x112c   :  { %v1653_v52 = vpop.xlane.xlu0 %1652 }
0x112d   :  { %v1655_v55 = vsub.f32 %v1647_v48, %v1653_v52  ;;  %v1650_v56 = vpop.xlane.xlu1 %1649 }
0x112e   :  { %v1654_v57 = vsub.f32 %v1646_v49, %v1650_v56 }
0x112f   :  { %v1658_v58 = vmul.f32 1.442695, %v1655_v55 }
0x1130   :  { %v1656_v59 = vmul.f32 1.442695, %v1654_v57 }
0x1131   :  { %10116 = vpow2.f32 %v1658_v58 }
0x1132   :  { %10118 = vpow2.f32 %v1656_v59  ;;  %v8356_v59 = vld [vmem:[%s11949_s1 + $0x188] ss:$0 sm:$0xff] }
0x113b   :  { %v10117_v60 = vpop.eup %10116 }
0x113c   :  { %v10119_v61 = vpop.eup %10118  ;;  %v1663_v63 = vsel %vm436_vm5, %v10117_v60, 0.0 }
0x113d   :  { %1664 = vadd.xlane.f32.xlu1 %v1663_v63  ;;  %v1660_v43 = vsel %vm436_vm5, %v10119_v61, 0.0 }
0x113e   :  { %1661 = vadd.xlane.f32.xlu0 %v1660_v43 }
0x114e   :  { %1746 = vrot.lane.b32.xlu1 %v10660_v36, %s10281_s22 }
0x1152   :  { %1911 = vrot.lane.b32.xlu1 %v10662_v38, %s10282_s23 }
0x1154   :  { %1670 = vrot.lane.b32.xlu0 %v10662_v38, %s10281_s22 }
0x1156   :  { %1989 = vrot.lane.b32.xlu1 %v10660_v36, %s10282_s23 }
0x1158   :  { %1909 = vrot.lane.b32.xlu0 %v10662_v38, %s10283_s24 }
0x115a   :  { %1987 = vrot.lane.b32.xlu1 %v10660_v36, %s10283_s24 }
0x11ca   :  { %v1665_v1 = vpop.xlane.xlu1 %1664 }
0x11cb   :  { %10120 = vrcp.f32 %v1665_v1  ;;  %v1662_v4 = vpop.xlane.xlu0 %1661 }
0x11cc   :  { %10122 = vrcp.f32 %v1662_v4 }
0x11ce   :  { %v1747_v54 = vpop.permute.xlu1 %1746 }
0x11cf   :  { %9137 = vmatpush3.msra.mxu1 %v1747_v54  ;;  %v1671_v5 = vpop.permute.xlu0 %1670 }
0x11d0   :  { %9132 = vmatpush3.msra.mxu0 %v1671_v5  ;;  %9148 = vmatprep.subr.mxu1 %v10277_v19 }
0x11d1   :  { %9736 = vmatprep.subr.bf16.mxu0 %v9735_v53 }
0x11d2   :  { %v1912_v10 = vpop.permute.xlu1 %1911 }
0x11d3   :  { %v1910_v11 = vpop.permute.xlu0 %1909 }
0x11d5   :  { %v10121_v6 = vpop.eup %10120 }
0x11d6   :  { %v10123_v7 = vpop.eup %10122  ;;  %v1669_v8 = vmul.f32 %v10121_v6, %v10117_v60  ;;  %v1990_v12 = vpop.permute.xlu1 %1989 }
0x11d7   :  { %v1668_v9 = vmul.f32 %v10123_v7, %v10119_v61 }
0x11d8   :  { %9139 = vmatmul.mubr.msk.f32.vlgmr.msra.gmra.mrb[24].mxu1 %vm436_vm5, %v1669_v8 }
0x11d9   :  { %9149 = vmatpush3.xpose.msk.msra.mxu1 %vm280_vm3, %v1912_v10  ;;  %9134 = vmatmul.mubr.msk.f32.vlgmr.msra.gmra.mrb[10].mxu0 %vm436_vm5, %v1668_v9 }
0x11da   :  { %9150 = vmatprep.mubr.msk.f32.mxu1 %vm10278_vm2, %v10277_v19  ;;  %9738 = vmatpush3.bf16.msra.mxu0 %v9735_v53  ;;  %v1988_v21 = vpop.permute.xlu1 %1987 }
0x11db   :  { %9153 = vmatprep.subr.mxu0 %v10277_v19  ;;  %9158 = vmatprep.subr.mxu1 %v10277_v19 }
0x11dc   :  { %9151 = vmatmul.mubr.msk.f32.vlgmr.msra.gmra.mrb[26].mxu1 %vm280_vm3, %v1910_v11  ;;  %v2368_v11 = vld [vmem:[%s11952_s3 + $0x28] sm:$0xff] }
0x11dd   :  { %9160 = vmatprep.mubr.msk.f32.mxu1 %vm10278_vm2, %v10277_v19 }
0x12ab   :  { %v1818_v13 = vpop.f32.mrb[24].mxu1 }
0x12ac   :  { %v1742_v14 = vpop.f32.mrb[10].mxu0  ;;  %v9140_v15 = vpop.f32.mrb[25].mxu1 }
0x12ad   :  { %v9135_v16 = vpop.f32.mrb[11].mxu0  ;;  %9145 = vmatprep.mubr.msk.f32.mxu0 %vm280_vm3, %v1742_v14  ;;  %v2371_v15 = vld [vmem:[%s11952_s3 + $0x40] sm:$0xff] }
0x12ae   :  { %9146 = vmatmul.mubr.msk.f32.vlgmr.msra.gmra.mrb[12].mxu0 %vm280_vm3, %v1818_v13  ;;  %v2370_v13 = vld [vmem:[%s11952_s3 + $0x38] sm:$0xff] }
0x12af   :  { %9154 = vmatpush3.xpose.msk.msra.mxu0 %vm280_vm3, %v1990_v12  ;;  %v1983_v17 = vpop.f32.mrb[26].mxu1  ;;  %9155 = vmatprep.mubr.msk.f32.mxu0 %vm10278_vm2, %v10277_v19  ;;  %v2369_v12 = vld [vmem:[%s11952_s3 + $0x30] sm:$0xff]  ;;  %v9747_v16 = vpack.c.bf16 %v2371_v15, %v2370_v13 }
0x12b0   :  { %v2065_v18 = vmul.f32 0.25, %v1983_v17  ;;  %v9152_v20 = vpop.f32.mrb[27].mxu1  ;;  %9163 = vmatprep.subr.mxu0 %v10277_v19  ;;  %v9743_v14 = vpack.c.bf16 %v2369_v12, %v2368_v11 }
0x12b2   :  { %9156 = vmatmul.mubr.msk.f32.vlgmr.msra.gmra.mrb[14].mxu0 %vm280_vm3, %v1988_v21  ;;  %v2067_v23 = vadd.f32 %v2065_v18, %v10479_v31 }
0x12b3   :  { %9165 = vmatprep.mubr.msk.f32.mxu0 %vm10278_vm2, %v10277_v19 }
0x12b4   :  { %v2069_v25 = vsel %vm436_vm5, %v2067_v23, -inf }
0x12b5   :  { %2070 = vmax.xlane.f32.xlu0 %v2069_v25 }
0x1342   :  { %v2071_v26 = vpop.xlane.xlu0 %2070 }
0x1343   :  { %v2075_v27 = vsub.f32 %v2067_v23, %v2071_v26 }
0x1345   :  { %v2077_v28 = vmul.f32 1.442695, %v2075_v27  ;;  %v8365_v27 = vld [vmem:[%s11949_s1 + $0x190] ss:$0 sm:$0xff] }
0x1347   :  { %10124 = vpow2.f32 %v2077_v28 }
0x1351   :  { %v10125_v29 = vpop.eup %10124 }
0x1352   :  { %v2081_v30 = vsel %vm436_vm5, %v10125_v29, 0.0 }
0x1353   :  { %2082 = vadd.xlane.f32.xlu0 %v2081_v30 }
0x1385   :  { %v2061_v32 = vpop.f32.mrb[14].mxu0 }
0x1386   :  { %v2066_v22 = vmul.f32 0.25, %v2061_v32  ;;  %v9157_v33 = vpop.f32.mrb[15].mxu0  ;;  %v8366_v32 = vld [vmem:[%s11949_s1 + $0x198] ss:$0 sm:$0xff] }
0x1388   :  { %v2068_v34 = vadd.f32 %v2066_v22, %v10479_v31 }
0x138a   :  { %v2072_v35 = vsel %vm436_vm5, %v2068_v34, -inf }
0x138b   :  { %2073 = vmax.xlane.f32.xlu1 %v2072_v35 }
0x139c   :  { %2167 = vrot.lane.b32.xlu1 %v10660_v36, %s10284_s29 }
0x13e0   :  { %v2083_v44 = vpop.xlane.xlu0 %2082 }
0x1418   :  { %v2074_v37 = vpop.xlane.xlu1 %2073 }
0x1419   :  { %v2076_v39 = vsub.f32 %v2068_v34, %v2074_v37  ;;  %v2468_v37 = vld [vmem:[%s11949_s1 + $0x1a0] sm:$0xff] }
0x141b   :  { %v2079_v24 = vmul.f32 1.442695, %v2076_v39  ;;  %v2469_v39 = vld [vmem:[%s11949_s1 + $0x1a8] sm:$0xff] }
0x141c   :  { %v2168_v40 = vpop.permute.xlu1 %2167 }
0x141d   :  { %10126 = vpow2.f32 %v2079_v24  ;;  %9164 = vmatpush3.msra.mxu0 %v2168_v40  ;;  %v9751_v24 = vpack.c.bf16 %v2469_v39, %v2468_v37  ;;  %v2470_v40 = vld [vmem:[%s11949_s1 + $0x1b0] sm:$0xff] }
0x141e   :  { %10128 = vrcp.f32 %v2083_v44  ;;  %v2472_v44 = vld [vmem:[%s11949_s1 + $0x1c0] sm:$0xff] }
0x1427   :  { %v10127_v41 = vpop.eup %10126 }
0x1428   :  { %v2084_v42 = vsel %vm436_vm5, %v10127_v41, 0.0  ;;  %v10129_v46 = vpop.eup %10128 }
0x1429   :  { %2085 = vadd.xlane.f32.xlu0 %v2084_v42  ;;  %v2089_v36 = vmul.f32 %v10129_v46, %v10125_v29 }
0x143f   :  { %2091 = vrot.lane.b32.xlu0 %v10662_v38, %s10284_s29  ;;  %v1488_v38 = vld [vmem:[%s11949_s1 + $0x180] sm:$0xff] }
0x1440   :  { %v9739_v52 = vpack.c.bf16 %v1488_v38, %v1487_v51 }
0x1442   :  { %9740 = vmatprep.subr.bf16.mxu0 %v9739_v52 }
0x14b6   :  { %v2086_v45 = vpop.xlane.xlu0 %2085 }
0x14b7   :  { %10130 = vrcp.f32 %v2086_v45  ;;  %v2473_v45 = vld [vmem:[%s11949_s1 + $0x1c8] sm:$0xff] }
0x14b8   :  { %v9759_v46 = vpack.c.bf16 %v2473_v45, %v2472_v44 }
0x14ba   :  { %v2092_v48 = vpop.permute.xlu0 %2091 }
0x14bb   :  { %9159 = vmatpush3.msra.mxu1 %v2092_v48  ;;  %v2474_v48 = vld [vmem:[%s11949_s1 + $0x1d0] sm:$0xff] }
0x14bc   :  { %9161 = vmatmul.mubr.msk.f32.vlgmr.msra.gmra.mrb[28].mxu1 %vm436_vm5, %v2089_v36  ;;  %9744 = vmatprep.subr.bf16.mxu1 %v9743_v14  ;;  %v2475_v36 = vld [vmem:[%s11949_s1 + $0x1d8] sm:$0xff] }
0x14bd   :  { %9746 = vmatpush3.bf16.msra.mxu1 %v9743_v14 }
0x14be   :  { %9748 = vmatprep.subr.bf16.mxu1 %v9747_v16 }
0x14c1   :  { %v10131_v49 = vpop.eup %10130  ;;  %9750 = vmatpush3.bf16.msra.mxu1 %v9747_v16 }
0x14c2   :  { %v2090_v50 = vmul.f32 %v10131_v49, %v10127_v41  ;;  %v2471_v41 = vld [vmem:[%s11949_s1 + $0x1b8] sm:$0xff]  ;;  %v9763_v49 = vpack.c.bf16 %v2475_v36, %v2474_v48  ;;  %v8384_v36 = vld [vmem:[%s11949_s1 + $0x230] sm:$0xff] }
0x14c3   :  { %v9755_v42 = vpack.c.bf16 %v2471_v41, %v2470_v40  ;;  %v8382_v41 = vld [vmem:[%s11949_s1 + $0x220] sm:$0xff] }
0x14c4   :  { %9166 = vmatmul.mubr.msk.f32.vlgmr.msra.gmra.mrb[16].mxu0 %vm436_vm5, %v2090_v50  ;;  %v8367_v50 = vld [vmem:[%s11952_s3 + $0x48] ss:$0 sm:$0xff] }
0x14c5   :  { %9742 = vmatpush3.bf16.msra.mxu0 %v9739_v52 }
0x14c6   :  { %9752 = vmatprep.subr.bf16.mxu0 %v9751_v24 }
0x158f   :  { %v2163_v55 = vpop.f32.mrb[28].mxu1 }
0x1590   :  { %v9162_v56 = vpop.f32.mrb[29].mxu1  ;;  %9172 = vmatprep.mubr.msk.f32.mxu0 %vm280_vm3, %v2163_v55 }
0x1597   :  { %v2239_v57 = vpop.f32.mrb[16].mxu0 }
0x1598   :  { %v9167_v58 = vpop.f32.mrb[17].mxu0  ;;  %9173 = vmatmul.mubr.msk.f32.vlgmr.msra.gmra.mrb[12].mxu0 %vm280_vm3, %v2239_v57 }
0x1599   :  { %9754 = vmatpush3.bf16.msra.mxu0 %v9751_v24  ;;  %v8374_v24 = vld [vmem:[%s11949_s1 + $0x1f0] ss:$0 sm:$0xff] }
0x159a   :  { %9756 = vmatprep.subr.bf16.mxu0 %v9755_v42 }
0x159d   :  { %9758 = vmatpush3.bf16.msra.mxu0 %v9755_v42  ;;  %v8383_v42 = vld [vmem:[%s11949_s1 + $0x228] sm:$0xff] }
0x159e   :  { %9760 = vmatprep.subr.bf16.mxu0 %v9759_v46 }
0x15a1   :  { %9762 = vmatpush3.bf16.msra.mxu0 %v9759_v46  ;;  %v9776_v46 = vpack.c.bf16 %v8383_v42, %v8382_v41 }
0x15a2   :  { %9764 = vmatprep.subr.bf16.mxu0 %v9763_v49 }
0x15a5   :  { %9766 = vmatpush3.bf16.msra.mxu0 %v9763_v49  ;;  %v8385_v49 = vld [vmem:[%s11949_s1 + $0x238] sm:$0xff] }
0x166b   :  { %v9174_v60 = vpop.f32.mrb[12].mxu0 }
0x166c   :  { %v10049_v61 = vadd.f32 %v9174_v60, %v8356_v59  ;;  %v2315_v63 = vpop.f32.mrb[13].mxu0 }
0x166d   :  { %v10050_v43 = vadd.f32 %v8356_v59, %v2315_v63 }
0x166e   :  { %v10748_v1 = vadd.f32 %v10049_v61, %v10622_v47 }
0x166f   :  { %v10751_v2 = vadd.f32 %v10050_v43, %v10624_v62 }
0x1670   :  { %v2333_v3 = vsel %vm142_vm1, %v10748_v1, 0.0 }
0x1671   :  { %2334 = vadd.xlane.f32.xlu0 %v2333_v3  ;;  %v2330_v4 = vsel %vm142_vm1, %v10751_v2, 0.0 }
0x1672   :  { %2331 = vadd.xlane.f32.xlu1 %v2330_v4 }
0x16fe   :  { %v2335_v53 = vpop.xlane.xlu0 %2334 }
0x16ff   :  { %v2337_v54 = vmul.f32 0.03125, %v2335_v53  ;;  %v2332_v5 = vpop.xlane.xlu1 %2331 }
0x1700   :  { %v2336_v6 = vmul.f32 0.03125, %v2332_v5 }
0x1701   :  { %v2339_v7 = vsub.f32 %v10748_v1, %v2337_v54  ;;  %v8372_v54 = vld [vmem:[%s11949_s1 + $0x1e0] ss:$0 sm:$0xff] }
0x1702   :  { %v2338_v47 = vsub.f32 %v10751_v2, %v2336_v6 }
0x1703   :  { %v2341_v8 = vmul.f32 %v2339_v7, %v2339_v7 }
0x1704   :  { %v2340_v9 = vmul.f32 %v2338_v47, %v2338_v47 }
0x1705   :  { %v2345_v62 = vsel %vm142_vm1, %v2341_v8, 0.0 }
0x1706   :  { %2346 = vadd.xlane.f32.xlu1 %v2345_v62  ;;  %v2342_v10 = vsel %vm142_vm1, %v2340_v9, 0.0 }
0x1707   :  { %2343 = vadd.xlane.f32.xlu0 %v2342_v10 }
0x1793   :  { %v2347_v17 = vpop.xlane.xlu1 %2346 }
0x1794   :  { %v2349_v18 = vmul.f32 0.03125, %v2347_v17  ;;  %v2344_v20 = vpop.xlane.xlu0 %2343 }
0x1795   :  { %v2348_v21 = vmul.f32 0.03125, %v2344_v20  ;;  %v2607_v20 = vld [vmem:[%s11949_s1 + $0x200] sm:$0xff] }
0x1796   :  { %v2351_v23 = vadd.f32 1e-12, %v2349_v18  ;;  %v2606_v18 = vld [vmem:[%s11949_s1 + $0x1f8] sm:$0xff] }
0x1797   :  { %v2350_v25 = vadd.f32 1e-12, %v2348_v21  ;;  %v2608_v21 = vld [vmem:[%s11949_s1 + $0x208] sm:$0xff] }
0x1798   :  { %10132 = vrsqrt.f32 %v2351_v23  ;;  %v9767_v23 = vpack.c.bf16 %v2607_v20, %v2606_v18  ;;  %v8380_v18 = vld [vmem:[%s11950_s0 + $0x30] sm:$0xff] }
0x1799   :  { %10134 = vrsqrt.f32 %v2350_v25  ;;  %v2609_v25 = vld [vmem:[%s11949_s1 + $0x210] sm:$0xff] }
0x179a   :  { %9768 = vmatprep.subr.bf16.mxu1 %v9767_v23 }
0x17a2   :  { %v10133_v26 = vpop.eup %10132 }
0x17a3   :  { %v10135_v28 = vpop.eup %10134  ;;  %v2355_v29 = vmul.f32 %v10133_v26, %v2339_v7  ;;  %v9771_v26 = vpack.c.bf16 %v2609_v25, %v2608_v21 }
0x17a4   :  { %v2354_v30 = vmul.f32 %v10135_v28, %v2338_v47 }
0x17a5   :  { %v2361_v22 = vmul.f32 %v8365_v27, %v2355_v29 }
0x17a6   :  { %v2360_v33 = vmul.f32 %v8365_v27, %v2354_v30 }
0x17a7   :  { %v2367_v35 = vadd.f32 %v8366_v32, %v2361_v22 }
0x17a8   :  { %v2366_v34 = vadd.f32 %v8366_v32, %v2360_v33 }
0x17aa   :  { %9183 = vmatprep.mubr.msk.f32.mxu1 %vm142_vm1, %v2366_v34  ;;  %v8373_v34 = vld [vmem:[%s11949_s1 + $0x1e8] ss:$0 sm:$0xff] }
0x17ab   :  { %9184 = vmatmul.mubr.msk.f32.vlgmr.msra.gmra.mrb[30].mxu1 %vm142_vm1, %v2367_v35 }
0x17ac   :  { %9770 = vmatpush3.bf16.msra.mxu1 %v9767_v23  ;;  %v8408_v23 = vld [vmem:[%s11949_s1 + $0x2e0] sm:$0xff] }
0x17ad   :  { %9772 = vmatprep.subr.bf16.mxu1 %v9771_v26 }
0x17b0   :  { %9774 = vmatpush3.bf16.msra.mxu1 %v9771_v26 }
0x17b1   :  { %9775 = vmatprep.subr.bf16.mxu1 %v10276_v0 }
0x187e   :  { %v9185_v51 = vpop.f32.mrb[30].mxu1 }
0x187f   :  { %v2455_v38 = vadd.f32 %v9185_v51, %v8367_v50  ;;  %v2449_v52 = vpop.f32.mrb[31].mxu1  ;;  %v9779_v51 = vpack.c.bf16 %v8385_v49, %v8384_v36  ;;  %v8416_v49 = vld [vmem:[%s11951_s2 + $0x68] sm:$0xff] }
0x1880   :  { %v2450_v55 = vadd.f32 %v8367_v50, %v2449_v52  ;;  %v8379_v50 = vld [vmem:[%s11950_s0 + $0x28] sm:$0xff] }
0x1881   :  { %v2461_v56 = vmul.f32 0.70710677, %v2455_v38  ;;  %v2459_v43 = vmul.f32 0.5, %v2455_v38  ;;  %v8386_v38 = vld [vmem:[%s11949_s1 + $0x240] sm:$0xff]  ;;  %v8387_v52 = vld [vmem:[%s11949_s1 + $0x248] sm:$0xff] }
0x1882   :  { %v2460_v57 = vmul.f32 0.70710677, %v2450_v55  ;;  %v2458_v61 = vmul.f32 0.5, %v2450_v55  ;;  %v9782_v55 = vpack.c.bf16 %v8387_v52, %v8386_v38 }
0x1883   :  { %10136 = verf.f32 %v2461_v56  ;;  %v8388_v56 = vld [vmem:[%s11949_s1 + $0x250] sm:$0xff] }
0x1884   :  { %10138 = verf.f32 %v2460_v57  ;;  %v8389_v57 = vld [vmem:[%s11949_s1 + $0x258] sm:$0xff] }
0x188d   :  { %v10137_v58 = vpop.eup %10136 }
0x188e   :  { %v10139_v59 = vpop.eup %10138  ;;  %v2465_v60 = vadd.f32 1.0, %v10137_v58  ;;  %v9785_v58 = vpack.c.bf16 %v8389_v57, %v8388_v56 }
0x188f   :  { %v2464_v63 = vadd.f32 1.0, %v10139_v59  ;;  %v8390_v59 = vld [vmem:[%s11949_s1 + $0x260] sm:$0xff] }
0x1890   :  { %v2467_v4 = vmul.f32 %v2465_v60, %v2459_v43  ;;  %v8391_v60 = vld [vmem:[%s11949_s1 + $0x268] sm:$0xff]  ;;  %v8393_v43 = vld [vmem:[%s11949_s1 + $0x278] sm:$0xff] }
0x1891   :  { %v2466_v3 = vmul.f32 %v2464_v63, %v2458_v61  ;;  %v9788_v61 = vpack.c.bf16 %v8391_v60, %v8390_v59  ;;  %v8392_v63 = vld [vmem:[%s11949_s1 + $0x270] sm:$0xff]  ;;  %v8411_v59 = vld [vmem:[%s11949_s1 + $0x2e8] ss:$0 sm:$0xff] }
0x1893   :  { %9202 = vmatprep.mubr.msk.f32.mxu0 %vm55_vm0, %v2466_v3  ;;  %v9791_v3 = vpack.c.bf16 %v8393_v43, %v8392_v63 }
0x1894   :  { %9203 = vmatmul.mubr.msk.f32.vlgmr.msra.gmra.mrb[18].mxu0 %vm55_vm0, %v2467_v4  ;;  %v8394_v4 = vld [vmem:[%s11949_s1 + $0x280] sm:$0xff] }
0x1967   :  { %v9204_v53 = vpop.f32.mrb[18].mxu0 }
0x1968   :  { %v2558_v5 = vadd.f32 %v9204_v53, %v10748_v1  ;;  %v2548_v6 = vpop.f32.mrb[19].mxu0  ;;  %v8395_v53 = vld [vmem:[%s11949_s1 + $0x288] sm:$0xff] }
0x1969   :  { %v2557_v7 = vadd.f32 %v2548_v6, %v10751_v2  ;;  %v8397_v6 = vld [vmem:[%s11949_s1 + $0x298] sm:$0xff] }
0x196a   :  { %v2565_v47 = vadd.f32 %v8372_v54, %v2558_v5  ;;  %v8396_v5 = vld [vmem:[%s11949_s1 + $0x290] sm:$0xff] }
0x196b   :  { %v2564_v8 = vadd.f32 %v8372_v54, %v2557_v7  ;;  %v9794_v54 = vpack.c.bf16 %v8395_v53, %v8394_v4  ;;  %v9797_v7 = vpack.c.bf16 %v8397_v6, %v8396_v5  ;;  %v8418_v5 = vld [vmem:[%s11951_s2 + $0x70] ss:$0 sm:$0xff] }
0x196c   :  { %v2571_v9 = vsel %vm142_vm1, %v2565_v47, 0.0 }
0x196d   :  { %2572 = vadd.xlane.f32.xlu1 %v2571_v9  ;;  %v2568_v62 = vsel %vm142_vm1, %v2564_v8, 0.0 }
0x196e   :  { %2569 = vadd.xlane.f32.xlu0 %v2568_v62  ;;  %v8400_v62 = vld [vmem:[%s11949_s1 + $0x2b0] sm:$0xff] }
0x19fa   :  { %v2573_v10 = vpop.xlane.xlu1 %2572 }
0x19fb   :  { %v2575_v11 = vmul.f32 0.03125, %v2573_v10  ;;  %v2570_v12 = vpop.xlane.xlu0 %2569  ;;  %v8401_v10 = vld [vmem:[%s11949_s1 + $0x2b8] sm:$0xff] }
0x19fc   :  { %v2574_v13 = vmul.f32 0.03125, %v2570_v12  ;;  %v8402_v12 = vld [vmem:[%s11949_s1 + $0x2c0] sm:$0xff] }
0x19fd   :  { %v2577_v14 = vsub.f32 %v2565_v47, %v2575_v11  ;;  %v8398_v47 = vld [vmem:[%s11949_s1 + $0x2a0] sm:$0xff]  ;;  %v9803_v11 = vpack.c.bf16 %v8401_v10, %v8400_v62 }
0x19fe   :  { %v2576_v15 = vsub.f32 %v2564_v8, %v2574_v13  ;;  %v8399_v8 = vld [vmem:[%s11949_s1 + $0x2a8] sm:$0xff] }
0x19ff   :  { %v2579_v16 = vmul.f32 %v2577_v14, %v2577_v14  ;;  %v9800_v9 = vpack.c.bf16 %v8399_v8, %v8398_v47  ;;  %v8403_v13 = vld [vmem:[%s11949_s1 + $0x2c8] sm:$0xff] }
0x1a00   :  { %v2578_v17 = vmul.f32 %v2576_v15, %v2576_v15 }
0x1a01   :  { %v2583_v1 = vsel %vm142_vm1, %v2579_v16, 0.0  ;;  %v8405_v16 = vld [vmem:[%s11949_s1 + $0x2d8] sm:$0xff] }
0x1a02   :  { %2584 = vadd.xlane.f32.xlu1 %v2583_v1  ;;  %v2580_v2 = vsel %vm142_vm1, %v2578_v17, 0.0  ;;  %v8378_v1 = vld [vmem:[%s11950_s0 + $0x20] sm:$0xff] }
0x1a03   :  { %2581 = vadd.xlane.f32.xlu0 %v2580_v2  ;;  %v8381_v2 = vld [vmem:[%s11950_s0 + $0x38] sm:$0xff] }
0x1a8f   :  { %v2585_v27 = vpop.xlane.xlu1 %2584 }
0x1a90   :  { %v2587_v28 = vmul.f32 0.03125, %v2585_v27  ;;  %v2582_v29 = vpop.xlane.xlu0 %2581 }
0x1a91   :  { %v2586_v30 = vmul.f32 0.03125, %v2582_v29 }
0x1a92   :  { %v2589_v32 = vadd.f32 1e-12, %v2587_v28 }
0x1a93   :  { %v2588_v22 = vadd.f32 1e-12, %v2586_v30 }
0x1a94   :  { %10140 = vrsqrt.f32 %v2589_v32 }
0x1a95   :  { %10142 = vrsqrt.f32 %v2588_v22 }
0x1a9e   :  { %v10141_v33 = vpop.eup %10140 }
0x1a9f   :  { %v10143_v35 = vpop.eup %10142  ;;  %v2593_v37 = vmul.f32 %v10141_v33, %v2577_v14  ;;  %v9806_v14 = vpack.c.bf16 %v8403_v13, %v8402_v12 }
0x1aa0   :  { %v2592_v39 = vmul.f32 %v10143_v35, %v2576_v15  ;;  %v8404_v15 = vld [vmem:[%s11949_s1 + $0x2d0] sm:$0xff] }
0x1aa1   :  { %v2599_v40 = vmul.f32 %v8373_v34, %v2593_v37  ;;  %v9809_v17 = vpack.c.bf16 %v8405_v16, %v8404_v15 }
0x1aa2   :  { %v2598_v44 = vmul.f32 %v8373_v34, %v2592_v39 }
0x1aa3   :  { %v2605_v48 = vadd.f32 %v8374_v24, %v2599_v40 }
0x1aa4   :  { %v2604_v45 = vadd.f32 %v8374_v24, %v2598_v44 }
0x1aa6   :  { %9213 = vmatprep.mubr.msk.f32.mxu1 %vm142_vm1, %v2604_v45  ;;  %v8413_v45 = vld [vmem:[%s11951_s2 + $0x50] sm:$0xff] }
0x1aa7   :  { %9214 = vmatmul.mubr.msk.f32.vlgmr.msra.gmra.mrb[32].mxu1 %vm142_vm1, %v2605_v48  ;;  %v8415_v48 = vld [vmem:[%s11951_s2 + $0x60] sm:$0xff] }
0x1aa8   :  { %9777 = vmatpush1.bf16.msra.mxu1 %v9776_v46  ;;  %8406 = vmatprep.mubr.msk.f32.mxu1 %vm55_vm0, %v8379_v50  ;;  %v8414_v46 = vld [vmem:[%s11951_s2 + $0x58] sm:$0xff]  ;;  %v9815_v50 = vpack.c.bf16 %v8416_v49, %v8415_v48 }
0x1aa9   :  { %9778 = vmatprep.subr.bf16.mxu1 %v10276_v0  ;;  %v9811_v36 = vpack.c.bf16 %v8414_v46, %v8413_v45 }
0x1aab   :  { %9812 = vmatprep.subr.bf16.mxu0 %v9811_v36 }
0x1aac   :  { %9780 = vmatpush1.bf16.msra.mxu1 %v9779_v51  ;;  %9814 = vmatpush3.bf16.msra.mxu0 %v9811_v36 }
0x1aad   :  { %9781 = vmatprep.subr.bf16.mxu1 %v10276_v0  ;;  %9816 = vmatprep.subr.bf16.mxu0 %v9815_v50 }
0x1ab0   :  { %9783 = vmatpush1.bf16.msra.mxu1 %v9782_v55  ;;  %9818 = vmatpush3.bf16.msra.mxu0 %v9815_v50 }
0x1ab1   :  { %9784 = vmatprep.subr.bf16.mxu1 %v10276_v0  ;;  %9227 = vmatprep.subr.mxu0 %v10277_v19 }
0x1ab4   :  { %9786 = vmatpush1.bf16.msra.mxu1 %v9785_v58 }
0x1ab5   :  { %9787 = vmatprep.subr.bf16.mxu1 %v10276_v0 }
0x1ab8   :  { %9789 = vmatpush1.bf16.msra.mxu1 %v9788_v61  ;;  %v8412_v61 = vld [vmem:[%s11949_s1 + $0x2f0] ss:$0 sm:$0xff] }
0x1ab9   :  { %9790 = vmatprep.subr.bf16.mxu1 %v10276_v0 }
0x1abc   :  { %9792 = vmatpush1.bf16.msra.mxu1 %v9791_v3 }
0x1abd   :  { %9793 = vmatprep.subr.bf16.mxu1 %v10276_v0 }
0x1ac0   :  { %9795 = vmatpush1.bf16.msra.mxu1 %v9794_v54 }
0x1ac1   :  { %9796 = vmatprep.subr.bf16.mxu1 %v10276_v0 }
0x1ac4   :  { %9798 = vmatpush1.bf16.msra.mxu1 %v9797_v7 }
0x1ac5   :  { %9799 = vmatprep.subr.bf16.mxu1 %v10276_v0 }
0x1ac8   :  { %9801 = vmatpush1.bf16.msra.mxu1 %v9800_v9 }
0x1ac9   :  { %9802 = vmatprep.subr.bf16.mxu1 %v10276_v0 }
0x1acc   :  { %9804 = vmatpush1.bf16.msra.mxu1 %v9803_v11 }
0x1acd   :  { %9805 = vmatprep.subr.bf16.mxu1 %v10276_v0 }
0x1ad0   :  { %9807 = vmatpush1.bf16.msra.mxu1 %v9806_v14 }
0x1ad1   :  { %9808 = vmatprep.subr.bf16.mxu1 %v10276_v0 }
0x1ad4   :  { %9810 = vmatpush1.bf16.msra.mxu1 %v9809_v17 }
0x1ad7   :  { %2803 = vmatmul.mubr.f32.vlgmr.msra.gmra.mrb[34].mxu1 %v8378_v1 }
0x1ad8   :  { %8407 = vmatprep.mubr.msk.f32.mxu1 %vm55_vm0, %v8381_v2 }
0x1adb   :  { %2808 = vmatmul.mubr.f32.gmra.mrb[36].mxu1 %v8380_v18 }
0x1b7a   :  { %v10937_v20 = vpop.f32.mrb[32].mxu1 }
0x1b7b   :  { %v10939_v21 = vpop.f32.mrb[33].mxu1 }
0x1baa   :  { %v2804_v25 = vpop.f32.mrb[34].mxu1 }
0x1bab   :  { %v10944_v26 = vadd.f32 %v8408_v23, %v2804_v25  ;;  %v2806_v27 = vpop.f32.mrb[35].mxu1 }
0x1bad   :  { %v2818_v28 = vsel %vm142_vm1, %v10944_v26, 0.0 }
0x1bae   :  { %2819 = vadd.xlane.f32.xlu0 %v2818_v28  ;;  %v2809_v29 = vpop.f32.mrb[36].mxu1 }
0x1baf   :  { %v10948_v30 = vadd.f32 %v8408_v23, %v2809_v29  ;;  %v2811_v32 = vpop.f32.mrb[37].mxu1 }
0x1bb1   :  { %v2821_v22 = vsel %vm142_vm1, %v10948_v30, 0.0 }
0x1bb2   :  { %2822 = vadd.xlane.f32.xlu1 %v2821_v22 }
0x1c3b   :  { %v2820_v33 = vpop.xlane.xlu0 %2819 }
0x1c3c   :  { %v2824_v34 = vmul.f32 0.03125, %v2820_v33 }
0x1c3e   :  { %v2826_v35 = vsub.f32 %v10944_v26, %v2824_v34 }
0x1c3f   :  { %v2823_v37 = vpop.xlane.xlu1 %2822 }
0x1c40   :  { %v2825_v39 = vmul.f32 0.03125, %v2823_v37  ;;  %v2828_v24 = vmul.f32 %v2826_v35, %v2826_v35 }
0x1c42   :  { %v2827_v40 = vsub.f32 %v10948_v30, %v2825_v39  ;;  %v2830_v41 = vsel %vm142_vm1, %v2828_v24, 0.0  ;;  %v8421_v24 = vld [vmem:[%s11949_s1 + $0x2f8] sm:$0xff] }
0x1c43   :  { %2831 = vadd.xlane.f32.xlu0 %v2830_v41 }
0x1c44   :  { %v2829_v42 = vmul.f32 %v2827_v40, %v2827_v40 }
0x1c46   :  { %v2833_v44 = vsel %vm142_vm1, %v2829_v42, 0.0 }
0x1c47   :  { %2834 = vadd.xlane.f32.xlu1 %v2833_v44 }
0x1cd0   :  { %v2832_v51 = vpop.xlane.xlu0 %2831 }
0x1cd1   :  { %v2836_v38 = vmul.f32 0.03125, %v2832_v51 }
0x1cd3   :  { %v2838_v52 = vadd.f32 1e-12, %v2836_v38 }
0x1cd4   :  { %v2835_v55 = vpop.xlane.xlu1 %2834 }
0x1cd5   :  { %10144 = vrsqrt.f32 %v2838_v52  ;;  %v2837_v56 = vmul.f32 0.03125, %v2835_v55 }
0x1cd7   :  { %v2839_v57 = vadd.f32 1e-12, %v2837_v56 }
0x1cd9   :  { %10146 = vrsqrt.f32 %v2839_v57 }
0x1cdf   :  { %v10145_v58 = vpop.eup %10144 }
0x1ce0   :  { %v2842_v60 = vmul.f32 %v10145_v58, %v2826_v35 }
0x1ce2   :  { %v2848_v63 = vmul.f32 %v8411_v59, %v2842_v60 }
0x1ce3   :  { %v10147_v43 = vpop.eup %10146 }
0x1ce4   :  { %v2843_v3 = vmul.f32 %v10147_v43, %v2827_v40  ;;  %v2854_v4 = vadd.f32 %v8412_v61, %v2848_v63  ;;  %v8422_v40 = vld [vmem:[%s11949_s1 + $0x300] sm:$0xff] }
0x1ce5   :  { %v9819_v44 = vpack.c.bf16 %v8422_v40, %v8421_v24 }
0x1ce6   :  { %v2849_v53 = vmul.f32 %v8411_v59, %v2843_v3  ;;  %9224 = vmatprep.mubr.msk.f32.mxu0 %vm142_vm1, %v2854_v4 }
0x1ce8   :  { %v2855_v54 = vadd.f32 %v8412_v61, %v2849_v53 }
0x1cea   :  { %9225 = vmatmul.mubr.msk.f32.vlgmr.msra.gmra.mrb[20].mxu0 %vm142_vm1, %v2855_v54 }
0x1ceb   :  { %9229 = vmatprep.mubr.msk.f32.mxu0 %vm10278_vm2, %v10277_v19 }
0x1dbd   :  { %v9226_v6 = vpop.f32.mrb[20].mxu0 }
0x1dbe   :  { %v10982_v7 = vadd.f32 %v9226_v6, %v8418_v5  ;;  %v2938_v47 = vpop.f32.mrb[21].mxu0 }
0x1dbf   :  { %v10984_v8 = vadd.f32 %v8418_v5, %v2938_v47 }
0x1dc0   :  { %3030 = vrot.lane.b32.xlu1 %v10982_v7, %s10279_s21 }
0x1dc1   :  { %2953 = vrot.lane.b32.xlu0 %v10984_v8, %s10279_s21 }
0x1e32   :  { %v3031_v62 = vpop.permute.xlu1 %3030 }
0x1e33   :  { %v2954_v9 = vpop.permute.xlu0 %2953 }
0x1e34   :  { %9228 = vmatpush3.xpose.msk.msra.mxu0 %vm280_vm3, %v2954_v9 }
0x1e35   :  { %9232 = vmatprep.subr.mxu0 %v10277_v19 }
0x1e37   :  { %9230 = vmatmul.mubr.msk.f32.vlgmr.msra.gmra.mrb[22].mxu0 %vm280_vm3, %v10984_v8 }
0x1e38   :  { %9233 = vmatpush3.xpose.msk.msra.mxu0 %vm280_vm3, %v3031_v62  ;;  %9234 = vmatprep.mubr.msk.f32.mxu0 %vm10278_vm2, %v10277_v19 }
0x1e39   :  { %9237 = vmatprep.subr.mxu0 %v10277_v19 }
0x1e3b   :  { %9235 = vmatmul.mubr.msk.f32.vlgmr.msra.gmra.mrb[24].mxu0 %vm280_vm3, %v10982_v7 }
0x1e3c   :  { %9239 = vmatprep.mubr.msk.f32.mxu0 %vm10278_vm2, %v10277_v19 }
0x1f0a   :  { %v3025_v10 = vpop.f32.mrb[22].mxu0 }
0x1f0b   :  { %v3106_v11 = vmul.f32 0.25, %v3025_v10  ;;  %v9231_v12 = vpop.f32.mrb[23].mxu0 }
0x1f0d   :  { %v3108_v13 = vadd.f32 %v3106_v11, %v10479_v31 }
0x1f0e   :  { %v3102_v14 = vpop.f32.mrb[24].mxu0 }
0x1f0f   :  { %v3107_v15 = vmul.f32 0.25, %v3102_v14  ;;  %v9236_v16 = vpop.f32.mrb[25].mxu0  ;;  %v3110_v17 = vsel %vm436_vm5, %v3108_v13, -inf }
0x1f10   :  { %3111 = vmax.xlane.f32.xlu1 %v3110_v17 }
0x1f11   :  { %v3109_v1 = vadd.f32 %v3107_v15, %v10479_v31 }
0x1f13   :  { %v3113_v2 = vsel %vm436_vm5, %v3109_v1, -inf }
0x1f14   :  { %3114 = vmax.xlane.f32.xlu0 %v3113_v2 }
0x1f9d   :  { %v3112_v18 = vpop.xlane.xlu1 %3111 }
0x1f9e   :  { %v3116_v23 = vsub.f32 %v3108_v13, %v3112_v18 }
0x1fa0   :  { %v3118_v25 = vmul.f32 1.442695, %v3116_v23  ;;  %v8424_v23 = vld [vmem:[%s11949_s1 + $0x310] sm:$0xff] }
0x1fa1   :  { %v3115_v27 = vpop.xlane.xlu0 %3114 }
0x1fa2   :  { %10148 = vpow2.f32 %v3118_v25  ;;  %v3117_v28 = vsub.f32 %v3109_v1, %v3115_v27 }
0x1fa4   :  { %v3120_v29 = vmul.f32 1.442695, %v3117_v28 }
0x1fa6   :  { %10150 = vpow2.f32 %v3120_v29 }
0x1fac   :  { %v10149_v32 = vpop.eup %10148 }
0x1fad   :  { %v3122_v22 = vsel %vm436_vm5, %v10149_v32, 0.0 }
0x1fae   :  { %3123 = vadd.xlane.f32.xlu0 %v3122_v22  ;;  %v8434_v22 = vld [vmem:[%s11949_s1 + $0x318] ss:$0 sm:$0xff] }
0x1fb0   :  { %v10151_v33 = vpop.eup %10150 }
0x1fb1   :  { %v3125_v34 = vsel %vm436_vm5, %v10151_v33, 0.0 }
0x1fb2   :  { %3126 = vadd.xlane.f32.xlu1 %v3125_v34 }
0x1fc3   :  { %3208 = vrot.lane.b32.xlu1 %v10982_v7, %s10281_s22 }
0x1fc4   :  { %3132 = vrot.lane.b32.xlu0 %v10984_v8, %s10281_s22 }
0x1fc7   :  { %3373 = vrot.lane.b32.xlu1 %v10984_v8, %s10282_s23 }
0x1fc8   :  { %3451 = vrot.lane.b32.xlu0 %v10982_v7, %s10282_s23 }
0x1fcb   :  { %3371 = vrot.lane.b32.xlu1 %v10984_v8, %s10283_s24 }
0x1fcf   :  { %3449 = vrot.lane.b32.xlu1 %v10982_v7, %s10283_s24 }
0x203b   :  { %v3124_v35 = vpop.xlane.xlu0 %3123 }
0x203c   :  { %10152 = vrcp.f32 %v3124_v35 }
0x203f   :  { %v3127_v37 = vpop.xlane.xlu1 %3126  ;;  %v3133_v39 = vpop.permute.xlu0 %3132 }
0x2040   :  { %10154 = vrcp.f32 %v3127_v37  ;;  %9238 = vmatpush3.msra.mxu0 %v3133_v39 }
0x2041   :  { %9242 = vmatprep.subr.mxu0 %v10277_v19 }
0x2043   :  { %v3209_v45 = vpop.permute.xlu1 %3208  ;;  %v3452_v55 = vpop.permute.xlu0 %3451 }
0x2046   :  { %v10153_v41 = vpop.eup %10152 }
0x2047   :  { %v3130_v42 = vmul.f32 %v10153_v41, %v10149_v32  ;;  %v3374_v36 = vpop.permute.xlu1 %3373 }
0x2049   :  { %9240 = vmatmul.mubr.msk.f32.vlgmr.msra.gmra.mrb[26].mxu0 %vm436_vm5, %v3130_v42 }
0x204a   :  { %v10155_v46 = vpop.eup %10154  ;;  %9243 = vmatpush3.msra.mxu0 %v3209_v45  ;;  %9244 = vmatprep.mubr.msk.f32.mxu0 %vm10278_vm2, %v10277_v19 }
0x204b   :  { %v3131_v48 = vmul.f32 %v10155_v46, %v10151_v33  ;;  %9820 = vmatprep.subr.bf16.mxu0 %v9819_v44  ;;  %v3372_v52 = vpop.permute.xlu1 %3371 }
0x204d   :  { %9245 = vmatmul.mubr.msk.f32.vlgmr.msra.gmra.mrb[28].mxu0 %vm436_vm5, %v3131_v48 }
0x204e   :  { %9822 = vmatpush3.bf16.msra.mxu0 %v9819_v44 }
0x204f   :  { %9254 = vmatprep.subr.mxu0 %v10277_v19  ;;  %v3450_v56 = vpop.permute.xlu1 %3449 }
0x211c   :  { %v3204_v49 = vpop.f32.mrb[26].mxu0 }
0x211d   :  { %v9241_v50 = vpop.f32.mrb[27].mxu0  ;;  %9251 = vmatprep.mubr.msk.f32.mxu0 %vm280_vm3, %v3204_v49 }
0x2120   :  { %v3280_v51 = vpop.f32.mrb[28].mxu0 }
0x2121   :  { %v9246_v38 = vpop.f32.mrb[29].mxu0  ;;  %9252 = vmatmul.mubr.msk.f32.vlgmr.msra.gmra.mrb[30].mxu0 %vm280_vm3, %v3280_v51  ;;  %v8447_v51 = vld [vmem:[%s11952_s3 + $0x50] sm:$0xff] }
0x2122   :  { %9255 = vmatpush3.xpose.msk.msra.mxu0 %vm280_vm3, %v3374_v36  ;;  %9256 = vmatprep.mubr.msk.f32.mxu0 %vm10278_vm2, %v10277_v19  ;;  %v8448_v38 = vld [vmem:[%s11952_s3 + $0x58] sm:$0xff] }
0x2123   :  { %9259 = vmatprep.subr.mxu0 %v10277_v19 }
0x2125   :  { %9257 = vmatmul.mubr.msk.f32.vlgmr.msra.gmra.mrb[32].mxu0 %vm280_vm3, %v3372_v52  ;;  %v9827_v52 = vpack.c.bf16 %v8448_v38, %v8447_v51 }
0x2126   :  { %9260 = vmatpush3.xpose.msk.msra.mxu0 %vm280_vm3, %v3452_v55  ;;  %9261 = vmatprep.mubr.msk.f32.mxu0 %vm10278_vm2, %v10277_v19  ;;  %v8449_v55 = vld [vmem:[%s11952_s3 + $0x60] sm:$0xff] }
0x2127   :  { %9264 = vmatprep.subr.mxu0 %v10277_v19  ;;  %9828 = vmatprep.subr.bf16.mxu1 %v9827_v52 }
0x2128   :  { %9830 = vmatpush3.bf16.msra.mxu1 %v9827_v52 }
0x2129   :  { %9262 = vmatmul.mubr.msk.f32.vlgmr.msra.gmra.mrb[34].mxu0 %vm280_vm3, %v3450_v56  ;;  %v8450_v56 = vld [vmem:[%s11952_s3 + $0x68] sm:$0xff] }
0x212a   :  { %9266 = vmatprep.mubr.msk.f32.mxu0 %vm10278_vm2, %v10277_v19 }
0x21f8   :  { %v3445_v57 = vpop.f32.mrb[32].mxu0 }
0x21f9   :  { %v3527_v58 = vmul.f32 0.25, %v3445_v57  ;;  %v9258_v59 = vpop.f32.mrb[33].mxu0  ;;  %v9831_v57 = vpack.c.bf16 %v8450_v56, %v8449_v55 }
0x21fb   :  { %v3529_v60 = vadd.f32 %v3527_v58, %v10479_v31  ;;  %9832 = vmatprep.subr.bf16.mxu1 %v9831_v57 }
0x21fc   :  { %v3523_v61 = vpop.f32.mrb[34].mxu0  ;;  %9834 = vmatpush3.bf16.msra.mxu1 %v9831_v57 }
0x21fd   :  { %v3528_v63 = vmul.f32 0.25, %v3523_v61  ;;  %v9263_v43 = vpop.f32.mrb[35].mxu0  ;;  %v3531_v3 = vsel %vm436_vm5, %v3529_v60, -inf }
0x21fe   :  { %3532 = vmax.xlane.f32.xlu0 %v3531_v3 }
0x21ff   :  { %v3530_v4 = vadd.f32 %v3528_v63, %v10479_v31 }
0x2201   :  { %v3534_v53 = vsel %vm436_vm5, %v3530_v4, -inf }
0x2202   :  { %3535 = vmax.xlane.f32.xlu1 %v3534_v53 }
0x2213   :  { %3629 = vrot.lane.b32.xlu1 %v10982_v7, %s10284_s29 }
0x228b   :  { %v3533_v54 = vpop.xlane.xlu0 %3532 }
0x228c   :  { %v3537_v5 = vsub.f32 %v3529_v60, %v3533_v54 }
0x228e   :  { %v3539_v6 = vmul.f32 1.442695, %v3537_v5 }
0x228f   :  { %v3536_v47 = vpop.xlane.xlu1 %3535 }
0x2290   :  { %10156 = vpow2.f32 %v3539_v6  ;;  %v3538_v9 = vsub.f32 %v3530_v4, %v3536_v47  ;;  %v8445_v4 = vld [vmem:[%s11949_s1 + $0x320] ss:$0 sm:$0xff]  ;;  %v8446_v6 = vld [vmem:[%s11949_s1 + $0x328] ss:$0 sm:$0xff] }
0x2292   :  { %v3541_v62 = vmul.f32 1.442695, %v3538_v9 }
0x2293   :  { %v3630_v1 = vpop.permute.xlu1 %3629 }
0x2294   :  { %10158 = vpow2.f32 %v3541_v62 }
0x229a   :  { %v10157_v10 = vpop.eup %10156 }
0x229b   :  { %v3543_v11 = vsel %vm436_vm5, %v10157_v10, 0.0 }
0x229c   :  { %3544 = vadd.xlane.f32.xlu0 %v3543_v11  ;;  %v8455_v11 = vld [vmem:[%s11949_s1 + $0x330] sm:$0xff] }
0x229e   :  { %v10159_v12 = vpop.eup %10158 }
0x229f   :  { %v3546_v13 = vsel %vm436_vm5, %v10159_v12, 0.0 }
0x22a0   :  { %3547 = vadd.xlane.f32.xlu0 %v3546_v13 }
0x22b6   :  { %3553 = vrot.lane.b32.xlu0 %v10984_v8, %s10284_s29  ;;  %v8423_v8 = vld [vmem:[%s11949_s1 + $0x308] sm:$0xff] }
0x22b7   :  { %v9823_v25 = vpack.c.bf16 %v8424_v23, %v8423_v8  ;;  %v8452_v23 = vld [vmem:[%s11952_s3 + $0x70] ss:$0 sm:$0xff] }
0x2329   :  { %v3545_v7 = vpop.xlane.xlu0 %3544 }
0x232a   :  { %10160 = vrcp.f32 %v3545_v7  ;;  %v8457_v7 = vld [vmem:[%s11949_s1 + $0x340] sm:$0xff] }
0x232d   :  { %v3548_v14 = vpop.xlane.xlu0 %3547 }
0x232e   :  { %10162 = vrcp.f32 %v3548_v14  ;;  %v8458_v14 = vld [vmem:[%s11949_s1 + $0x348] sm:$0xff] }
0x2331   :  { %v3554_v15 = vpop.permute.xlu0 %3553 }
0x2332   :  { %9265 = vmatpush3.msra.mxu0 %v3554_v15  ;;  %v9839_v15 = vpack.c.bf16 %v8458_v14, %v8457_v7  ;;  %v8470_v14 = vld [vmem:[%s11949_s1 + $0x380] ss:$0 sm:$0xff] }
0x2333   :  { %9269 = vmatprep.subr.mxu0 %v10277_v19 }
0x2334   :  { %v10161_v16 = vpop.eup %10160 }
0x2335   :  { %v3551_v17 = vmul.f32 %v10161_v16, %v10157_v10  ;;  %v8459_v16 = vld [vmem:[%s11949_s1 + $0x350] sm:$0xff] }
0x2337   :  { %9267 = vmatmul.mubr.msk.f32.vlgmr.msra.gmra.mrb[36].mxu0 %vm436_vm5, %v3551_v17  ;;  %v8460_v17 = vld [vmem:[%s11949_s1 + $0x358] sm:$0xff] }
0x2338   :  { %v10163_v2 = vpop.eup %10162  ;;  %9270 = vmatpush3.msra.mxu0 %v3630_v1  ;;  %9271 = vmatprep.mubr.msk.f32.mxu0 %vm10278_vm2, %v10277_v19  ;;  %v9843_v1 = vpack.c.bf16 %v8460_v17, %v8459_v16 }
0x2339   :  { %v3552_v18 = vmul.f32 %v10163_v2, %v10159_v12  ;;  %9824 = vmatprep.subr.bf16.mxu0 %v9823_v25  ;;  %v8456_v12 = vld [vmem:[%s11949_s1 + $0x338] sm:$0xff]  ;;  %v8461_v2 = vld [vmem:[%s11949_s1 + $0x360] sm:$0xff] }
0x233a   :  { %v9835_v13 = vpack.c.bf16 %v8456_v12, %v8455_v11  ;;  %v8469_v11 = vld [vmem:[%s11949_s1 + $0x378] ss:$0 sm:$0xff] }
0x233b   :  { %9272 = vmatmul.mubr.msk.f32.vlgmr.msra.gmra.mrb[38].mxu0 %vm436_vm5, %v3552_v18  ;;  %v8462_v18 = vld [vmem:[%s11949_s1 + $0x368] sm:$0xff] }
0x233c   :  { %9826 = vmatpush3.bf16.msra.mxu0 %v9823_v25  ;;  %v9847_v8 = vpack.c.bf16 %v8462_v18, %v8461_v2  ;;  %v8476_v2 = vld [vmem:[%s11951_s2 + $0x98] ss:$0 sm:$0xff] }
0x233d   :  { %9836 = vmatprep.subr.bf16.mxu0 %v9835_v13 }
0x240a   :  { %v3625_v27 = vpop.f32.mrb[36].mxu0 }
0x240b   :  { %v9268_v28 = vpop.f32.mrb[37].mxu0  ;;  %9278 = vmatprep.mubr.msk.f32.mxu0 %vm280_vm3, %v3625_v27 }
0x240e   :  { %v3701_v29 = vpop.f32.mrb[38].mxu0 }
0x240f   :  { %v9273_v32 = vpop.f32.mrb[39].mxu0  ;;  %9279 = vmatmul.mubr.msk.f32.vlgmr.msra.gmra.mrb[30].mxu0 %vm280_vm3, %v3701_v29 }
0x2410   :  { %9838 = vmatpush3.bf16.msra.mxu0 %v9835_v13 }
0x2411   :  { %9840 = vmatprep.subr.bf16.mxu0 %v9839_v15 }
0x2414   :  { %9842 = vmatpush3.bf16.msra.mxu0 %v9839_v15 }
0x2415   :  { %9844 = vmatprep.subr.bf16.mxu0 %v9843_v1 }
0x2418   :  { %9846 = vmatpush3.bf16.msra.mxu0 %v9843_v1 }
0x2419   :  { %9848 = vmatprep.subr.bf16.mxu0 %v9847_v8 }
0x241c   :  { %9850 = vmatpush3.bf16.msra.mxu0 %v9847_v8 }
0x241d   :  { %9332 = vmatprep.subr.mxu0 %v10277_v19 }
0x24e2   :  { %v9280_v33 = vpop.f32.mrb[30].mxu0 }
0x24e3   :  { %v10051_v34 = vadd.f32 %v9280_v33, %v8434_v22  ;;  %v3777_v35 = vpop.f32.mrb[31].mxu0 }
0x24e4   :  { %v10052_v37 = vadd.f32 %v8434_v22, %v3777_v35 }
0x24e5   :  { %v11073_v39 = vadd.f32 %v10051_v34, %v10948_v30 }
0x24e6   :  { %v11076_v24 = vadd.f32 %v10052_v37, %v10944_v26 }
0x24e7   :  { %v3795_v40 = vsel %vm142_vm1, %v11073_v39, 0.0 }
0x24e8   :  { %3796 = vadd.xlane.f32.xlu0 %v3795_v40  ;;  %v3792_v41 = vsel %vm142_vm1, %v11076_v24, 0.0 }
0x24e9   :  { %3793 = vadd.xlane.f32.xlu1 %v3792_v41 }
0x2575   :  { %v3797_v42 = vpop.xlane.xlu0 %3796 }
0x2576   :  { %v3799_v44 = vmul.f32 0.03125, %v3797_v42  ;;  %v3794_v45 = vpop.xlane.xlu1 %3793 }
0x2577   :  { %v3798_v46 = vmul.f32 0.03125, %v3794_v45 }
0x2578   :  { %v3801_v48 = vsub.f32 %v11073_v39, %v3799_v44 }
0x2579   :  { %v3800_v30 = vsub.f32 %v11076_v24, %v3798_v46  ;;  %v8466_v46 = vld [vmem:[%s11949_s1 + $0x370] ss:$0 sm:$0xff] }
0x257a   :  { %v3803_v36 = vmul.f32 %v3801_v48, %v3801_v48 }
0x257b   :  { %v3802_v49 = vmul.f32 %v3800_v30, %v3800_v30 }
0x257c   :  { %v3807_v26 = vsel %vm142_vm1, %v3803_v36, 0.0 }
0x257d   :  { %3808 = vadd.xlane.f32.xlu1 %v3807_v26  ;;  %v3804_v50 = vsel %vm142_vm1, %v3802_v49, 0.0 }
0x257e   :  { %3805 = vadd.xlane.f32.xlu0 %v3804_v50 }
0x260a   :  { %v3809_v58 = vpop.xlane.xlu1 %3808 }
0x260b   :  { %v3811_v59 = vmul.f32 0.03125, %v3809_v58  ;;  %v3806_v60 = vpop.xlane.xlu0 %3805 }
0x260c   :  { %v3810_v61 = vmul.f32 0.03125, %v3806_v60 }
0x260d   :  { %v3813_v63 = vadd.f32 1e-12, %v3811_v59 }
0x260e   :  { %v3812_v43 = vadd.f32 1e-12, %v3810_v61  ;;  %v8471_v61 = vld [vmem:[%s11951_s2 + $0x78] sm:$0xff] }
0x260f   :  { %10164 = vrsqrt.f32 %v3813_v63  ;;  %v8472_v63 = vld [vmem:[%s11951_s2 + $0x80] sm:$0xff] }
0x2610   :  { %10166 = vrsqrt.f32 %v3812_v43  ;;  %v9851_v43 = vpack.c.bf16 %v8472_v63, %v8471_v61 }
0x2612   :  { %9852 = vmatprep.subr.bf16.mxu1 %v9851_v43 }
0x2619   :  { %v10165_v3 = vpop.eup %10164 }
0x261a   :  { %v10167_v53 = vpop.eup %10166  ;;  %v3817_v54 = vmul.f32 %v10165_v3, %v3801_v48  ;;  %v8473_v3 = vld [vmem:[%s11951_s2 + $0x88] sm:$0xff] }
0x261b   :  { %v3816_v5 = vmul.f32 %v10167_v53, %v3800_v30 }
0x261c   :  { %v3823_v47 = vmul.f32 %v8445_v4, %v3817_v54 }
0x261d   :  { %v3822_v9 = vmul.f32 %v8445_v4, %v3816_v5  ;;  %v8474_v4 = vld [vmem:[%s11951_s2 + $0x90] sm:$0xff] }
0x261e   :  { %v3829_v10 = vadd.f32 %v8446_v6, %v3823_v47  ;;  %v9855_v53 = vpack.c.bf16 %v8474_v4, %v8473_v3 }
0x261f   :  { %v3828_v62 = vadd.f32 %v8446_v6, %v3822_v9 }
0x2621   :  { %9289 = vmatprep.mubr.msk.f32.mxu1 %vm142_vm1, %v3828_v62 }
0x2622   :  { %9290 = vmatmul.mubr.msk.f32.vlgmr.msra.gmra.mrb[38].mxu1 %vm142_vm1, %v3829_v10 }
0x2623   :  { %9854 = vmatpush3.bf16.msra.mxu1 %v9851_v43 }
0x2624   :  { %9856 = vmatprep.subr.bf16.mxu1 %v9855_v53 }
0x2627   :  { %9858 = vmatpush3.bf16.msra.mxu1 %v9855_v53 }
0x2628   :  { %9322 = vmatprep.subr.mxu1 %v10277_v19 }
0x26f5   :  { %v9291_v25 = vpop.f32.mrb[38].mxu1 }
0x26f6   :  { %v3918_v27 = vadd.f32 %v9291_v25, %v8452_v23  ;;  %v3912_v28 = vpop.f32.mrb[39].mxu1 }
0x26f7   :  { %v3913_v29 = vadd.f32 %v8452_v23, %v3912_v28 }
0x26f8   :  { %v3924_v32 = vmul.f32 0.70710677, %v3918_v27  ;;  %v3922_v41 = vmul.f32 0.5, %v3918_v27 }
0x26f9   :  { %v3923_v22 = vmul.f32 0.70710677, %v3913_v29  ;;  %v3921_v37 = vmul.f32 0.5, %v3913_v29 }
0x26fa   :  { %10168 = verf.f32 %v3924_v32 }
0x26fb   :  { %10170 = verf.f32 %v3923_v22 }
0x2704   :  { %v10169_v33 = vpop.eup %10168 }
0x2705   :  { %v10171_v34 = vpop.eup %10170  ;;  %v3928_v35 = vadd.f32 1.0, %v10169_v33 }
0x2706   :  { %v3927_v40 = vadd.f32 1.0, %v10171_v34 }
0x2707   :  { %v3930_v44 = vmul.f32 %v3928_v35, %v3922_v41 }
0x2708   :  { %v3929_v42 = vmul.f32 %v3927_v40, %v3921_v37 }
0x270a   :  { %9308 = vmatprep.mubr.msk.f32.mxu0 %vm55_vm0, %v3929_v42 }
0x270b   :  { %9309 = vmatmul.mubr.msk.f32.vlgmr.msra.gmra.mrb[40].mxu0 %vm55_vm0, %v3930_v44 }
0x270c   :  { %9334 = vmatprep.mubr.msk.f32.mxu0 %vm10278_vm2, %v10277_v19 }
0x27de   :  { %v9310_v45 = vpop.f32.mrb[40].mxu0 }
0x27df   :  { %v4021_v48 = vadd.f32 %v9310_v45, %v11073_v39  ;;  %v4011_v30 = vpop.f32.mrb[41].mxu0 }
0x27e0   :  { %v4020_v36 = vadd.f32 %v4011_v30, %v11076_v24 }
0x27e1   :  { %v11143_v49 = vadd.f32 %v8466_v46, %v4021_v48 }
0x27e2   :  { %v11145_v26 = vadd.f32 %v8466_v46, %v4020_v36 }
0x27e3   :  { %v4034_v50 = vsel %vm142_vm1, %v11143_v49, 0.0 }
0x27e4   :  { %4035 = vadd.xlane.f32.xlu1 %v4034_v50  ;;  %v4031_v51 = vsel %vm142_vm1, %v11145_v26, 0.0 }
0x27e5   :  { %4032 = vadd.xlane.f32.xlu0 %v4031_v51 }
0x2871   :  { %v4036_v38 = vpop.xlane.xlu1 %4035 }
0x2872   :  { %v4038_v52 = vmul.f32 0.03125, %v4036_v38  ;;  %v4033_v55 = vpop.xlane.xlu0 %4032 }
0x2873   :  { %v4037_v56 = vmul.f32 0.03125, %v4033_v55  ;;  %v8479_v55 = vld [vmem:[%s11949_s1 + $0x388] sm:$0xff] }
0x2874   :  { %v4040_v39 = vsub.f32 %v11143_v49, %v4038_v52 }
0x2875   :  { %v4039_v24 = vsub.f32 %v11145_v26, %v4037_v56  ;;  %v8480_v56 = vld [vmem:[%s11949_s1 + $0x390] sm:$0xff] }
0x2876   :  { %v4042_v57 = vmul.f32 %v4040_v39, %v4040_v39 }
0x2877   :  { %v4041_v58 = vmul.f32 %v4039_v24, %v4039_v24 }
0x2878   :  { %v4046_v59 = vsel %vm142_vm1, %v4042_v57, 0.0 }
0x2879   :  { %4047 = vadd.xlane.f32.xlu1 %v4046_v59  ;;  %v4043_v60 = vsel %vm142_vm1, %v4041_v58, 0.0 }
0x287a   :  { %4044 = vadd.xlane.f32.xlu0 %v4043_v60 }
0x2906   :  { %v4048_v54 = vpop.xlane.xlu1 %4047 }
0x2907   :  { %v4050_v5 = vmul.f32 0.03125, %v4048_v54  ;;  %v4045_v6 = vpop.xlane.xlu0 %4044 }
0x2908   :  { %v4049_v47 = vmul.f32 0.03125, %v4045_v6 }
0x2909   :  { %v4052_v9 = vadd.f32 1e-12, %v4050_v5 }
0x290a   :  { %v4051_v62 = vadd.f32 1e-12, %v4049_v47 }
0x290b   :  { %10172 = vrsqrt.f32 %v4052_v9 }
0x290c   :  { %10174 = vrsqrt.f32 %v4051_v62 }
0x2915   :  { %v10173_v10 = vpop.eup %10172 }
0x2916   :  { %v10175_v12 = vpop.eup %10174  ;;  %v4056_v13 = vmul.f32 %v10173_v10, %v4040_v39 }
0x2917   :  { %v4055_v7 = vmul.f32 %v10175_v12, %v4039_v24  ;;  %v9859_v24 = vpack.c.bf16 %v8480_v56, %v8479_v55 }
0x2918   :  { %v4062_v15 = vmul.f32 %v8469_v11, %v4056_v13 }
0x2919   :  { %v4061_v16 = vmul.f32 %v8469_v11, %v4055_v7 }
0x291a   :  { %v4068_v1 = vadd.f32 %v8470_v14, %v4062_v15 }
0x291b   :  { %v4067_v17 = vadd.f32 %v8470_v14, %v4061_v16 }
0x291d   :  { %9319 = vmatprep.mubr.msk.f32.mxu1 %vm142_vm1, %v4067_v17 }
0x291e   :  { %9320 = vmatmul.mubr.msk.f32.vlgmr.msra.gmra.mrb[40].mxu1 %vm142_vm1, %v4068_v1 }
0x291f   :  { %9324 = vmatprep.mubr.msk.f32.mxu1 %vm10278_vm2, %v10277_v19 }
0x29f1   :  { %v9321_v18 = vpop.f32.mrb[40].mxu1 }
0x29f2   :  { %v11181_v8 = vadd.f32 %v9321_v18, %v8476_v2  ;;  %v4150_v23 = vpop.f32.mrb[41].mxu1 }
0x29f3   :  { %v11183_v25 = vadd.f32 %v8476_v2, %v4150_v23 }
0x29f4   :  { %4242 = vrot.lane.b32.xlu1 %v11181_v8, %s10279_s21 }
0x29f5   :  { %4165 = vrot.lane.b32.xlu0 %v11183_v25, %s10279_s21 }
0x2a66   :  { %v4243_v28 = vpop.permute.xlu1 %4242 }
0x2a67   :  { %v4166_v27 = vpop.permute.xlu0 %4165 }
0x2a68   :  { %9323 = vmatpush3.xpose.msk.msra.mxu1 %vm280_vm3, %v4166_v27 }
0x2a69   :  { %9327 = vmatprep.subr.mxu1 %v10277_v19 }
0x2a6b   :  { %9325 = vmatmul.mubr.msk.f32.vlgmr.msra.gmra.mrb[42].mxu1 %vm280_vm3, %v11183_v25 }
0x2a6c   :  { %9328 = vmatpush3.xpose.msk.msra.mxu1 %vm280_vm3, %v4243_v28  ;;  %9329 = vmatprep.mubr.msk.f32.mxu1 %vm10278_vm2, %v10277_v19 }
0x2a6d   :  { %9337 = vmatprep.subr.mxu1 %v10277_v19 }
0x2a6f   :  { %9330 = vmatmul.mubr.msk.f32.vlgmr.msra.gmra.mrb[44].mxu1 %vm280_vm3, %v11181_v8 }
0x2a70   :  { %9339 = vmatprep.mubr.msk.f32.mxu1 %vm10278_vm2, %v10277_v19 }
0x2b3e   :  { %v4237_v29 = vpop.f32.mrb[42].mxu1 }
0x2b3f   :  { %v4318_v32 = vmul.f32 0.25, %v4237_v29  ;;  %v9326_v22 = vpop.f32.mrb[43].mxu1 }
0x2b41   :  { %v4320_v33 = vadd.f32 %v4318_v32, %v10479_v31 }
0x2b42   :  { %v4314_v34 = vpop.f32.mrb[44].mxu1 }
0x2b43   :  { %v4319_v35 = vmul.f32 0.25, %v4314_v34  ;;  %v9331_v37 = vpop.f32.mrb[45].mxu1  ;;  %v4322_v40 = vsel %vm436_vm5, %v4320_v33, -inf }
0x2b44   :  { %4323 = vmax.xlane.f32.xlu1 %v4322_v40 }
0x2b45   :  { %v4321_v41 = vadd.f32 %v4319_v35, %v10479_v31 }
0x2b47   :  { %v4325_v42 = vsel %vm436_vm5, %v4321_v41, -inf }
0x2b48   :  { %4326 = vmax.xlane.f32.xlu0 %v4325_v42 }
0x2bd1   :  { %v4324_v44 = vpop.xlane.xlu1 %4323 }
0x2bd2   :  { %v4328_v45 = vsub.f32 %v4320_v33, %v4324_v44 }
0x2bd4   :  { %v4330_v46 = vmul.f32 1.442695, %v4328_v45  ;;  %v8481_v45 = vld [vmem:[%s11949_s1 + $0x398] sm:$0xff] }
0x2bd5   :  { %v4327_v48 = vpop.xlane.xlu0 %4326 }
0x2bd6   :  { %10176 = vpow2.f32 %v4330_v46  ;;  %v4329_v30 = vsub.f32 %v4321_v41, %v4327_v48 }
0x2bd8   :  { %v4332_v36 = vmul.f32 1.442695, %v4329_v30 }
0x2bda   :  { %10178 = vpow2.f32 %v4332_v36 }
0x2be0   :  { %v10177_v50 = vpop.eup %10176 }
0x2be1   :  { %v4334_v51 = vsel %vm436_vm5, %v10177_v50, 0.0 }
0x2be2   :  { %4335 = vadd.xlane.f32.xlu0 %v4334_v51  ;;  %v8492_v51 = vld [vmem:[%s11949_s1 + $0x3a8] ss:$0 sm:$0xff] }
0x2be4   :  { %v10179_v38 = vpop.eup %10178 }
0x2be5   :  { %v4337_v52 = vsel %vm436_vm5, %v10179_v38, 0.0 }
0x2be6   :  { %4338 = vadd.xlane.f32.xlu1 %v4337_v52 }
0x2bf7   :  { %4420 = vrot.lane.b32.xlu1 %v11181_v8, %s10281_s22 }
0x2bf8   :  { %4344 = vrot.lane.b32.xlu0 %v11183_v25, %s10281_s22 }
0x2bfb   :  { %4585 = vrot.lane.b32.xlu1 %v11183_v25, %s10282_s23 }
0x2bfc   :  { %4583 = vrot.lane.b32.xlu0 %v11183_v25, %s10283_s24 }
0x2bff   :  { %4663 = vrot.lane.b32.xlu1 %v11181_v8, %s10282_s23 }
0x2c03   :  { %4661 = vrot.lane.b32.xlu1 %v11181_v8, %s10283_s24 }
0x2c6f   :  { %v4336_v39 = vpop.xlane.xlu0 %4335 }
0x2c70   :  { %10180 = vrcp.f32 %v4336_v39 }
0x2c73   :  { %v4339_v57 = vpop.xlane.xlu1 %4338  ;;  %v4345_v58 = vpop.permute.xlu0 %4344 }
0x2c74   :  { %10182 = vrcp.f32 %v4339_v57  ;;  %9333 = vmatpush3.msra.mxu0 %v4345_v58 }
0x2c75   :  { %9860 = vmatprep.subr.bf16.mxu0 %v9859_v24 }
0x2c77   :  { %v4421_v59 = vpop.permute.xlu1 %4420  ;;  %v4584_v4 = vpop.permute.xlu0 %4583 }
0x2c78   :  { %9338 = vmatpush3.msra.mxu1 %v4421_v59 }
0x2c79   :  { %9349 = vmatprep.subr.mxu1 %v10277_v19 }
0x2c7a   :  { %v10181_v60 = vpop.eup %10180 }
0x2c7b   :  { %v4342_v61 = vmul.f32 %v10181_v60, %v10177_v50  ;;  %v4586_v3 = vpop.permute.xlu1 %4585 }
0x2c7d   :  { %9335 = vmatmul.mubr.msk.f32.vlgmr.msra.gmra.mrb[42].mxu0 %vm436_vm5, %v4342_v61 }
0x2c7e   :  { %v10183_v63 = vpop.eup %10182  ;;  %9862 = vmatpush3.bf16.msra.mxu0 %v9859_v24 }
0x2c7f   :  { %v4343_v43 = vmul.f32 %v10183_v63, %v10179_v38  ;;  %9354 = vmatprep.subr.mxu0 %v10277_v19  ;;  %v4664_v5 = vpop.permute.xlu1 %4663 }
0x2c81   :  { %9340 = vmatmul.mubr.msk.f32.vlgmr.msra.gmra.mrb[46].mxu1 %vm436_vm5, %v4343_v43 }
0x2c82   :  { %9350 = vmatpush3.xpose.msk.msra.mxu1 %vm280_vm3, %v4586_v3  ;;  %9351 = vmatprep.mubr.msk.f32.mxu1 %vm10278_vm2, %v10277_v19 }
0x2c83   :  { %9359 = vmatprep.subr.mxu1 %v10277_v19  ;;  %v4662_v9 = vpop.permute.xlu1 %4661 }
0x2c85   :  { %9352 = vmatmul.mubr.msk.f32.vlgmr.msra.gmra.mrb[48].mxu1 %vm280_vm3, %v4584_v4 }
0x2c86   :  { %9361 = vmatprep.mubr.msk.f32.mxu1 %vm10278_vm2, %v10277_v19 }
0x2d50   :  { %v4416_v53 = vpop.f32.mrb[42].mxu0 }
0x2d51   :  { %v9336_v54 = vpop.f32.mrb[43].mxu0  ;;  %9346 = vmatprep.mubr.msk.f32.mxu0 %vm280_vm3, %v4416_v53 }
0x2d52   :  { %v8505_v54 = vld [vmem:[%s11952_s3 + $0x78] sm:$0xff] }
0x2d54   :  { %v4492_v6 = vpop.f32.mrb[46].mxu1 }
0x2d55   :  { %v9341_v47 = vpop.f32.mrb[47].mxu1  ;;  %9347 = vmatmul.mubr.msk.f32.vlgmr.msra.gmra.mrb[44].mxu0 %vm280_vm3, %v4492_v6 }
0x2d56   :  { %9355 = vmatpush3.xpose.msk.msra.mxu0 %vm280_vm3, %v4664_v5  ;;  %9356 = vmatprep.mubr.msk.f32.mxu0 %vm10278_vm2, %v10277_v19  ;;  %v8506_v5 = vld [vmem:[%s11952_s3 + $0x80] sm:$0xff]  ;;  %v8507_v47 = vld [vmem:[%s11952_s3 + $0x88] sm:$0xff] }
0x2d57   :  { %9364 = vmatprep.subr.mxu0 %v10277_v19  ;;  %v9867_v6 = vpack.c.bf16 %v8506_v5, %v8505_v54  ;;  %v8550_v54 = vld [vmem:[%s11949_s1 + $0x468] sm:$0xff] }
0x2d58   :  { %v4657_v62 = vpop.f32.mrb[48].mxu1 }
0x2d59   :  { %v4739_v10 = vmul.f32 0.25, %v4657_v62  ;;  %v9353_v11 = vpop.f32.mrb[49].mxu1  ;;  %9357 = vmatmul.mubr.msk.f32.vlgmr.msra.gmra.mrb[46].mxu0 %vm280_vm3, %v4662_v9  ;;  %v8508_v9 = vld [vmem:[%s11952_s3 + $0x90] sm:$0xff] }
0x2d5a   :  { %9366 = vmatprep.mubr.msk.f32.mxu0 %vm10278_vm2, %v10277_v19  ;;  %v9871_v62 = vpack.c.bf16 %v8508_v9, %v8507_v47  ;;  %v8552_v47 = vld [vmem:[%s11949_s1 + $0x478] sm:$0xff] }
0x2d5b   :  { %v4741_v12 = vadd.f32 %v4739_v10, %v10479_v31 }
0x2d5d   :  { %v4743_v13 = vsel %vm436_vm5, %v4741_v12, -inf }
0x2d5e   :  { %4744 = vmax.xlane.f32.xlu0 %v4743_v13 }
0x2deb   :  { %v4745_v7 = vpop.xlane.xlu0 %4744 }
0x2dec   :  { %v4749_v14 = vsub.f32 %v4741_v12, %v4745_v7 }
0x2dee   :  { %v4751_v15 = vmul.f32 1.442695, %v4749_v14 }
0x2df0   :  { %10184 = vpow2.f32 %v4751_v15 }
0x2dfa   :  { %v10185_v16 = vpop.eup %10184 }
0x2dfb   :  { %v4755_v17 = vsel %vm436_vm5, %v10185_v16, 0.0 }
0x2dfc   :  { %4756 = vadd.xlane.f32.xlu0 %v4755_v17 }
0x2e2c   :  { %v4735_v1 = vpop.f32.mrb[46].mxu0 }
0x2e2d   :  { %v4740_v2 = vmul.f32 0.25, %v4735_v1  ;;  %v9358_v18 = vpop.f32.mrb[47].mxu0 }
0x2e2e   :  { %v8504_v18 = vld [vmem:[%s11949_s1 + $0x3b8] ss:$0 sm:$0xff] }
0x2e2f   :  { %v4742_v23 = vadd.f32 %v4740_v2, %v10479_v31 }
0x2e31   :  { %v4746_v27 = vsel %vm436_vm5, %v4742_v23, -inf }
0x2e32   :  { %4747 = vmax.xlane.f32.xlu1 %v4746_v27 }
0x2e43   :  { %4841 = vrot.lane.b32.xlu1 %v11181_v8, %s10284_s29 }
0x2e89   :  { %v4757_v35 = vpop.xlane.xlu0 %4756 }
0x2ebf   :  { %v4748_v28 = vpop.xlane.xlu1 %4747 }
0x2ec0   :  { %v4750_v29 = vsub.f32 %v4742_v23, %v4748_v28 }
0x2ec2   :  { %v4753_v32 = vmul.f32 1.442695, %v4750_v29 }
0x2ec3   :  { %v4842_v22 = vpop.permute.xlu1 %4841 }
0x2ec4   :  { %10186 = vpow2.f32 %v4753_v32  ;;  %9365 = vmatpush3.msra.mxu0 %v4842_v22  ;;  %v8513_v32 = vld [vmem:[%s11949_s1 + $0x3c0] sm:$0xff]  ;;  %v8514_v22 = vld [vmem:[%s11949_s1 + $0x3c8] sm:$0xff] }
0x2ec5   :  { %10188 = vrcp.f32 %v4757_v35  ;;  %v8516_v35 = vld [vmem:[%s11949_s1 + $0x3d8] sm:$0xff] }
0x2ece   :  { %v10187_v33 = vpop.eup %10186 }
0x2ecf   :  { %v4758_v34 = vsel %vm436_vm5, %v10187_v33, 0.0  ;;  %v10189_v40 = vpop.eup %10188 }
0x2ed0   :  { %4759 = vadd.xlane.f32.xlu0 %v4758_v34  ;;  %v4763_v41 = vmul.f32 %v10189_v40, %v10185_v16  ;;  %v8503_v16 = vld [vmem:[%s11949_s1 + $0x3b0] ss:$0 sm:$0xff]  ;;  %v8517_v40 = vld [vmem:[%s11949_s1 + $0x3e0] sm:$0xff] }
0x2ed1   :  { %v8515_v34 = vld [vmem:[%s11949_s1 + $0x3d0] sm:$0xff] }
0x2ee6   :  { %4765 = vrot.lane.b32.xlu0 %v11183_v25, %s10284_s29  ;;  %v8482_v25 = vld [vmem:[%s11949_s1 + $0x3a0] sm:$0xff] }
0x2ee7   :  { %v9863_v46 = vpack.c.bf16 %v8482_v25, %v8481_v45  ;;  %v8510_v25 = vld [vmem:[%s11952_s3 + $0x98] ss:$0 sm:$0xff] }
0x2ee9   :  { %9864 = vmatprep.subr.bf16.mxu0 %v9863_v46 }
0x2f5d   :  { %v4760_v37 = vpop.xlane.xlu0 %4759 }
0x2f5e   :  { %10190 = vrcp.f32 %v4760_v37  ;;  %v9879_v37 = vpack.c.bf16 %v8516_v35, %v8515_v34  ;;  %v8567_v35 = vld [vmem:[%s11949_s1 + $0x4f0] sm:$0xff] }
0x2f61   :  { %v4766_v8 = vpop.permute.xlu0 %4765 }
0x2f62   :  { %9360 = vmatpush3.msra.mxu1 %v4766_v8 }
0x2f63   :  { %9362 = vmatmul.mubr.msk.f32.vlgmr.msra.gmra.mrb[50].mxu1 %vm436_vm5, %v4763_v41  ;;  %9868 = vmatprep.subr.bf16.mxu1 %v9867_v6  ;;  %v8518_v41 = vld [vmem:[%s11949_s1 + $0x3e8] sm:$0xff] }
0x2f64   :  { %9870 = vmatpush3.bf16.msra.mxu1 %v9867_v6  ;;  %v9883_v8 = vpack.c.bf16 %v8518_v41, %v8517_v40  ;;  %v8551_v6 = vld [vmem:[%s11949_s1 + $0x470] sm:$0xff]  ;;  %v8541_v41 = vld [vmem:[%s11950_s0 + $0x40] sm:$0xff] }
0x2f65   :  { %9872 = vmatprep.subr.bf16.mxu1 %v9871_v62  ;;  %v9925_v9 = vpack.c.bf16 %v8552_v47, %v8551_v6  ;;  %v8531_v47 = vld [vmem:[%s11949_s1 + $0x428] sm:$0xff] }
0x2f68   :  { %v10191_v42 = vpop.eup %10190  ;;  %9874 = vmatpush3.bf16.msra.mxu1 %v9871_v62  ;;  %v8553_v62 = vld [vmem:[%s11949_s1 + $0x480] sm:$0xff] }
0x2f69   :  { %v4764_v44 = vmul.f32 %v10191_v42, %v10187_v33  ;;  %v9875_v33 = vpack.c.bf16 %v8514_v22, %v8513_v32  ;;  %v8519_v42 = vld [vmem:[%s11949_s1 + $0x3f0] sm:$0xff]  ;;  %v8565_v22 = vld [vmem:[%s11949_s1 + $0x4e0] sm:$0xff] }
0x2f6b   :  { %9367 = vmatmul.mubr.msk.f32.vlgmr.msra.gmra.mrb[48].mxu0 %vm436_vm5, %v4764_v44  ;;  %v8520_v44 = vld [vmem:[%s11949_s1 + $0x3f8] sm:$0xff] }
0x2f6c   :  { %9866 = vmatpush3.bf16.msra.mxu0 %v9863_v46  ;;  %v9887_v45 = vpack.c.bf16 %v8520_v44, %v8519_v42  ;;  %v8543_v42 = vld [vmem:[%s11950_s0 + $0x50] sm:$0xff] }
0x2f6d   :  { %9876 = vmatprep.subr.bf16.mxu0 %v9875_v33 }
0x3036   :  { %v4837_v48 = vpop.f32.mrb[50].mxu1 }
0x3037   :  { %v9363_v30 = vpop.f32.mrb[51].mxu1  ;;  %9373 = vmatprep.mubr.msk.f32.mxu0 %vm280_vm3, %v4837_v48 }
0x303e   :  { %v4913_v36 = vpop.f32.mrb[48].mxu0 }
0x303f   :  { %v9368_v50 = vpop.f32.mrb[49].mxu0  ;;  %9374 = vmatmul.mubr.msk.f32.vlgmr.msra.gmra.mrb[44].mxu0 %vm280_vm3, %v4913_v36 }
0x3040   :  { %9878 = vmatpush3.bf16.msra.mxu0 %v9875_v33  ;;  %v8566_v33 = vld [vmem:[%s11949_s1 + $0x4e8] sm:$0xff] }
0x3041   :  { %9880 = vmatprep.subr.bf16.mxu0 %v9879_v37  ;;  %v9946_v34 = vpack.c.bf16 %v8566_v33, %v8565_v22  ;;  %v8527_v22 = vld [vmem:[%s11949_s1 + $0x408] ss:$0 sm:$0xff] }
0x3044   :  { %9882 = vmatpush3.bf16.msra.mxu0 %v9879_v37  ;;  %v8568_v37 = vld [vmem:[%s11949_s1 + $0x4f8] sm:$0xff] }
0x3045   :  { %9884 = vmatprep.subr.bf16.mxu0 %v9883_v8  ;;  %v9949_v40 = vpack.c.bf16 %v8568_v37, %v8567_v35  ;;  %v8528_v37 = vld [vmem:[%s11949_s1 + $0x410] ss:$0 sm:$0xff] }
0x3048   :  { %9886 = vmatpush3.bf16.msra.mxu0 %v9883_v8  ;;  %v8544_v8 = vld [vmem:[%s11950_s0 + $0x58] sm:$0xff] }
0x3049   :  { %9888 = vmatprep.subr.bf16.mxu0 %v9887_v45 }
0x304c   :  { %9890 = vmatpush3.bf16.msra.mxu0 %v9887_v45 }
0x304d   :  { %9915 = vmatprep.subr.bf16.mxu0 %v10276_v0 }
0x3112   :  { %v9375_v38 = vpop.f32.mrb[44].mxu0 }
0x3113   :  { %v10053_v52 = vadd.f32 %v9375_v38, %v8492_v51  ;;  %v4989_v55 = vpop.f32.mrb[45].mxu0 }
0x3114   :  { %v10054_v56 = vadd.f32 %v8492_v51, %v4989_v55 }
0x3115   :  { %v11269_v39 = vadd.f32 %v10053_v52, %v11143_v49 }
0x3116   :  { %v11272_v24 = vadd.f32 %v10054_v56, %v11145_v26  ;;  %v8545_v56 = vld [vmem:[%s11949_s1 + $0x440] sm:$0xff] }
0x3117   :  { %v5007_v57 = vsel %vm142_vm1, %v11269_v39, 0.0 }
0x3118   :  { %5008 = vadd.xlane.f32.xlu0 %v5007_v57  ;;  %v5004_v58 = vsel %vm142_vm1, %v11272_v24, 0.0  ;;  %v8546_v57 = vld [vmem:[%s11949_s1 + $0x448] sm:$0xff] }
0x3119   :  { %5005 = vadd.xlane.f32.xlu1 %v5004_v58 }
0x31a5   :  { %v5009_v59 = vpop.xlane.xlu0 %5008 }
0x31a6   :  { %v5011_v60 = vmul.f32 0.03125, %v5009_v59  ;;  %v5006_v61 = vpop.xlane.xlu1 %5005 }
0x31a7   :  { %v5010_v63 = vmul.f32 0.03125, %v5006_v61 }
0x31a8   :  { %v5013_v43 = vsub.f32 %v11269_v39, %v5011_v60 }
0x31a9   :  { %v5012_v49 = vsub.f32 %v11272_v24, %v5010_v63  ;;  %v9916_v63 = vpack.c.bf16 %v8546_v57, %v8545_v56 }
0x31aa   :  { %v5015_v3 = vmul.f32 %v5013_v43, %v5013_v43 }
0x31ab   :  { %v5014_v4 = vmul.f32 %v5012_v49, %v5012_v49 }
0x31ac   :  { %v5019_v26 = vsel %vm142_vm1, %v5015_v3, 0.0  ;;  %v8548_v3 = vld [vmem:[%s11949_s1 + $0x458] sm:$0xff] }
0x31ad   :  { %5020 = vadd.xlane.f32.xlu1 %v5019_v26  ;;  %v5016_v53 = vsel %vm142_vm1, %v5014_v4, 0.0  ;;  %v8542_v4 = vld [vmem:[%s11950_s0 + $0x48] sm:$0xff] }
0x31ae   :  { %5017 = vadd.xlane.f32.xlu0 %v5016_v53  ;;  %v8549_v53 = vld [vmem:[%s11949_s1 + $0x460] sm:$0xff] }
0x31af   :  { %v9922_v5 = vpack.c.bf16 %v8550_v54, %v8549_v53  ;;  %v8529_v54 = vld [vmem:[%s11949_s1 + $0x418] sm:$0xff] }
0x323a   :  { %v5021_v10 = vpop.xlane.xlu1 %5020 }
0x323b   :  { %v5023_v11 = vmul.f32 0.03125, %v5021_v10  ;;  %v5018_v12 = vpop.xlane.xlu0 %5017  ;;  %v8554_v10 = vld [vmem:[%s11949_s1 + $0x488] sm:$0xff] }
0x323c   :  { %v5022_v13 = vmul.f32 0.03125, %v5018_v12  ;;  %v8555_v12 = vld [vmem:[%s11949_s1 + $0x490] sm:$0xff] }
0x323d   :  { %v5025_v7 = vadd.f32 1e-12, %v5023_v11  ;;  %v9928_v11 = vpack.c.bf16 %v8554_v10, %v8553_v62 }
0x323e   :  { %v5024_v14 = vadd.f32 1e-12, %v5022_v13  ;;  %v8556_v13 = vld [vmem:[%s11949_s1 + $0x498] sm:$0xff] }
0x323f   :  { %10192 = vrsqrt.f32 %v5025_v7  ;;  %v9931_v7 = vpack.c.bf16 %v8556_v13, %v8555_v12 }
0x3240   :  { %10194 = vrsqrt.f32 %v5024_v14  ;;  %v8557_v14 = vld [vmem:[%s11949_s1 + $0x4a0] sm:$0xff] }
0x3249   :  { %v10193_v15 = vpop.eup %10192 }
0x324a   :  { %v10195_v17 = vpop.eup %10194  ;;  %v5029_v1 = vmul.f32 %v10193_v15, %v5013_v43  ;;  %v8558_v15 = vld [vmem:[%s11949_s1 + $0x4a8] sm:$0xff] }
0x324b   :  { %v5028_v2 = vmul.f32 %v10195_v17, %v5012_v49  ;;  %v8547_v49 = vld [vmem:[%s11949_s1 + $0x450] sm:$0xff] }
0x324c   :  { %v5035_v23 = vmul.f32 %v8503_v16, %v5029_v1  ;;  %v9919_v26 = vpack.c.bf16 %v8548_v3, %v8547_v49  ;;  %v8559_v17 = vld [vmem:[%s11949_s1 + $0x4b0] sm:$0xff]  ;;  %v8560_v1 = vld [vmem:[%s11949_s1 + $0x4b8] sm:$0xff] }
0x324d   :  { %v5034_v27 = vmul.f32 %v8503_v16, %v5028_v2  ;;  %v9934_v16 = vpack.c.bf16 %v8558_v15, %v8557_v14  ;;  %v9937_v2 = vpack.c.bf16 %v8560_v1, %v8559_v17 }
0x324e   :  { %v5041_v29 = vadd.f32 %v8504_v18, %v5035_v23  ;;  %v8562_v23 = vld [vmem:[%s11949_s1 + $0x4c8] sm:$0xff] }
0x324f   :  { %v5040_v28 = vadd.f32 %v8504_v18, %v5034_v27  ;;  %v8561_v18 = vld [vmem:[%s11949_s1 + $0x4c0] sm:$0xff] }
0x3250   :  { %v9940_v27 = vpack.c.bf16 %v8562_v23, %v8561_v18 }
0x3251   :  { %9384 = vmatprep.mubr.msk.f32.mxu1 %vm142_vm1, %v5040_v28  ;;  %v8563_v28 = vld [vmem:[%s11949_s1 + $0x4d0] sm:$0xff] }
0x3252   :  { %9385 = vmatmul.mubr.msk.f32.vlgmr.msra.gmra.mrb[52].mxu1 %vm142_vm1, %v5041_v29  ;;  %v8564_v29 = vld [vmem:[%s11949_s1 + $0x4d8] sm:$0xff] }
0x3253   :  { %v9943_v32 = vpack.c.bf16 %v8564_v29, %v8563_v28 }
0x3325   :  { %v9386_v46 = vpop.f32.mrb[52].mxu1 }
0x3326   :  { %v5129_v48 = vadd.f32 %v9386_v46, %v8510_v25  ;;  %v5123_v30 = vpop.f32.mrb[53].mxu1 }
0x3327   :  { %v5124_v36 = vadd.f32 %v8510_v25, %v5123_v30 }
0x3328   :  { %v5135_v50 = vmul.f32 0.70710677, %v5129_v48  ;;  %v5133_v60 = vmul.f32 0.5, %v5129_v48 }
0x3329   :  { %v5134_v51 = vmul.f32 0.70710677, %v5124_v36  ;;  %v5132_v58 = vmul.f32 0.5, %v5124_v36 }
0x332a   :  { %10196 = verf.f32 %v5135_v50 }
0x332b   :  { %10198 = verf.f32 %v5134_v51 }
0x3334   :  { %v10197_v38 = vpop.eup %10196 }
0x3335   :  { %v10199_v52 = vpop.eup %10198  ;;  %v5139_v55 = vadd.f32 1.0, %v10197_v38 }
0x3336   :  { %v5138_v59 = vadd.f32 1.0, %v10199_v52 }
0x3337   :  { %v5141_v43 = vmul.f32 %v5139_v55, %v5133_v60 }
0x3338   :  { %v5140_v61 = vmul.f32 %v5138_v59, %v5132_v58 }
0x333a   :  { %9403 = vmatprep.mubr.msk.f32.mxu0 %vm55_vm0, %v5140_v61 }
0x333b   :  { %9404 = vmatmul.mubr.msk.f32.vlgmr.msra.gmra.mrb[50].mxu0 %vm55_vm0, %v5141_v43 }
0x333c   :  { %9917 = vmatpush1.bf16.msra.mxu0 %v9916_v63  ;;  %8569 = vmatprep.mubr.msk.f32.mxu0 %vm55_vm0, %v8542_v4 }
0x333d   :  { %9918 = vmatprep.subr.bf16.mxu0 %v10276_v0 }
0x3340   :  { %9920 = vmatpush1.bf16.msra.mxu0 %v9919_v26 }
0x3341   :  { %9921 = vmatprep.subr.bf16.mxu0 %v10276_v0 }
0x3344   :  { %9923 = vmatpush1.bf16.msra.mxu0 %v9922_v5  ;;  %v8530_v5 = vld [vmem:[%s11949_s1 + $0x420] sm:$0xff] }
0x3345   :  { %9924 = vmatprep.subr.bf16.mxu0 %v10276_v0  ;;  %v9891_v6 = vpack.c.bf16 %v8530_v5, %v8529_v54 }
0x3347   :  { %9892 = vmatprep.subr.bf16.mxu1 %v9891_v6 }
0x3348   :  { %9926 = vmatpush1.bf16.msra.mxu0 %v9925_v9  ;;  %v8532_v9 = vld [vmem:[%s11949_s1 + $0x430] sm:$0xff]  ;;  %9894 = vmatpush3.bf16.msra.mxu1 %v9891_v6  ;;  %v8577_v6 = vld [vmem:[%s11951_s2 + $0xa8] sm:$0xff] }
0x3349   :  { %9927 = vmatprep.subr.bf16.mxu0 %v10276_v0  ;;  %v9895_v62 = vpack.c.bf16 %v8532_v9, %v8531_v47 }
0x334b   :  { %9896 = vmatprep.subr.bf16.mxu1 %v9895_v62 }
0x334c   :  { %9929 = vmatpush1.bf16.msra.mxu0 %v9928_v11  ;;  %9898 = vmatpush3.bf16.msra.mxu1 %v9895_v62  ;;  %v8574_v62 = vld [vmem:[%s11949_s1 + $0x508] ss:$0 sm:$0xff] }
0x334d   :  { %9930 = vmatprep.subr.bf16.mxu0 %v10276_v0 }
0x3350   :  { %9932 = vmatpush1.bf16.msra.mxu0 %v9931_v7 }
0x3351   :  { %9933 = vmatprep.subr.bf16.mxu0 %v10276_v0 }
0x3354   :  { %9935 = vmatpush1.bf16.msra.mxu0 %v9934_v16 }
0x3355   :  { %9936 = vmatprep.subr.bf16.mxu0 %v10276_v0 }
0x3358   :  { %9938 = vmatpush1.bf16.msra.mxu0 %v9937_v2 }
0x3359   :  { %9939 = vmatprep.subr.bf16.mxu0 %v10276_v0 }
0x335c   :  { %9941 = vmatpush1.bf16.msra.mxu0 %v9940_v27 }
0x335d   :  { %9942 = vmatprep.subr.bf16.mxu0 %v10276_v0 }
0x3360   :  { %9944 = vmatpush1.bf16.msra.mxu0 %v9943_v32 }
0x3361   :  { %9945 = vmatprep.subr.bf16.mxu0 %v10276_v0 }
0x3364   :  { %9947 = vmatpush1.bf16.msra.mxu0 %v9946_v34 }
0x3365   :  { %9948 = vmatprep.subr.bf16.mxu0 %v10276_v0  ;;  %v8524_v0 = vld [vmem:[%s11949_s1 + $0x400] ss:$0 sm:$0xff] }
0x3368   :  { %9950 = vmatpush1.bf16.msra.mxu0 %v9949_v40 }
0x336b   :  { %5639 = vmatmul.mubr.f32.vlgmr.msra.gmra.mrb[52].mxu0 %v8541_v41 }
0x336c   :  { %8570 = vmatprep.mubr.msk.f32.mxu0 %vm55_vm0, %v8544_v8 }
0x336f   :  { %5644 = vmatmul.mubr.f32.gmra.mrb[54].mxu0 %v8543_v42 }
0x340e   :  { %v9405_v44 = vpop.f32.mrb[50].mxu0 }
0x340f   :  { %v5232_v45 = vadd.f32 %v9405_v44, %v11269_v39  ;;  %v5222_v25 = vpop.f32.mrb[51].mxu0  ;;  %v8571_v39 = vld [vmem:[%s11949_s1 + $0x500] sm:$0xff] }
0x3410   :  { %v5231_v46 = vadd.f32 %v5222_v25, %v11272_v24  ;;  %v5372_v44 = vld [vmem:[%s11953_s4 + $0x20] sm:$0xff] }
0x3411   :  { %v5239_v48 = vadd.f32 %v8524_v0, %v5232_v45  ;;  %v5374_v45 = vld [vmem:[%s11953_s4 + $0x30] sm:$0xff] }
0x3412   :  { %v5238_v30 = vadd.f32 %v8524_v0, %v5231_v46  ;;  %v5373_v0 = vld [vmem:[%s11953_s4 + $0x28] sm:$0xff]  ;;  %v5375_v46 = vld [vmem:[%s11953_s4 + $0x38] sm:$0xff] }
0x3413   :  { %v5245_v36 = vsel %vm142_vm1, %v5239_v48, 0.0  ;;  %v9899_v25 = vpack.c.bf16 %v5373_v0, %v5372_v44 }
0x3414   :  { %5246 = vadd.xlane.f32.xlu1 %v5245_v36  ;;  %v5242_v50 = vsel %vm142_vm1, %v5238_v30, 0.0  ;;  %v2699_v36 = vld [vmem:[%s11953_s4 + $0x8] sm:$0xff] }
0x3415   :  { %5243 = vadd.xlane.f32.xlu0 %v5242_v50  ;;  %9900 = vmatprep.subr.bf16.mxu1 %v9899_v25 }
0x343e   :  { %v5640_v51 = vpop.f32.mrb[52].mxu0 }
0x343f   :  { %v5642_v38 = vpop.f32.mrb[53].mxu0  ;;  %v11441_v43 = vadd.f32 %v8571_v39, %v5640_v51 }
0x3441   :  { %v5654_v53 = vsel %vm142_vm1, %v11441_v43, 0.0 }
0x3442   :  { %v5645_v52 = vpop.f32.mrb[54].mxu0 }
0x3443   :  { %v5647_v55 = vpop.f32.mrb[55].mxu0  ;;  %v11439_v63 = vadd.f32 %v8571_v39, %v5645_v52 }
0x3445   :  { %v5657_v26 = vsel %vm142_vm1, %v11439_v63, 0.0 }
0x34a1   :  { %v5247_v56 = vpop.xlane.xlu1 %5246 }
0x34a2   :  { %v5249_v57 = vmul.f32 0.03125, %v5247_v56  ;;  %v5244_v58 = vpop.xlane.xlu0 %5243  ;;  %v8534_v56 = vld [vmem:[%s11949_s1 + $0x438] ss:$0 sm:$0xff] }
0x34a3   :  { %v5248_v59 = vmul.f32 0.03125, %v5244_v58 }
0x34a4   :  { %v5251_v24 = vsub.f32 %v5239_v48, %v5249_v57  ;;  %v9903_v48 = vpack.c.bf16 %v5375_v46, %v5374_v45  ;;  %v8375_v57 = vld [vmem:[%s11949_s1 + $0x218] ss:$0 sm:$0xff] }
0x34a5   :  { %v5250_v60 = vsub.f32 %v5238_v30, %v5248_v59  ;;  %v2698_v30 = vld [vmem:[%s11953_s4] sm:$0xff] }
0x34a6   :  { %v5253_v61 = vmul.f32 %v5251_v24, %v5251_v24  ;;  %v9907_v50 = vpack.c.bf16 %v2699_v36, %v2698_v30 }
0x34a7   :  { %v5252_v49 = vmul.f32 %v5250_v60, %v5250_v60 }
0x34a8   :  { %v5257_v3 = vsel %vm142_vm1, %v5253_v61, 0.0 }
0x34a9   :  { %5258 = vadd.xlane.f32.xlu1 %v5257_v3  ;;  %v5254_v4 = vsel %vm142_vm1, %v5252_v49, 0.0  ;;  %v2693_v3 = vadd.f32 %v10937_v20, %v8375_v57  ;;  %v8576_v20 = vld [vmem:[%s11951_s2 + $0xa0] sm:$0xff] }
0x34aa   :  { %5255 = vadd.xlane.f32.xlu0 %v5254_v4  ;;  %v2700_v4 = vld [vmem:[%s11953_s4 + $0x10] sm:$0xff] }
0x34ad   :  { %5658 = vadd.xlane.f32.xlu1 %v5657_v26  ;;  %v2701_v26 = vld [vmem:[%s11953_s4 + $0x18] sm:$0xff] }
0x34ae   :  { %5655 = vadd.xlane.f32.xlu0 %v5654_v53  ;;  %v9911_v54 = vpack.c.bf16 %v2701_v26, %v2700_v4 }
0x3536   :  { %v5259_v10 = vpop.xlane.xlu1 %5258 }
0x3537   :  { %v5261_v11 = vmul.f32 0.03125, %v5259_v10  ;;  %v5256_v12 = vpop.xlane.xlu0 %5255  ;;  %v9951_v10 = vpack.c.bf16 %v8577_v6, %v8576_v20 }
0x3538   :  { %v5260_v13 = vmul.f32 0.03125, %v5256_v12 }
0x3539   :  { %v5263_v7 = vadd.f32 1e-12, %v5261_v11 }
0x353a   :  { %v5262_v14 = vadd.f32 1e-12, %v5260_v13  ;;  %v5659_v15 = vpop.xlane.xlu1 %5658  ;;  %v8578_v13 = vld [vmem:[%s11951_s2 + $0xb0] sm:$0xff] }
0x353b   :  { %10200 = vrsqrt.f32 %v5263_v7  ;;  %v5661_v16 = vmul.f32 0.03125, %v5659_v15  ;;  %v5656_v17 = vpop.xlane.xlu0 %5655  ;;  %v8579_v7 = vld [vmem:[%s11951_s2 + $0xb8] sm:$0xff] }
0x353c   :  { %10202 = vrsqrt.f32 %v5262_v14  ;;  %v5660_v1 = vmul.f32 0.03125, %v5656_v17  ;;  %v8575_v14 = vld [vmem:[%s11949_s1 + $0x510] ss:$0 sm:$0xff] }
0x353d   :  { %v11462_v2 = vsub.f32 %v11439_v63, %v5661_v16  ;;  %v9955_v16 = vpack.c.bf16 %v8579_v7, %v8578_v13 }
0x353e   :  { %v11465_v18 = vsub.f32 %v11441_v43, %v5660_v1 }
0x353f   :  { %v5665_v23 = vmul.f32 %v11462_v2, %v11462_v2 }
0x3540   :  { %v5664_v27 = vmul.f32 %v11465_v18, %v11465_v18 }
0x3541   :  { %v5669_v28 = vsel %vm142_vm1, %v5665_v23, 0.0 }
0x3542   :  { %5670 = vadd.xlane.f32.xlu1 %v5669_v28  ;;  %v5666_v29 = vsel %vm142_vm1, %v5664_v27, 0.0 }
0x3543   :  { %5667 = vadd.xlane.f32.xlu0 %v5666_v29 }
0x3545   :  { %v10201_v32 = vpop.eup %10200 }
0x3546   :  { %v10203_v33 = vpop.eup %10202  ;;  %v5267_v34 = vmul.f32 %v10201_v32, %v5251_v24 }
0x3547   :  { %v5266_v35 = vmul.f32 %v10203_v33, %v5250_v60  ;;  %v2688_v60 = vadd.f32 %v8375_v57, %v10939_v21 }
0x3548   :  { %v5273_v40 = vmul.f32 %v8527_v22, %v5267_v34 }
0x3549   :  { %v5272_v41 = vmul.f32 %v8527_v22, %v5266_v35 }
0x354a   :  { %v5279_v42 = vadd.f32 %v8528_v37, %v5273_v40 }
0x354b   :  { %v5278_v8 = vadd.f32 %v8528_v37, %v5272_v41 }
0x354d   :  { %9414 = vmatprep.mubr.msk.f32.mxu1 %vm142_vm1, %v5278_v8 }
0x354e   :  { %9415 = vmatmul.mubr.msk.f32.vlgmr.msra.gmra.mrb[54].mxu1 %vm142_vm1, %v5279_v42 }
0x354f   :  { %9902 = vmatpush3.bf16.msra.mxu1 %v9899_v25 }
0x3550   :  { %9904 = vmatprep.subr.bf16.mxu1 %v9903_v48 }
0x3553   :  { %9906 = vmatpush3.bf16.msra.mxu1 %v9903_v48 }
0x3554   :  { %9908 = vmatprep.subr.bf16.mxu1 %v9907_v50 }
0x35cf   :  { %v5671_v52 = vpop.xlane.xlu1 %5670 }
0x35d0   :  { %v5668_v51 = vpop.xlane.xlu0 %5667  ;;  %v5673_v59 = vmul.f32 0.03125, %v5671_v52 }
0x35d1   :  { %v5672_v38 = vmul.f32 0.03125, %v5668_v51 }
0x35d2   :  { %v5675_v49 = vadd.f32 1e-12, %v5673_v59  ;;  %v8584_v59 = vld [vmem:[%s11949_s1 + $0x518] sm:$0xff] }
0x35d3   :  { %v5674_v55 = vadd.f32 1e-12, %v5672_v38 }
0x35d5   :  { %10204 = vrsqrt.f32 %v5674_v55 }
0x35df   :  { %v10205_v53 = vpop.eup %10204 }
0x35e0   :  { %v5678_v47 = vmul.f32 %v10205_v53, %v11465_v18 }
0x35e2   :  { %v5684_v12 = vmul.f32 %v8574_v62, %v5678_v47 }
0x35e4   :  { %v5690_v1 = vadd.f32 %v8575_v14, %v5684_v12 }
0x3621   :  { %v9416_v58 = vpop.f32.mrb[54].mxu1 }
0x3622   :  { %v5367_v39 = vadd.f32 %v9416_v58, %v8534_v56  ;;  %v5361_v24 = vpop.f32.mrb[55].mxu1 }
0x3623   :  { %v5362_v61 = vadd.f32 %v8534_v56, %v5361_v24 }
0x3625   :  { %10206 = vtanh.f32 %v5362_v61 }
0x3626   :  { %10208 = vtanh.f32 %v5367_v39  ;;  %v8585_v39 = vld [vmem:[%s11949_s1 + $0x520] sm:$0xff] }
0x3627   :  { %10210 = vtanh.f32 %v2688_v60  ;;  %v9959_v61 = vpack.c.bf16 %v8585_v39, %v8584_v59 }
0x3628   :  { %10212 = vrsqrt.f32 %v5675_v49 }
0x3629   :  { %10214 = vtanh.f32 %v2693_v3 }
0x362f   :  { %v10207_v21 = vpop.eup %10206 }
0x3630   :  { %v10209_v5 = vpop.eup %10208  ;;  %9425 = vmatprep.mubr.msk.f32.mxu1 %vm142_vm1, %v10207_v21 }
0x3631   :  { %v10211_v9 = vpop.eup %10210  ;;  %9426 = vmatmul.mubr.msk.f32.vlgmr.msra.gmra.mrb[56].mxu1 %vm142_vm1, %v10209_v5 }
0x3632   :  { %9910 = vmatpush3.bf16.msra.mxu1 %v9907_v50  ;;  %9436 = vmatprep.mubr.msk.f32.mxu1 %vm142_vm1, %v10211_v9  ;;  %v10213_v11 = vpop.eup %10212 }
0x3633   :  { %9912 = vmatprep.subr.bf16.mxu1 %v9911_v54  ;;  %v5679_v15 = vmul.f32 %v10213_v11, %v11462_v2  ;;  %v10215_v17 = vpop.eup %10214  ;;  %v8581_v2 = vld [vmem:[%s11951_s2 + $0xc0] ss:$0 sm:$0xff] }
0x3635   :  { %v5685_v18 = vmul.f32 %v8574_v62, %v5679_v15 }
0x3636   :  { %9914 = vmatpush3.bf16.msra.mxu1 %v9911_v54 }
0x3637   :  { %9952 = vmatprep.subr.bf16.mxu1 %v9951_v10  ;;  %v5691_v23 = vadd.f32 %v8575_v14, %v5685_v18 }
0x3639   :  { %9437 = vmatmul.mubr.msk.f32.vlgmr.msra.gmra.mrb[56].mxu1 %vm142_vm1, %v10215_v17 }
0x363a   :  { %9954 = vmatpush3.bf16.msra.mxu1 %v9951_v10  ;;  %9447 = vmatprep.mubr.msk.f32.mxu1 %vm142_vm1, %v5690_v1 }
0x363b   :  { %9956 = vmatprep.subr.bf16.mxu1 %v9955_v16 }
0x363e   :  { %9958 = vmatpush3.bf16.msra.mxu1 %v9955_v16 }
0x363f   :  { %9450 = vmatprep.subr.mxu1 %v10277_v19 }
0x3641   :  { %9448 = vmatmul.mubr.msk.f32.vlgmr.msra.gmra.mrb[58].mxu1 %vm142_vm1, %v5691_v23 }
0x3642   :  { %9452 = vmatprep.mubr.msk.f32.mxu1 %vm10278_vm2, %v10277_v19 }
0x3714   :  { %v9449_v27 = vpop.f32.mrb[58].mxu1 }
0x3715   :  { %v11545_v28 = vadd.f32 %v9449_v27, %v8581_v2  ;;  %v5774_v29 = vpop.f32.mrb[59].mxu1 }
0x3716   :  { %v11547_v32 = vadd.f32 %v8581_v2, %v5774_v29 }
0x3717   :  { %5866 = vrot.lane.b32.xlu1 %v11545_v28, %s10279_s21 }
0x3718   :  { %5789 = vrot.lane.b32.xlu0 %v11547_v32, %s10279_s21 }
0x3789   :  { %v5867_v33 = vpop.permute.xlu1 %5866 }
0x378a   :  { %v5790_v22 = vpop.permute.xlu0 %5789 }
0x378b   :  { %9451 = vmatpush3.xpose.msk.msra.mxu1 %vm280_vm3, %v5790_v22 }
0x378c   :  { %9455 = vmatprep.subr.mxu1 %v10277_v19 }
0x378e   :  { %9453 = vmatmul.mubr.msk.f32.vlgmr.msra.gmra.mrb[60].mxu1 %vm280_vm3, %v11547_v32 }
0x378f   :  { %9456 = vmatpush3.xpose.msk.msra.mxu1 %vm280_vm3, %v5867_v33  ;;  %9457 = vmatprep.mubr.msk.f32.mxu1 %vm10278_vm2, %v10277_v19 }
0x3790   :  { %9460 = vmatprep.subr.mxu1 %v10277_v19 }
0x3792   :  { %9458 = vmatmul.mubr.msk.f32.vlgmr.msra.gmra.mrb[62].mxu1 %vm280_vm3, %v11545_v28 }
0x3793   :  { %9462 = vmatprep.mubr.msk.f32.mxu1 %vm10278_vm2, %v10277_v19 }
0x3861   :  { %v5861_v34 = vpop.f32.mrb[60].mxu1 }
0x3862   :  { %v5942_v35 = vmul.f32 0.25, %v5861_v34  ;;  %v9454_v37 = vpop.f32.mrb[61].mxu1 }
0x3864   :  { %v5944_v40 = vadd.f32 %v5942_v35, %v10479_v31 }
0x3865   :  { %v5938_v41 = vpop.f32.mrb[62].mxu1 }
0x3866   :  { %v5943_v8 = vmul.f32 0.25, %v5938_v41  ;;  %v9459_v42 = vpop.f32.mrb[63].mxu1  ;;  %v5946_v44 = vsel %vm436_vm5, %v5944_v40, -inf }
0x3867   :  { %5947 = vmax.xlane.f32.xlu1 %v5946_v44 }
0x3868   :  { %v5945_v0 = vadd.f32 %v5943_v8, %v10479_v31 }
0x386a   :  { %v5949_v45 = vsel %vm436_vm5, %v5945_v0, -inf }
0x386b   :  { %5950 = vmax.xlane.f32.xlu0 %v5949_v45 }
0x38f4   :  { %v5948_v25 = vpop.xlane.xlu1 %5947 }
0x38f5   :  { %v5952_v46 = vsub.f32 %v5944_v40, %v5948_v25 }
0x38f7   :  { %v5954_v48 = vmul.f32 1.442695, %v5952_v46 }
0x38f8   :  { %v5951_v30 = vpop.xlane.xlu0 %5950 }
0x38f9   :  { %10216 = vpow2.f32 %v5954_v48  ;;  %v5953_v36 = vsub.f32 %v5945_v0, %v5951_v30  ;;  %v8587_v0 = vld [vmem:[%s11949_s1 + $0x530] sm:$0xff] }
0x38fb   :  { %v5956_v50 = vmul.f32 1.442695, %v5953_v36  ;;  %v8597_v36 = vld [vmem:[%s11949_s1 + $0x538] ss:$0 sm:$0xff] }
0x38fd   :  { %10218 = vpow2.f32 %v5956_v50 }
0x3903   :  { %v10217_v51 = vpop.eup %10216 }
0x3904   :  { %v5958_v38 = vsel %vm436_vm5, %v10217_v51, 0.0 }
0x3905   :  { %5959 = vadd.xlane.f32.xlu0 %v5958_v38 }
0x3907   :  { %v10219_v52 = vpop.eup %10218 }
0x3908   :  { %v5961_v55 = vsel %vm436_vm5, %v10219_v52, 0.0 }
0x3909   :  { %5962 = vadd.xlane.f32.xlu1 %v5961_v55 }
0x391a   :  { %6044 = vrot.lane.b32.xlu1 %v11545_v28, %s10281_s22 }
0x391b   :  { %5968 = vrot.lane.b32.xlu0 %v11547_v32, %s10281_s22 }
0x391e   :  { %6209 = vrot.lane.b32.xlu1 %v11547_v32, %s10282_s23 }
0x391f   :  { %6287 = vrot.lane.b32.xlu0 %v11545_v28, %s10282_s23 }
0x3922   :  { %6207 = vrot.lane.b32.xlu1 %v11547_v32, %s10283_s24 }
0x3926   :  { %6285 = vrot.lane.b32.xlu1 %v11545_v28, %s10283_s24 }
0x3992   :  { %v5960_v56 = vpop.xlane.xlu0 %5959 }
0x3993   :  { %10220 = vrcp.f32 %v5960_v56 }
0x3996   :  { %v5963_v57 = vpop.xlane.xlu1 %5962  ;;  %v5969_v58 = vpop.permute.xlu0 %5968 }
0x3997   :  { %10222 = vrcp.f32 %v5963_v57  ;;  %9461 = vmatpush3.msra.mxu1 %v5969_v58 }
0x3998   :  { %9465 = vmatprep.subr.mxu1 %v10277_v19 }
0x399a   :  { %v6045_v49 = vpop.permute.xlu1 %6044  ;;  %v6288_v6 = vpop.permute.xlu0 %6287 }
0x399d   :  { %v10221_v24 = vpop.eup %10220 }
0x399e   :  { %v5966_v60 = vmul.f32 %v10221_v24, %v10217_v51  ;;  %v6210_v26 = vpop.permute.xlu1 %6209 }
0x39a0   :  { %9463 = vmatmul.mubr.msk.f32.vlgmr.msra.gmra.mrb[64].mxu1 %vm436_vm5, %v5966_v60 }
0x39a1   :  { %v10223_v3 = vpop.eup %10222  ;;  %9466 = vmatpush3.msra.mxu1 %v6045_v49  ;;  %9467 = vmatprep.mubr.msk.f32.mxu1 %vm10278_vm2, %v10277_v19 }
0x39a2   :  { %v5967_v4 = vmul.f32 %v10223_v3, %v10219_v52  ;;  %9960 = vmatprep.subr.bf16.mxu1 %v9959_v61  ;;  %v6208_v20 = vpop.permute.xlu1 %6207 }
0x39a4   :  { %9468 = vmatmul.mubr.msk.f32.vlgmr.msra.gmra.mrb[66].mxu1 %vm436_vm5, %v5967_v4 }
0x39a5   :  { %9962 = vmatpush3.bf16.msra.mxu1 %v9959_v61 }
0x39a6   :  { %9477 = vmatprep.subr.mxu1 %v10277_v19  ;;  %v6286_v47 = vpop.permute.xlu1 %6285 }
0x3a73   :  { %v6040_v53 = vpop.f32.mrb[64].mxu1 }
0x3a74   :  { %v9464_v21 = vpop.f32.mrb[65].mxu1  ;;  %9474 = vmatprep.mubr.msk.f32.mxu1 %vm280_vm3, %v6040_v53  ;;  %v8611_v53 = vld [vmem:[%s11952_s3 + $0xa8] sm:$0xff] }
0x3a77   :  { %v6116_v54 = vpop.f32.mrb[66].mxu1 }
0x3a78   :  { %v9469_v5 = vpop.f32.mrb[67].mxu1  ;;  %9475 = vmatmul.mubr.msk.f32.vlgmr.msra.gmra.mrb[68].mxu1 %vm280_vm3, %v6116_v54  ;;  %v8612_v54 = vld [vmem:[%s11952_s3 + $0xb0] sm:$0xff] }
0x3a79   :  { %9478 = vmatpush3.xpose.msk.msra.mxu1 %vm280_vm3, %v6210_v26  ;;  %9479 = vmatprep.mubr.msk.f32.mxu1 %vm10278_vm2, %v10277_v19  ;;  %v8610_v26 = vld [vmem:[%s11952_s3 + $0xa0] sm:$0xff]  ;;  %v8613_v5 = vld [vmem:[%s11952_s3 + $0xb8] sm:$0xff] }
0x3a7a   :  { %9482 = vmatprep.subr.mxu1 %v10277_v19  ;;  %v9967_v21 = vpack.c.bf16 %v8611_v53, %v8610_v26 }
0x3a7c   :  { %9480 = vmatmul.mubr.msk.f32.vlgmr.msra.gmra.mrb[70].mxu1 %vm280_vm3, %v6208_v20  ;;  %9968 = vmatprep.subr.bf16.mxu0 %v9967_v21  ;;  %v9971_v20 = vpack.c.bf16 %v8613_v5, %v8612_v54 }
0x3a7d   :  { %9483 = vmatpush3.xpose.msk.msra.mxu1 %vm280_vm3, %v6288_v6  ;;  %9484 = vmatprep.mubr.msk.f32.mxu1 %vm10278_vm2, %v10277_v19 }
0x3a7e   :  { %9487 = vmatprep.subr.mxu1 %v10277_v19  ;;  %9970 = vmatpush3.bf16.msra.mxu0 %v9967_v21 }
0x3a7f   :  { %9972 = vmatprep.subr.bf16.mxu0 %v9971_v20 }
0x3a80   :  { %9485 = vmatmul.mubr.msk.f32.vlgmr.msra.gmra.mrb[72].mxu1 %vm280_vm3, %v6286_v47 }
0x3a81   :  { %9489 = vmatprep.mubr.msk.f32.mxu1 %vm10278_vm2, %v10277_v19 }
0x3a82   :  { %9974 = vmatpush3.bf16.msra.mxu0 %v9971_v20 }
0x3b4f   :  { %v6281_v9 = vpop.f32.mrb[70].mxu1 }
0x3b50   :  { %v6363_v62 = vmul.f32 0.25, %v6281_v9  ;;  %v9481_v10 = vpop.f32.mrb[71].mxu1 }
0x3b52   :  { %v6365_v11 = vadd.f32 %v6363_v62, %v10479_v31 }
0x3b53   :  { %v6359_v12 = vpop.f32.mrb[72].mxu1 }
0x3b54   :  { %v6364_v13 = vmul.f32 0.25, %v6359_v12  ;;  %v9486_v7 = vpop.f32.mrb[73].mxu1  ;;  %v6367_v14 = vsel %vm436_vm5, %v6365_v11, -inf }
0x3b55   :  { %6368 = vmax.xlane.f32.xlu0 %v6367_v14 }
0x3b56   :  { %v6366_v15 = vadd.f32 %v6364_v13, %v10479_v31  ;;  %v8608_v13 = vld [vmem:[%s11949_s1 + $0x540] ss:$0 sm:$0xff] }
0x3b58   :  { %v6370_v16 = vsel %vm436_vm5, %v6366_v15, -inf }
0x3b59   :  { %6371 = vmax.xlane.f32.xlu1 %v6370_v16  ;;  %v8609_v16 = vld [vmem:[%s11949_s1 + $0x548] ss:$0 sm:$0xff] }
0x3b6a   :  { %6465 = vrot.lane.b32.xlu1 %v11545_v28, %s10284_s29 }
0x3be2   :  { %v6369_v17 = vpop.xlane.xlu0 %6368 }
0x3be3   :  { %v6373_v1 = vsub.f32 %v6365_v11, %v6369_v17 }
0x3be5   :  { %v6375_v18 = vmul.f32 1.442695, %v6373_v1 }
0x3be6   :  { %v6372_v23 = vpop.xlane.xlu1 %6371 }
0x3be7   :  { %10224 = vpow2.f32 %v6375_v18  ;;  %v6374_v2 = vsub.f32 %v6366_v15, %v6372_v23 }
0x3be9   :  { %v6377_v27 = vmul.f32 1.442695, %v6374_v2  ;;  %v8618_v2 = vld [vmem:[%s11949_s1 + $0x550] sm:$0xff] }
0x3bea   :  { %v6466_v8 = vpop.permute.xlu1 %6465 }
0x3beb   :  { %10226 = vpow2.f32 %v6377_v27  ;;  %v8619_v27 = vld [vmem:[%s11949_s1 + $0x558] sm:$0xff] }
0x3bf1   :  { %v10225_v29 = vpop.eup %10224 }
0x3bf2   :  { %v6379_v22 = vsel %vm436_vm5, %v10225_v29, 0.0 }
0x3bf3   :  { %6380 = vadd.xlane.f32.xlu0 %v6379_v22  ;;  %v8620_v22 = vld [vmem:[%s11949_s1 + $0x560] sm:$0xff] }
0x3bf5   :  { %v10227_v33 = vpop.eup %10226 }
0x3bf6   :  { %v6382_v34 = vsel %vm436_vm5, %v10227_v33, 0.0 }
0x3bf7   :  { %6383 = vadd.xlane.f32.xlu0 %v6382_v34 }
0x3c0d   :  { %6389 = vrot.lane.b32.xlu0 %v11547_v32, %s10284_s29  ;;  %v8586_v32 = vld [vmem:[%s11949_s1 + $0x528] sm:$0xff] }
0x3c0e   :  { %v9963_v45 = vpack.c.bf16 %v8587_v0, %v8586_v32 }
0x3c80   :  { %v6381_v28 = vpop.xlane.xlu0 %6380 }
0x3c81   :  { %10228 = vrcp.f32 %v6381_v28  ;;  %v8622_v28 = vld [vmem:[%s11949_s1 + $0x570] sm:$0xff] }
0x3c84   :  { %v6384_v35 = vpop.xlane.xlu0 %6383 }
0x3c85   :  { %10230 = vrcp.f32 %v6384_v35  ;;  %v8623_v35 = vld [vmem:[%s11949_s1 + $0x578] sm:$0xff] }
0x3c88   :  { %v6390_v37 = vpop.permute.xlu0 %6389 }
0x3c89   :  { %9488 = vmatpush3.msra.mxu1 %v6390_v37  ;;  %v9983_v37 = vpack.c.bf16 %v8623_v35, %v8622_v28  ;;  %v8639_v28 = vld [vmem:[%s11951_s2 + $0xe8] ss:$0 sm:$0xff] }
0x3c8a   :  { %9492 = vmatprep.subr.mxu1 %v10277_v19 }
0x3c8b   :  { %v10229_v40 = vpop.eup %10228 }
0x3c8c   :  { %v6387_v41 = vmul.f32 %v10229_v40, %v10225_v29  ;;  %v9975_v29 = vpack.c.bf16 %v8619_v27, %v8618_v2  ;;  %v8624_v40 = vld [vmem:[%s11949_s1 + $0x580] sm:$0xff] }
0x3c8d   :  { %v8633_v27 = vld [vmem:[%s11949_s1 + $0x5a0] ss:$0 sm:$0xff] }
0x3c8e   :  { %9490 = vmatmul.mubr.msk.f32.vlgmr.msra.gmra.mrb[74].mxu1 %vm436_vm5, %v6387_v41  ;;  %9976 = vmatprep.subr.bf16.mxu0 %v9975_v29  ;;  %v8625_v41 = vld [vmem:[%s11949_s1 + $0x588] sm:$0xff] }
0x3c8f   :  { %v10231_v42 = vpop.eup %10230  ;;  %9493 = vmatpush3.msra.mxu1 %v6466_v8  ;;  %9494 = vmatprep.mubr.msk.f32.mxu1 %vm10278_vm2, %v10277_v19  ;;  %v9987_v8 = vpack.c.bf16 %v8625_v41, %v8624_v40 }
0x3c90   :  { %v6388_v44 = vmul.f32 %v10231_v42, %v10227_v33  ;;  %9964 = vmatprep.subr.bf16.mxu1 %v9963_v45  ;;  %v8621_v33 = vld [vmem:[%s11949_s1 + $0x568] sm:$0xff]  ;;  %v8615_v42 = vld [vmem:[%s11952_s3 + $0xc0] ss:$0 sm:$0xff] }
0x3c91   :  { %v9979_v34 = vpack.c.bf16 %v8621_v33, %v8620_v22 }
0x3c92   :  { %9495 = vmatmul.mubr.msk.f32.vlgmr.msra.gmra.mrb[76].mxu1 %vm436_vm5, %v6388_v44 }
0x3c93   :  { %9966 = vmatpush3.bf16.msra.mxu1 %v9963_v45 }
0x3d61   :  { %v6461_v25 = vpop.f32.mrb[74].mxu1 }
0x3d62   :  { %v9491_v46 = vpop.f32.mrb[75].mxu1  ;;  %9501 = vmatprep.mubr.msk.f32.mxu1 %vm280_vm3, %v6461_v25 }
0x3d65   :  { %v6537_v48 = vpop.f32.mrb[76].mxu1 }
0x3d66   :  { %v9496_v30 = vpop.f32.mrb[77].mxu1  ;;  %9502 = vmatmul.mubr.msk.f32.vlgmr.msra.gmra.mrb[68].mxu1 %vm280_vm3, %v6537_v48 }
0x3e39   :  { %v9503_v50 = vpop.f32.mrb[68].mxu1 }
0x3e3a   :  { %v10055_v51 = vadd.f32 %v9503_v50, %v8597_v36  ;;  %v6613_v38 = vpop.f32.mrb[69].mxu1 }
0x3e3b   :  { %v10056_v52 = vadd.f32 %v8597_v36, %v6613_v38 }
0x3e3c   :  { %v11636_v55 = vadd.f32 %v10055_v51, %v11439_v63 }
0x3e3d   :  { %v11639_v56 = vadd.f32 %v10056_v52, %v11441_v43 }
0x3e3e   :  { %v6631_v57 = vsel %vm142_vm1, %v11636_v55, 0.0 }
0x3e3f   :  { %6632 = vadd.xlane.f32.xlu0 %v6631_v57  ;;  %v6628_v58 = vsel %vm142_vm1, %v11639_v56, 0.0 }
0x3e40   :  { %6629 = vadd.xlane.f32.xlu1 %v6628_v58 }
0x3ecc   :  { %v6633_v59 = vpop.xlane.xlu0 %6632 }
0x3ecd   :  { %v6635_v39 = vmul.f32 0.03125, %v6633_v59  ;;  %v6630_v24 = vpop.xlane.xlu1 %6629  ;;  %v8629_v59 = vld [vmem:[%s11949_s1 + $0x590] ss:$0 sm:$0xff] }
0x3ece   :  { %v6634_v60 = vmul.f32 0.03125, %v6630_v24 }
0x3ecf   :  { %v6637_v61 = vsub.f32 %v11636_v55, %v6635_v39 }
0x3ed0   :  { %v6636_v63 = vsub.f32 %v11639_v56, %v6634_v60 }
0x3ed1   :  { %v6639_v49 = vmul.f32 %v6637_v61, %v6637_v61 }
0x3ed2   :  { %v6638_v3 = vmul.f32 %v6636_v63, %v6636_v63 }
0x3ed3   :  { %v6643_v43 = vsel %vm142_vm1, %v6639_v49, 0.0 }
0x3ed4   :  { %6644 = vadd.xlane.f32.xlu1 %v6643_v43  ;;  %v6640_v4 = vsel %vm142_vm1, %v6638_v3, 0.0 }
0x3ed5   :  { %6641 = vadd.xlane.f32.xlu0 %v6640_v4 }
0x3f61   :  { %v6645_v6 = vpop.xlane.xlu1 %6644 }
0x3f62   :  { %v6647_v47 = vmul.f32 0.03125, %v6645_v6  ;;  %v6642_v9 = vpop.xlane.xlu0 %6641  ;;  %v8634_v6 = vld [vmem:[%s11951_s2 + $0xc8] sm:$0xff] }
0x3f63   :  { %v6646_v62 = vmul.f32 0.03125, %v6642_v9 }
0x3f64   :  { %v6649_v10 = vadd.f32 1e-12, %v6647_v47  ;;  %v8635_v47 = vld [vmem:[%s11951_s2 + $0xd0] sm:$0xff] }
0x3f65   :  { %v6648_v11 = vadd.f32 1e-12, %v6646_v62  ;;  %v9991_v9 = vpack.c.bf16 %v8635_v47, %v8634_v6  ;;  %v8636_v62 = vld [vmem:[%s11951_s2 + $0xd8] sm:$0xff] }
0x3f66   :  { %10232 = vrsqrt.f32 %v6649_v10  ;;  %v8637_v10 = vld [vmem:[%s11951_s2 + $0xe0] sm:$0xff] }
0x3f67   :  { %10234 = vrsqrt.f32 %v6648_v11  ;;  %9992 = vmatprep.subr.bf16.mxu1 %v9991_v9  ;;  %v9995_v11 = vpack.c.bf16 %v8637_v10, %v8636_v62 }
0x3f68   :  { %9994 = vmatpush3.bf16.msra.mxu1 %v9991_v9 }
0x3f69   :  { %9996 = vmatprep.subr.bf16.mxu1 %v9995_v11 }
0x3f6c   :  { %9998 = vmatpush3.bf16.msra.mxu1 %v9995_v11 }
0x3f6d   :  { %9545 = vmatprep.subr.mxu1 %v10277_v19 }
0x3f70   :  { %v10233_v12 = vpop.eup %10232 }
0x3f71   :  { %v10235_v7 = vpop.eup %10234  ;;  %v6653_v14 = vmul.f32 %v10233_v12, %v6637_v61 }
0x3f72   :  { %v6652_v15 = vmul.f32 %v10235_v7, %v6636_v63 }
0x3f73   :  { %v6659_v17 = vmul.f32 %v8608_v13, %v6653_v14 }
0x3f74   :  { %v6658_v1 = vmul.f32 %v8608_v13, %v6652_v15 }
0x3f75   :  { %v6665_v23 = vadd.f32 %v8609_v16, %v6659_v17 }
0x3f76   :  { %v6664_v18 = vadd.f32 %v8609_v16, %v6658_v1  ;;  %v8632_v1 = vld [vmem:[%s11949_s1 + $0x598] ss:$0 sm:$0xff] }
0x3f78   :  { %9512 = vmatprep.mubr.msk.f32.mxu0 %vm142_vm1, %v6664_v18 }
0x3f79   :  { %9513 = vmatmul.mubr.msk.f32.vlgmr.msra.gmra.mrb[56].mxu0 %vm142_vm1, %v6665_v23 }
0x3f7a   :  { %9978 = vmatpush3.bf16.msra.mxu0 %v9975_v29 }
0x3f7b   :  { %9980 = vmatprep.subr.bf16.mxu0 %v9979_v34 }
0x3f7e   :  { %9982 = vmatpush3.bf16.msra.mxu0 %v9979_v34 }
0x3f7f   :  { %9984 = vmatprep.subr.bf16.mxu0 %v9983_v37 }
0x3f82   :  { %9986 = vmatpush3.bf16.msra.mxu0 %v9983_v37 }
0x3f83   :  { %9988 = vmatprep.subr.bf16.mxu0 %v9987_v8 }
0x3f86   :  { %9990 = vmatpush3.bf16.msra.mxu0 %v9987_v8 }
0x3f87   :  { %9555 = vmatprep.subr.mxu0 %v10277_v19 }
0x404c   :  { %v9514_v44 = vpop.f32.mrb[56].mxu0 }
0x404d   :  { %v6754_v32 = vadd.f32 %v9514_v44, %v8615_v42  ;;  %v6748_v0 = vpop.f32.mrb[57].mxu0 }
0x404e   :  { %v6749_v45 = vadd.f32 %v8615_v42, %v6748_v0 }
0x404f   :  { %v6760_v25 = vmul.f32 0.70710677, %v6754_v32  ;;  %v6758_v38 = vmul.f32 0.5, %v6754_v32 }
0x4050   :  { %v6759_v46 = vmul.f32 0.70710677, %v6749_v45  ;;  %v6757_v50 = vmul.f32 0.5, %v6749_v45 }
0x4051   :  { %10236 = verf.f32 %v6760_v25 }
0x4052   :  { %10238 = verf.f32 %v6759_v46 }
0x405b   :  { %v10237_v48 = vpop.eup %10236 }
0x405c   :  { %v10239_v30 = vpop.eup %10238  ;;  %v6764_v36 = vadd.f32 1.0, %v10237_v48 }
0x405d   :  { %v6763_v51 = vadd.f32 1.0, %v10239_v30 }
0x405e   :  { %v6766_v57 = vmul.f32 %v6764_v36, %v6758_v38 }
0x405f   :  { %v6765_v52 = vmul.f32 %v6763_v51, %v6757_v50 }
0x4061   :  { %9531 = vmatprep.mubr.msk.f32.mxu0 %vm55_vm0, %v6765_v52 }
0x4062   :  { %9532 = vmatmul.mubr.msk.f32.vlgmr.msra.gmra.mrb[58].mxu0 %vm55_vm0, %v6766_v57 }
0x4063   :  { %9557 = vmatprep.mubr.msk.f32.mxu0 %vm10278_vm2, %v10277_v19 }
0x4135   :  { %v9533_v58 = vpop.f32.mrb[58].mxu0 }
0x4136   :  { %v6857_v39 = vadd.f32 %v9533_v58, %v11636_v55  ;;  %v6847_v24 = vpop.f32.mrb[59].mxu0 }
0x4137   :  { %v6856_v60 = vadd.f32 %v6847_v24, %v11639_v56 }
0x4138   :  { %v11706_v61 = vadd.f32 %v8629_v59, %v6857_v39 }
0x4139   :  { %v11708_v63 = vadd.f32 %v8629_v59, %v6856_v60 }
0x413a   :  { %v6870_v49 = vsel %vm142_vm1, %v11706_v61, 0.0 }
0x413b   :  { %6871 = vadd.xlane.f32.xlu1 %v6870_v49  ;;  %v6867_v3 = vsel %vm142_vm1, %v11708_v63, 0.0 }
0x413c   :  { %6868 = vadd.xlane.f32.xlu0 %v6867_v3  ;;  %v8642_v3 = vld [vmem:[%s11949_s1 + $0x5a8] sm:$0xff] }
0x41c8   :  { %v6872_v43 = vpop.xlane.xlu1 %6871 }
0x41c9   :  { %v6874_v4 = vmul.f32 0.03125, %v6872_v43  ;;  %v6869_v26 = vpop.xlane.xlu0 %6868  ;;  %v8643_v43 = vld [vmem:[%s11949_s1 + $0x5b0] sm:$0xff] }
0x41ca   :  { %v6873_v53 = vmul.f32 0.03125, %v6869_v26  ;;  %v9999_v26 = vpack.c.bf16 %v8643_v43, %v8642_v3 }
0x41cb   :  { %v6876_v55 = vsub.f32 %v11706_v61, %v6874_v4 }
0x41cc   :  { %v6875_v56 = vsub.f32 %v11708_v63, %v6873_v53 }
0x41cd   :  { %v6878_v21 = vmul.f32 %v6876_v55, %v6876_v55 }
0x41ce   :  { %v6877_v54 = vmul.f32 %v6875_v56, %v6875_v56 }
0x41cf   :  { %v6882_v5 = vsel %vm142_vm1, %v6878_v21, 0.0 }
0x41d0   :  { %6883 = vadd.xlane.f32.xlu1 %v6882_v5  ;;  %v6879_v20 = vsel %vm142_vm1, %v6877_v54, 0.0 }
0x41d1   :  { %6880 = vadd.xlane.f32.xlu0 %v6879_v20 }
0x425d   :  { %v6884_v12 = vpop.xlane.xlu1 %6883 }
0x425e   :  { %v6886_v13 = vmul.f32 0.03125, %v6884_v12  ;;  %v6881_v7 = vpop.xlane.xlu0 %6880 }
0x425f   :  { %v6885_v14 = vmul.f32 0.03125, %v6881_v7 }
0x4260   :  { %v6888_v15 = vadd.f32 1e-12, %v6886_v13 }
0x4261   :  { %v6887_v16 = vadd.f32 1e-12, %v6885_v14 }
0x4262   :  { %10240 = vrsqrt.f32 %v6888_v15 }
0x4263   :  { %10242 = vrsqrt.f32 %v6887_v16 }
0x426c   :  { %v10241_v17 = vpop.eup %10240 }
0x426d   :  { %v10243_v18 = vpop.eup %10242  ;;  %v6892_v23 = vmul.f32 %v10241_v17, %v6876_v55 }
0x426e   :  { %v6891_v2 = vmul.f32 %v10243_v18, %v6875_v56 }
0x426f   :  { %v6898_v29 = vmul.f32 %v8632_v1, %v6892_v23 }
0x4270   :  { %v6897_v22 = vmul.f32 %v8632_v1, %v6891_v2 }
0x4271   :  { %v6904_v34 = vadd.f32 %v8633_v27, %v6898_v29 }
0x4272   :  { %v6903_v33 = vadd.f32 %v8633_v27, %v6897_v22 }
0x4274   :  { %9542 = vmatprep.mubr.msk.f32.mxu1 %vm142_vm1, %v6903_v33 }
0x4275   :  { %9543 = vmatmul.mubr.msk.f32.vlgmr.msra.gmra.mrb[78].mxu1 %vm142_vm1, %v6904_v34 }
0x4276   :  { %9547 = vmatprep.mubr.msk.f32.mxu1 %vm10278_vm2, %v10277_v19 }
0x4348   :  { %v9544_v35 = vpop.f32.mrb[78].mxu1 }
0x4349   :  { %v11744_v37 = vadd.f32 %v9544_v35, %v8639_v28  ;;  %v6986_v40 = vpop.f32.mrb[79].mxu1 }
0x434a   :  { %v11746_v41 = vadd.f32 %v8639_v28, %v6986_v40 }
0x434b   :  { %7078 = vrot.lane.b32.xlu1 %v11744_v37, %s10279_s21 }
0x434c   :  { %7001 = vrot.lane.b32.xlu0 %v11746_v41, %s10279_s21 }
0x43bd   :  { %v7079_v42 = vpop.permute.xlu1 %7078 }
0x43be   :  { %v7002_v8 = vpop.permute.xlu0 %7001 }
0x43bf   :  { %9546 = vmatpush3.xpose.msk.msra.mxu1 %vm280_vm3, %v7002_v8 }
0x43c0   :  { %9550 = vmatprep.subr.mxu1 %v10277_v19 }
0x43c2   :  { %9548 = vmatmul.mubr.msk.f32.vlgmr.msra.gmra.mrb[80].mxu1 %vm280_vm3, %v11746_v41 }
0x43c3   :  { %9551 = vmatpush3.xpose.msk.msra.mxu1 %vm280_vm3, %v7079_v42  ;;  %9552 = vmatprep.mubr.msk.f32.mxu1 %vm10278_vm2, %v10277_v19 }
0x43c4   :  { %9560 = vmatprep.subr.mxu1 %v10277_v19 }
0x43c6   :  { %9553 = vmatmul.mubr.msk.f32.vlgmr.msra.gmra.mrb[82].mxu1 %vm280_vm3, %v11744_v37 }
0x43c7   :  { %9562 = vmatprep.mubr.msk.f32.mxu1 %vm10278_vm2, %v10277_v19 }
0x4495   :  { %v7073_v44 = vpop.f32.mrb[80].mxu1 }
0x4496   :  { %v7154_v32 = vmul.f32 0.25, %v7073_v44  ;;  %v9549_v0 = vpop.f32.mrb[81].mxu1 }
0x4498   :  { %v7156_v45 = vadd.f32 %v7154_v32, %v10479_v31 }
0x4499   :  { %v7150_v25 = vpop.f32.mrb[82].mxu1 }
0x449a   :  { %v7155_v46 = vmul.f32 0.25, %v7150_v25  ;;  %v9554_v48 = vpop.f32.mrb[83].mxu1  ;;  %v7158_v30 = vsel %vm436_vm5, %v7156_v45, -inf }
0x449b   :  { %7159 = vmax.xlane.f32.xlu1 %v7158_v30  ;;  %v8644_v48 = vld [vmem:[%s11949_s1 + $0x5b8] sm:$0xff] }
0x449c   :  { %v7157_v36 = vadd.f32 %v7155_v46, %v10479_v31 }
0x449e   :  { %v7161_v50 = vsel %vm436_vm5, %v7157_v36, -inf }
0x449f   :  { %7162 = vmax.xlane.f32.xlu0 %v7161_v50 }
0x4528   :  { %v7160_v51 = vpop.xlane.xlu1 %7159 }
0x4529   :  { %v7164_v38 = vsub.f32 %v7156_v45, %v7160_v51 }
0x452b   :  { %v7166_v52 = vmul.f32 1.442695, %v7164_v38 }
0x452c   :  { %v7163_v57 = vpop.xlane.xlu0 %7162 }
0x452d   :  { %10244 = vpow2.f32 %v7166_v52  ;;  %v7165_v58 = vsub.f32 %v7157_v36, %v7163_v57  ;;  %v8655_v52 = vld [vmem:[%s11949_s1 + $0x5c8] ss:$0 sm:$0xff] }
0x452f   :  { %v7168_v59 = vmul.f32 1.442695, %v7165_v58 }
0x4531   :  { %10246 = vpow2.f32 %v7168_v59 }
0x4537   :  { %v10245_v39 = vpop.eup %10244 }
0x4538   :  { %v7170_v24 = vsel %vm436_vm5, %v10245_v39, 0.0 }
0x4539   :  { %7171 = vadd.xlane.f32.xlu0 %v7170_v24 }
0x453b   :  { %v10247_v60 = vpop.eup %10246 }
0x453c   :  { %v7173_v49 = vsel %vm436_vm5, %v10247_v60, 0.0 }
0x453d   :  { %7174 = vadd.xlane.f32.xlu1 %v7173_v49 }
0x454e   :  { %7256 = vrot.lane.b32.xlu1 %v11744_v37, %s10281_s22 }
0x454f   :  { %7180 = vrot.lane.b32.xlu0 %v11746_v41, %s10281_s22 }
0x4552   :  { %7421 = vrot.lane.b32.xlu1 %v11746_v41, %s10282_s23 }
0x4553   :  { %7419 = vrot.lane.b32.xlu0 %v11746_v41, %s10283_s24 }
0x4556   :  { %7499 = vrot.lane.b32.xlu1 %v11744_v37, %s10282_s23 }
0x455a   :  { %7497 = vrot.lane.b32.xlu1 %v11744_v37, %s10283_s24 }
0x45c6   :  { %v7172_v4 = vpop.xlane.xlu0 %7171 }
0x45c7   :  { %10248 = vrcp.f32 %v7172_v4 }
0x45ca   :  { %v7175_v53 = vpop.xlane.xlu1 %7174  ;;  %v7181_v55 = vpop.permute.xlu0 %7180 }
0x45cb   :  { %10250 = vrcp.f32 %v7175_v53  ;;  %9556 = vmatpush3.msra.mxu0 %v7181_v55 }
0x45cc   :  { %10000 = vmatprep.subr.bf16.mxu0 %v9999_v26 }
0x45ce   :  { %v7257_v56 = vpop.permute.xlu1 %7256  ;;  %v7420_v47 = vpop.permute.xlu0 %7419 }
0x45cf   :  { %9561 = vmatpush3.msra.mxu1 %v7257_v56 }
0x45d0   :  { %9572 = vmatprep.subr.mxu1 %v10277_v19 }
0x45d1   :  { %v10249_v21 = vpop.eup %10248 }
0x45d2   :  { %v7178_v54 = vmul.f32 %v10249_v21, %v10245_v39  ;;  %v7422_v6 = vpop.permute.xlu1 %7421 }
0x45d4   :  { %9558 = vmatmul.mubr.msk.f32.vlgmr.msra.gmra.mrb[60].mxu0 %vm436_vm5, %v7178_v54 }
0x45d5   :  { %v10251_v5 = vpop.eup %10250  ;;  %10002 = vmatpush3.bf16.msra.mxu0 %v9999_v26 }
0x45d6   :  { %v7179_v20 = vmul.f32 %v10251_v5, %v10247_v60  ;;  %9577 = vmatprep.subr.mxu0 %v10277_v19  ;;  %v7500_v10 = vpop.permute.xlu1 %7499  ;;  %v8668_v5 = vld [vmem:[%s11952_s3 + $0xc8] sm:$0xff] }
0x45d8   :  { %9563 = vmatmul.mubr.msk.f32.vlgmr.msra.gmra.mrb[84].mxu1 %vm436_vm5, %v7179_v20  ;;  %v8669_v20 = vld [vmem:[%s11952_s3 + $0xd0] sm:$0xff] }
0x45d9   :  { %9573 = vmatpush3.xpose.msk.msra.mxu1 %vm280_vm3, %v7422_v6  ;;  %9574 = vmatprep.mubr.msk.f32.mxu1 %vm10278_vm2, %v10277_v19  ;;  %v10007_v6 = vpack.c.bf16 %v8669_v20, %v8668_v5 }
0x45da   :  { %9582 = vmatprep.subr.mxu1 %v10277_v19  ;;  %v7498_v13 = vpop.permute.xlu1 %7497 }
0x45dc   :  { %9575 = vmatmul.mubr.msk.f32.vlgmr.msra.gmra.mrb[86].mxu1 %vm280_vm3, %v7420_v47  ;;  %v8670_v47 = vld [vmem:[%s11952_s3 + $0xd8] sm:$0xff] }
0x45dd   :  { %9584 = vmatprep.mubr.msk.f32.mxu1 %vm10278_vm2, %v10277_v19 }
0x46a7   :  { %v7252_v9 = vpop.f32.mrb[60].mxu0 }
0x46a8   :  { %v9559_v62 = vpop.f32.mrb[61].mxu0  ;;  %9569 = vmatprep.mubr.msk.f32.mxu0 %vm280_vm3, %v7252_v9  ;;  %v8671_v9 = vld [vmem:[%s11952_s3 + $0xe0] sm:$0xff] }
0x46a9   :  { %v10011_v62 = vpack.c.bf16 %v8671_v9, %v8670_v47  ;;  %v8692_v9 = vld [vmem:[%s11949_s1 + $0x638] sm:$0xff] }
0x46ab   :  { %v7328_v11 = vpop.f32.mrb[84].mxu1 }
0x46ac   :  { %v9564_v12 = vpop.f32.mrb[85].mxu1  ;;  %9570 = vmatmul.mubr.msk.f32.vlgmr.msra.gmra.mrb[62].mxu0 %vm280_vm3, %v7328_v11 }
0x46ad   :  { %9578 = vmatpush3.xpose.msk.msra.mxu0 %vm280_vm3, %v7500_v10  ;;  %9579 = vmatprep.mubr.msk.f32.mxu0 %vm10278_vm2, %v10277_v19 }
0x46ae   :  { %9587 = vmatprep.subr.mxu0 %v10277_v19 }
0x46af   :  { %v7493_v7 = vpop.f32.mrb[86].mxu1 }
0x46b0   :  { %v7575_v14 = vmul.f32 0.25, %v7493_v7  ;;  %v9576_v15 = vpop.f32.mrb[87].mxu1  ;;  %9580 = vmatmul.mubr.msk.f32.vlgmr.msra.gmra.mrb[64].mxu0 %vm280_vm3, %v7498_v13 }
0x46b1   :  { %9589 = vmatprep.mubr.msk.f32.mxu0 %vm10278_vm2, %v10277_v19 }
0x46b2   :  { %v7577_v16 = vadd.f32 %v7575_v14, %v10479_v31 }
0x46b4   :  { %v7579_v17 = vsel %vm436_vm5, %v7577_v16, -inf }
0x46b5   :  { %7580 = vmax.xlane.f32.xlu0 %v7579_v17 }
0x4742   :  { %v7581_v1 = vpop.xlane.xlu0 %7580 }
0x4743   :  { %v7585_v18 = vsub.f32 %v7577_v16, %v7581_v1  ;;  %v8666_v16 = vld [vmem:[%s11949_s1 + $0x5d0] ss:$0 sm:$0xff] }
0x4745   :  { %v7587_v23 = vmul.f32 1.442695, %v7585_v18 }
0x4747   :  { %10252 = vpow2.f32 %v7587_v23  ;;  %v8667_v23 = vld [vmem:[%s11949_s1 + $0x5d8] ss:$0 sm:$0xff] }
0x4751   :  { %v10253_v2 = vpop.eup %10252 }
0x4752   :  { %v7591_v27 = vsel %vm436_vm5, %v10253_v2, 0.0 }
0x4753   :  { %7592 = vadd.xlane.f32.xlu0 %v7591_v27 }
0x4783   :  { %v7571_v29 = vpop.f32.mrb[64].mxu0 }
0x4784   :  { %v7576_v22 = vmul.f32 0.25, %v7571_v29  ;;  %v9581_v33 = vpop.f32.mrb[65].mxu0 }
0x4785   :  { %v8676_v33 = vld [vmem:[%s11949_s1 + $0x5e0] sm:$0xff] }
0x4786   :  { %v7578_v34 = vadd.f32 %v7576_v22, %v10479_v31 }
0x4788   :  { %v7582_v19 = vsel %vm436_vm5, %v7578_v34, -inf }
0x4789   :  { %7583 = vmax.xlane.f32.xlu1 %v7582_v19 }
0x479a   :  { %7677 = vrot.lane.b32.xlu1 %v11744_v37, %s10284_s29 }
0x47e0   :  { %v7593_v31 = vpop.xlane.xlu0 %7592 }
0x4816   :  { %v7584_v28 = vpop.xlane.xlu1 %7583 }
0x4817   :  { %v7586_v35 = vsub.f32 %v7578_v34, %v7584_v28  ;;  %v8677_v34 = vld [vmem:[%s11949_s1 + $0x5e8] sm:$0xff]  ;;  %v8678_v28 = vld [vmem:[%s11949_s1 + $0x5f0] sm:$0xff] }
0x4818   :  { %v10015_v19 = vpack.c.bf16 %v8677_v34, %v8676_v33 }
0x4819   :  { %v7589_v40 = vmul.f32 1.442695, %v7586_v35  ;;  %v8679_v35 = vld [vmem:[%s11949_s1 + $0x5f8] sm:$0xff] }
0x481a   :  { %v7678_v8 = vpop.permute.xlu1 %7677 }
0x481b   :  { %10254 = vpow2.f32 %v7589_v40  ;;  %9588 = vmatpush3.msra.mxu0 %v7678_v8  ;;  %v10019_v40 = vpack.c.bf16 %v8679_v35, %v8678_v28  ;;  %v8680_v8 = vld [vmem:[%s11949_s1 + $0x600] sm:$0xff] }
0x481c   :  { %10256 = vrcp.f32 %v7593_v31  ;;  %v8682_v31 = vld [vmem:[%s11949_s1 + $0x610] sm:$0xff]  ;;  %v8208_v35 = vld [vmem:[%s11953_s4 + $0x40] sm:$0xff] }
0x4825   :  { %v10255_v42 = vpop.eup %10254 }
0x4826   :  { %v7594_v44 = vsel %vm436_vm5, %v10255_v42, 0.0  ;;  %v10257_v0 = vpop.eup %10256 }
0x4827   :  { %7595 = vadd.xlane.f32.xlu0 %v7594_v44  ;;  %v7599_v45 = vmul.f32 %v10257_v0, %v10253_v2 }
0x483d   :  { %7601 = vrot.lane.b32.xlu0 %v11746_v41, %s10284_s29  ;;  %v8645_v41 = vld [vmem:[%s11949_s1 + $0x5c0] sm:$0xff] }
0x483e   :  { %v10003_v30 = vpack.c.bf16 %v8645_v41, %v8644_v48 }
0x4840   :  { %10004 = vmatprep.subr.bf16.mxu0 %v10003_v30 }
0x48b4   :  { %v7596_v32 = vpop.xlane.xlu0 %7595 }
0x48b5   :  { %10258 = vrcp.f32 %v7596_v32  ;;  %v8683_v32 = vld [vmem:[%s11949_s1 + $0x618] sm:$0xff] }
0x48b6   :  { %v10027_v0 = vpack.c.bf16 %v8683_v32, %v8682_v31  ;;  %v8697_v32 = vld [vmem:[%s11949_s1 + $0x658] ss:$0 sm:$0xff] }
0x48b8   :  { %v7602_v37 = vpop.permute.xlu0 %7601 }
0x48b9   :  { %9583 = vmatpush3.msra.mxu1 %v7602_v37 }
0x48ba   :  { %9585 = vmatmul.mubr.msk.f32.vlgmr.msra.gmra.mrb[88].mxu1 %vm436_vm5, %v7599_v45  ;;  %10008 = vmatprep.subr.bf16.mxu1 %v10007_v6  ;;  %v8673_v45 = vld [vmem:[%s11952_s3 + $0xe8] ss:$0 sm:$0xff] }
0x48bb   :  { %10010 = vmatpush3.bf16.msra.mxu1 %v10007_v6 }
0x48bc   :  { %10012 = vmatprep.subr.bf16.mxu1 %v10011_v62 }
0x48bf   :  { %v10259_v25 = vpop.eup %10258  ;;  %10014 = vmatpush3.bf16.msra.mxu1 %v10011_v62  ;;  %v8693_v62 = vld [vmem:[%s11949_s1 + $0x640] sm:$0xff] }
0x48c0   :  { %v7600_v46 = vmul.f32 %v10259_v25, %v10255_v42  ;;  %v8681_v42 = vld [vmem:[%s11949_s1 + $0x608] sm:$0xff] }
0x48c1   :  { %v10023_v44 = vpack.c.bf16 %v8681_v42, %v8680_v8  ;;  %v8210_v8 = vld [vmem:[%s11953_s4 + $0x50] sm:$0xff] }
0x48c2   :  { %9590 = vmatmul.mubr.msk.f32.vlgmr.msra.gmra.mrb[66].mxu0 %vm436_vm5, %v7600_v46 }
0x48c3   :  { %10006 = vmatpush3.bf16.msra.mxu0 %v10003_v30 }
0x48c4   :  { %10016 = vmatprep.subr.bf16.mxu0 %v10015_v19 }
0x498d   :  { %v7673_v36 = vpop.f32.mrb[88].mxu1 }
0x498e   :  { %v9586_v50 = vpop.f32.mrb[89].mxu1  ;;  %9596 = vmatprep.mubr.msk.f32.mxu0 %vm280_vm3, %v7673_v36 }
0x4995   :  { %v7749_v51 = vpop.f32.mrb[66].mxu0 }
0x4996   :  { %v9591_v38 = vpop.f32.mrb[67].mxu0  ;;  %9597 = vmatmul.mubr.msk.f32.vlgmr.msra.gmra.mrb[62].mxu0 %vm280_vm3, %v7749_v51 }
0x4997   :  { %10018 = vmatpush3.bf16.msra.mxu0 %v10015_v19 }
0x4998   :  { %10020 = vmatprep.subr.bf16.mxu0 %v10019_v40 }
0x499b   :  { %10022 = vmatpush3.bf16.msra.mxu0 %v10019_v40  ;;  %v8209_v40 = vld [vmem:[%s11953_s4 + $0x48] sm:$0xff] }
0x499c   :  { %10024 = vmatprep.subr.bf16.mxu0 %v10023_v44  ;;  %v10039_v42 = vpack.c.bf16 %v8209_v40, %v8208_v35 }
0x499f   :  { %10026 = vmatpush3.bf16.msra.mxu0 %v10023_v44  ;;  %v8211_v44 = vld [vmem:[%s11953_s4 + $0x58] sm:$0xff] }
0x49a0   :  { %10028 = vmatprep.subr.bf16.mxu0 %v10027_v0  ;;  %v10043_v31 = vpack.c.bf16 %v8211_v44, %v8210_v8 }
0x49a3   :  { %10030 = vmatpush3.bf16.msra.mxu0 %v10027_v0 }
0x4a69   :  { %v9598_v57 = vpop.f32.mrb[62].mxu0 }
0x4a6a   :  { %v10057_v58 = vadd.f32 %v9598_v57, %v8655_v52  ;;  %v7825_v59 = vpop.f32.mrb[63].mxu0 }
0x4a6b   :  { %v10058_v39 = vadd.f32 %v8655_v52, %v7825_v59 }
0x4a6c   :  { %v11832_v24 = vadd.f32 %v10057_v58, %v11706_v61 }
0x4a6d   :  { %v11835_v60 = vadd.f32 %v10058_v39, %v11708_v63 }
0x4a6e   :  { %v7843_v49 = vsel %vm142_vm1, %v11832_v24, 0.0 }
0x4a6f   :  { %7844 = vadd.xlane.f32.xlu0 %v7843_v49  ;;  %v7840_v3 = vsel %vm142_vm1, %v11835_v60, 0.0  ;;  %v8687_v49 = vld [vmem:[%s11949_s1 + $0x620] ss:$0 sm:$0xff] }
0x4a70   :  { %7841 = vadd.xlane.f32.xlu1 %v7840_v3 }
0x4afc   :  { %v7845_v43 = vpop.xlane.xlu0 %7844 }
0x4afd   :  { %v7847_v4 = vmul.f32 0.03125, %v7845_v43  ;;  %v7842_v26 = vpop.xlane.xlu1 %7841 }
0x4afe   :  { %v7846_v53 = vmul.f32 0.03125, %v7842_v26 }
0x4aff   :  { %v7849_v55 = vsub.f32 %v11832_v24, %v7847_v4 }
0x4b00   :  { %v7848_v61 = vsub.f32 %v11835_v60, %v7846_v53 }
0x4b01   :  { %v7851_v56 = vmul.f32 %v7849_v55, %v7849_v55 }
0x4b02   :  { %v7850_v21 = vmul.f32 %v7848_v61, %v7848_v61 }
0x4b03   :  { %v7855_v63 = vsel %vm142_vm1, %v7851_v56, 0.0 }
0x4b04   :  { %7856 = vadd.xlane.f32.xlu1 %v7855_v63  ;;  %v7852_v54 = vsel %vm142_vm1, %v7850_v21, 0.0 }
0x4b05   :  { %7853 = vadd.xlane.f32.xlu0 %v7852_v54 }
0x4b91   :  { %v7857_v10 = vpop.xlane.xlu1 %7856 }
0x4b92   :  { %v7859_v11 = vmul.f32 0.03125, %v7857_v10  ;;  %v7854_v12 = vpop.xlane.xlu0 %7853  ;;  %v10031_v10 = vpack.c.bf16 %v8693_v62, %v8692_v9 }
0x4b93   :  { %v7858_v13 = vmul.f32 0.03125, %v7854_v12  ;;  %v8695_v12 = vld [vmem:[%s11949_s1 + $0x650] sm:$0xff] }
0x4b94   :  { %v7861_v7 = vadd.f32 1e-12, %v7859_v11  ;;  %v8694_v11 = vld [vmem:[%s11949_s1 + $0x648] sm:$0xff]  ;;  %10032 = vmatprep.subr.bf16.mxu1 %v10031_v10 }
0x4b95   :  { %v7860_v14 = vadd.f32 1e-12, %v7858_v13  ;;  %v10035_v13 = vpack.c.bf16 %v8695_v12, %v8694_v11 }
0x4b96   :  { %10260 = vrsqrt.f32 %v7861_v7 }
0x4b97   :  { %10262 = vrsqrt.f32 %v7860_v14 }
0x4ba0   :  { %v10261_v15 = vpop.eup %10260 }
0x4ba1   :  { %v10263_v17 = vpop.eup %10262  ;;  %v7865_v1 = vmul.f32 %v10261_v15, %v7849_v55 }
0x4ba2   :  { %v7864_v18 = vmul.f32 %v10263_v17, %v7848_v61 }
0x4ba3   :  { %v7871_v2 = vmul.f32 %v8666_v16, %v7865_v1 }
0x4ba4   :  { %v7870_v27 = vmul.f32 %v8666_v16, %v7864_v18 }
0x4ba5   :  { %v7877_v22 = vadd.f32 %v8667_v23, %v7871_v2 }
0x4ba6   :  { %v7876_v29 = vadd.f32 %v8667_v23, %v7870_v27  ;;  %v8690_v23 = vld [vmem:[%s11949_s1 + $0x628] ss:$0 sm:$0xff] }
0x4ba8   :  { %9607 = vmatprep.mubr.msk.f32.mxu1 %vm142_vm1, %v7876_v29 }
0x4ba9   :  { %9608 = vmatmul.mubr.msk.f32.vlgmr.msra.gmra.mrb[90].mxu1 %vm142_vm1, %v7877_v22  ;;  %v8691_v22 = vld [vmem:[%s11949_s1 + $0x630] ss:$0 sm:$0xff] }
0x4baa   :  { %10034 = vmatpush3.bf16.msra.mxu1 %v10031_v10 }
0x4bab   :  { %10036 = vmatprep.subr.bf16.mxu1 %v10035_v13 }
0x4bae   :  { %10038 = vmatpush3.bf16.msra.mxu1 %v10035_v13 }
0x4baf   :  { %10040 = vmatprep.subr.bf16.mxu1 %v10039_v42 }
0x4c7c   :  { %v9609_v37 = vpop.f32.mrb[90].mxu1 }
0x4c7d   :  { %v7965_v25 = vadd.f32 %v9609_v37, %v8673_v45  ;;  %v7959_v46 = vpop.f32.mrb[91].mxu1 }
0x4c7e   :  { %v7960_v48 = vadd.f32 %v8673_v45, %v7959_v46 }
0x4c7f   :  { %v7971_v41 = vmul.f32 0.70710677, %v7965_v25  ;;  %v7969_v57 = vmul.f32 0.5, %v7965_v25 }
0x4c80   :  { %v7970_v30 = vmul.f32 0.70710677, %v7960_v48  ;;  %v7968_v38 = vmul.f32 0.5, %v7960_v48 }
0x4c81   :  { %10264 = verf.f32 %v7971_v41  ;;  %v8702_v41 = vld [vmem:[%s11954_s5] ss:$0 sm:$0xff] }
0x4c82   :  { %10266 = verf.f32 %v7970_v30 }
0x4c8b   :  { %v10265_v36 = vpop.eup %10264 }
0x4c8c   :  { %v10267_v50 = vpop.eup %10266  ;;  %v7975_v51 = vadd.f32 1.0, %v10265_v36 }
0x4c8d   :  { %v7974_v52 = vadd.f32 1.0, %v10267_v50 }
0x4c8e   :  { %v7977_v59 = vmul.f32 %v7975_v51, %v7969_v57 }
0x4c8f   :  { %v7976_v58 = vmul.f32 %v7974_v52, %v7968_v38 }
0x4c91   :  { %9626 = vmatprep.mubr.msk.f32.mxu0 %vm55_vm0, %v7976_v58 }
0x4c92   :  { %9627 = vmatmul.mubr.msk.f32.vlgmr.msra.gmra.mrb[68].mxu0 %vm55_vm0, %v7977_v59 }
0x4d65   :  { %v9628_v39 = vpop.f32.mrb[68].mxu0 }
0x4d66   :  { %v8068_v3 = vadd.f32 %v9628_v39, %v11832_v24  ;;  %v8058_v43 = vpop.f32.mrb[69].mxu0 }
0x4d67   :  { %v8067_v4 = vadd.f32 %v8058_v43, %v11835_v60 }
0x4d68   :  { %v8075_v26 = vadd.f32 %v8687_v49, %v8068_v3 }
0x4d69   :  { %v8074_v53 = vadd.f32 %v8687_v49, %v8067_v4 }
0x4d6a   :  { %v8081_v55 = vsel %vm142_vm1, %v8075_v26, 0.0 }
0x4d6b   :  { %8082 = vadd.xlane.f32.xlu1 %v8081_v55  ;;  %v8078_v61 = vsel %vm142_vm1, %v8074_v53, 0.0 }
0x4d6c   :  { %8079 = vadd.xlane.f32.xlu0 %v8078_v61 }
0x4df8   :  { %v8083_v56 = vpop.xlane.xlu1 %8082 }
0x4df9   :  { %v8085_v21 = vmul.f32 0.03125, %v8083_v56  ;;  %v8080_v63 = vpop.xlane.xlu0 %8079 }
0x4dfa   :  { %v8084_v54 = vmul.f32 0.03125, %v8080_v63 }
0x4dfb   :  { %v8087_v5 = vsub.f32 %v8075_v26, %v8085_v21 }
0x4dfc   :  { %v8086_v20 = vsub.f32 %v8074_v53, %v8084_v54 }
0x4dfd   :  { %v8089_v6 = vmul.f32 %v8087_v5, %v8087_v5 }
0x4dfe   :  { %v8088_v47 = vmul.f32 %v8086_v20, %v8086_v20 }
0x4dff   :  { %v8093_v24 = vsel %vm142_vm1, %v8089_v6, 0.0 }
0x4e00   :  { %8094 = vadd.xlane.f32.xlu1 %v8093_v24  ;;  %v8090_v60 = vsel %vm142_vm1, %v8088_v47, 0.0 }
0x4e01   :  { %8091 = vadd.xlane.f32.xlu0 %v8090_v60 }
0x4e8d   :  { %v8095_v7 = vpop.xlane.xlu1 %8094 }
0x4e8e   :  { %v8097_v14 = vmul.f32 0.03125, %v8095_v7  ;;  %v8092_v15 = vpop.xlane.xlu0 %8091 }
0x4e8f   :  { %v8096_v16 = vmul.f32 0.03125, %v8092_v15 }
0x4e90   :  { %v8099_v17 = vadd.f32 1e-12, %v8097_v14 }
0x4e91   :  { %v8098_v1 = vadd.f32 1e-12, %v8096_v16 }
0x4e92   :  { %10268 = vrsqrt.f32 %v8099_v17 }
0x4e93   :  { %10270 = vrsqrt.f32 %v8098_v1 }
0x4e9c   :  { %v10269_v18 = vpop.eup %10268 }
0x4e9d   :  { %v10271_v2 = vpop.eup %10270  ;;  %v8103_v27 = vmul.f32 %v10269_v18, %v8087_v5 }
0x4e9e   :  { %v8102_v29 = vmul.f32 %v10271_v2, %v8086_v20 }
0x4e9f   :  { %v8109_v33 = vmul.f32 %v8690_v23, %v8103_v27 }
0x4ea0   :  { %v8108_v34 = vmul.f32 %v8690_v23, %v8102_v29 }
0x4ea1   :  { %v8115_v28 = vadd.f32 %v8691_v22, %v8109_v33 }
0x4ea2   :  { %v8114_v19 = vadd.f32 %v8691_v22, %v8108_v34 }
0x4ea4   :  { %9637 = vmatprep.mubr.msk.f32.mxu1 %vm142_vm1, %v8114_v19 }
0x4ea5   :  { %9638 = vmatmul.mubr.msk.f32.vlgmr.msra.gmra.mrb[92].mxu1 %vm142_vm1, %v8115_v28 }
0x4ea6   :  { %10042 = vmatpush3.bf16.msra.mxu1 %v10039_v42 }
0x4ea7   :  { %10044 = vmatprep.subr.bf16.mxu1 %v10043_v31 }
0x4eaa   :  { %10046 = vmatpush3.bf16.msra.mxu1 %v10043_v31 }
0x4f78   :  { %v9639_v0 = vpop.f32.mrb[92].mxu1 }
0x4f79   :  { %v8203_v45 = vadd.f32 %v9639_v0, %v8697_v32  ;;  %v8197_v37 = vpop.f32.mrb[93].mxu1 }
0x4f7a   :  { %v8198_v25 = vadd.f32 %v8697_v32, %v8197_v37 }
0x4f7c   :  { %10272 = vtanh.f32 %v8198_v25 }
0x4f7d   :  { %10274 = vtanh.f32 %v8203_v45 }
0x4f86   :  { %v10273_v46 = vpop.eup %10272 }
0x4f87   :  { %v10275_v48 = vpop.eup %10274  ;;  %9648 = vmatprep.mubr.msk.f32.mxu1 %vm142_vm1, %v10273_v46 }
0x4f88   :  { %9649 = vmatmul.mubr.msk.f32.vlgmr.msra.gmra.mrb[56].mxu1 %vm142_vm1, %v10275_v48 }
0x505b   :  { %v9650_v30 = vpop.f32.mrb[56].mxu1 }
0x505c   :  { %v8303_v36 = vadd.f32 %v9650_v30, %v8702_v41  ;;  %v8284_v50 = vpop.f32.mrb[57].mxu1 }
0x505d   :  { %v8302_v51 = vadd.f32 %v8702_v41, %v8284_v50 }
0x505e   :  { %8306 = vst.msk [vmem:[%s11955_s6 + $0x8] sm:$0xff] %vm8304_vm6, %v8303_v36 }
0x505f   :  { %8305 = vst.msk [vmem:[%s11955_s6] sm:$0xff] %vm8304_vm6, %v8302_v51 }

</bundles_post_ra>
